<compile_context>
chip_gen: v7x
topology: tpu7x:2x2x1
jax: 0.10.0
libtpu: 0.0.40
codegen_flags: <defaults>
</compile_context>

<pallas_src>
import functools

import numpy as np
import jax
import jax.numpy as jnp
from jax.experimental import pallas as pl
from jax.experimental.pallas import tpu as pltpu


# ------------------------------ fused kernel -------------------------------

def _fused_actor_kernel(x_ref, c1_ref, s1_ref, t1_ref, c2_ref, s2_ref, t2_ref,
                        wf1_ref, bf1_ref, wf2_ref, bf2_ref, o_ref,
                        *, bt, kh, oh1, oh2):
    # x_ref : (H, bt, XL)   f32   h-major input slab, lane = w*Cin + ci (0-padded)
    # c1_ref: (kh*XL, L1)   bf16  merged-ky banded conv1 weights
    # c2_ref: (kh*L1, L2)   bf16  merged-ky banded conv2 weights
    # s*/t* : (1, L*)       f32   folded-BN scale / shift (lane-tiled, 0-padded)
    # wf1   : (oh2, L2, Hp) bf16  fc1 weights chunked per conv2 output row h
    # wf2   : (Hp, A)       f32 ; biases (1, Hp)/(1, A) f32
    xl = x_ref.shape[2]
    l1 = c1_ref.shape[1]
    hpad = wf1_ref.shape[2]

    x = x_ref[...]                                              # (H, bt, XL) f32

    # ---- conv1 + BN + ReLU : ky merged into K (one matmul) ----------------
    x1 = jnp.concatenate([x[ky:ky + oh1] for ky in range(kh)], axis=2)
    x1 = x1.reshape(oh1 * bt, kh * xl).astype(jnp.bfloat16)     # (oh1*bt, kh*XL)
    a1 = jnp.dot(x1, c1_ref[...], preferred_element_type=jnp.float32)
    a1 = jnp.maximum(a1 * s1_ref[...] + t1_ref[...], 0.0)       # (oh1*bt, L1) f32
    a1 = a1.reshape(oh1, bt, l1)

    # ---- conv2 + BN + ReLU -------------------------------------------------
    x2 = jnp.concatenate([a1[ky:ky + oh2] for ky in range(kh)], axis=2)
    x2 = x2.reshape(oh2 * bt, kh * l1).astype(jnp.bfloat16)     # (oh2*bt, kh*L1)
    a2 = jnp.dot(x2, c2_ref[...], preferred_element_type=jnp.float32)
    a2 = jnp.maximum(a2 * s2_ref[...] + t2_ref[...], 0.0)       # (oh2*bt, L2) f32

    # ---- FC1: NCHW flatten folded into per-row accumulation ----------------
    hacc = jnp.zeros((bt, hpad), jnp.float32)
    for hh in range(oh2):
        chunk = a2[hh * bt:(hh + 1) * bt, :].astype(jnp.bfloat16)   # (bt, L2)
        hacc = hacc + jnp.dot(chunk, wf1_ref[hh],
                              preferred_element_type=jnp.float32)
    h = jnp.maximum(hacc + bf1_ref[...], 0.0)                   # (bt, Hp) f32

    # ---- FC2 + softmax (f32, exact normalization) ---------------------------
    logits = jnp.dot(h, wf2_ref[...],
                     preferred_element_type=jnp.float32) + bf2_ref[...]
    m = jnp.max(logits, axis=-1, keepdims=True)
    e = jnp.exp(logits - m)
    o_ref[...] = e / jnp.sum(e, axis=-1, keepdims=True)


# --------------------------- parameter preparation -------------------------

def _lane_pad(n):
    return ((n + 127) // 128) * 128


def _band_weight(w_oihw, out_w, in_pad, out_pad):
    """Merged-ky block-banded weights so a 3x3 'VALID' conv becomes one matmul:
       out(oh, out_pad) = concat_ky(act[ky:ky+oh, :in_pad]) @ band."""
    cout, cin, kh, kw = w_oihw.shape
    wt = np.transpose(w_oihw, (2, 3, 1, 0))                    # (kh, kw, ci, co)
    mat = np.zeros((kh * in_pad, out_pad), np.float32)
    for ky in range(kh):
        for kx in range(kw):
            for w in range(out_w):
                v = w + kx
                r0 = ky * in_pad + v * cin
                c0 = w * cout
                mat[r0:r0 + cin, c0:c0 + cout] = wt[ky, kx]
    return mat


def prepare_params(params, x_size, y_size, eps=1e-5):
    """One-time folding / permutation / padding of the PyTorch-style params."""
    w1 = np.asarray(params["conv1_w"], np.float32)             # (C1, Cin, 3, 3)
    w2 = np.asarray(params["conv2_w"], np.float32)             # (C2, C1, 3, 3)
    c1ch, cin, kh, kw = w1.shape
    c2ch = w2.shape[0]
    H, W = int(x_size), int(y_size)
    oh1, ow1 = H - kh + 1, W - kw + 1
    oh2, ow2 = oh1 - kh + 1, ow1 - kw + 1

    xl = _lane_pad(W * cin)          # padded input lanes
    l1 = _lane_pad(ow1 * c1ch)       # padded conv1-output lanes
    l2 = ow2 * c2ch                  # conv2-output lanes

    def bn_fold(gamma, beta, mean, var, out_w, pad_to):
        g = np.asarray(gamma, np.float32)
        b = np.asarray(beta, np.float32)
        m = np.asarray(mean, np.float32)
        v = np.asarray(var, np.float32)
        scale = g / np.sqrt(v + eps)
        shift = b - m * scale
        s = np.zeros((1, pad_to), np.float32)
        t = np.zeros((1, pad_to), np.float32)
        s[0, :out_w * g.size] = np.tile(scale, out_w)
        t[0, :out_w * g.size] = np.tile(shift, out_w)
        return jnp.asarray(s), jnp.asarray(t)

    s1, t1 = bn_fold(params["bn1_gamma"], params["bn1_beta"],
                     params["bn1_mean"], params["bn1_var"], ow1, l1)
    s2, t2 = bn_fold(params["bn2_gamma"], params["bn2_beta"],
                     params["bn2_mean"], params["bn2_var"], ow2, l2)

    # fc1: permute rows from PyTorch's (c, h, w) flatten order to (h, w, c),
    # chunk per conv2 output row h, and zero-pad hidden 100 -> 128.
    fc1_w = np.asarray(params["fc1_w"], np.float32)            # (Hhid, img_size)
    fc1_b = np.asarray(params["fc1_b"], np.float32)
    fc2_w = np.asarray(params["fc2_w"], np.float32)            # (A, Hhid)
    fc2_b = np.asarray(params["fc2_b"], np.float32)
    hhid = fc1_w.shape[0]
    hpad = _lane_pad(hhid)
    a_dim = fc2_w.shape[0]

    w1p = fc1_w.reshape(hhid, c2ch, oh2, ow2).transpose(2, 3, 1, 0)  # (h,w,c,hid)
    w1p = w1p.reshape(oh2, l2, hhid)
    w1p = np.pad(w1p, ((0, 0), (0, 0), (0, hpad - hhid)))
    b1p = np.pad(fc1_b, (0, hpad - hhid)).reshape(1, hpad)
    w2p = np.pad(fc2_w.T, ((0, hpad - hhid), (0, 0)))          # (hpad, A) f32
    b2p = fc2_b.reshape(1, a_dim)

    return {
        "c1": jnp.asarray(_band_weight(w1, ow1, xl, l1), jnp.bfloat16),
        "s1": s1, "t1": t1,
        "c2": jnp.asarray(_band_weight(w2, ow2, l1, l2), jnp.bfloat16),
        "s2": s2, "t2": t2,
        "wf1": jnp.asarray(w1p, jnp.bfloat16),
        "bf1": jnp.asarray(b1p, jnp.float32),
        "wf2": jnp.asarray(w2p, jnp.float32),
        "bf2": jnp.asarray(b2p, jnp.float32),
        "dims": (H, W, cin, kh, oh1, oh2, a_dim, xl),
    }


# -------------------------------- forward ----------------------------------

def _pick_bt(n):
    # Batch tile: always a multiple of 8 so every in-kernel reshape / row
    # slice is sublane-tile aligned; larger tiles amortize step overhead on
    # big batches (v5e/v6e), and N > bt gives >=2 "parallel" grid steps so
    # v7x's second TensorCore gets work.
    if n <= 64:
        return 8
    if n <= 256:
        return 16
    return 32


def actor_forward(prep, x_nchw):
    H, W, cin, kh, oh1, oh2, a_dim, xl = prep["dims"]
    N = x_nchw.shape[0]
    bt = _pick_bt(N)
    n_pad = pl.cdiv(N, bt) * bt
    grid = (n_pad // bt,)

    # tiny glue: NCHW -> h-major slab (H, N, W*Cin), pad batch and lanes.
    x_l = jnp.transpose(x_nchw, (2, 0, 3, 1)).reshape(H, N, W * cin)
    x_l = jnp.pad(x_l, ((0, 0), (0, n_pad - N), (0, xl - W * cin)))

    kernel = functools.partial(_fused_actor_kernel,
                               bt=bt, kh=kh, oh1=oh1, oh2=oh2)

    in_specs = [
        pl.BlockSpec((H, bt, xl), lambda i: (0, i, 0)),
        pl.BlockSpec(prep["c1"].shape, lambda i: (0, 0)),
        pl.BlockSpec(prep["s1"].shape, lambda i: (0, 0)),
        pl.BlockSpec(prep["t1"].shape, lambda i: (0, 0)),
        pl.BlockSpec(prep["c2"].shape, lambda i: (0, 0)),
        pl.BlockSpec(prep["s2"].shape, lambda i: (0, 0)),
        pl.BlockSpec(prep["t2"].shape, lambda i: (0, 0)),
        pl.BlockSpec(prep["wf1"].shape, lambda i: (0, 0, 0)),
        pl.BlockSpec(prep["bf1"].shape, lambda i: (0, 0)),
        pl.BlockSpec(prep["wf2"].shape, lambda i: (0, 0)),
        pl.BlockSpec(prep["bf2"].shape, lambda i: (0, 0)),
    ]

    out = pl.pallas_call(
        kernel,
        out_shape=jax.ShapeDtypeStruct((n_pad, a_dim), jnp.float32),
        grid=grid,
        in_specs=in_specs,
        out_specs=pl.BlockSpec((bt, a_dim), lambda i: (i, 0)),
        compiler_params=pltpu.CompilerParams(
            dimension_semantics=("parallel",)),
    )(x_l, prep["c1"], prep["s1"], prep["t1"], prep["c2"], prep["s2"],
      prep["t2"], prep["wf1"], prep["bf1"], prep["wf2"], prep["bf2"])
    return out[:N]


# ------------------------- pure-JAX reference (f32) ------------------------

def reference_forward(params, x_nchw, eps=1e-5):
    x = jnp.transpose(x_nchw, (0, 2, 3, 1)).astype(jnp.float32)

    def conv(x, w_oihw):
        return jax.lax.conv_general_dilated(
            x, jnp.transpose(w_oihw, (2, 3, 1, 0)), (1, 1), "VALID",
            dimension_numbers=("NHWC", "HWIO", "NHWC"))

    def bn(x, g, b, m, v):
        return (x - m) * (g / jnp.sqrt(v + eps)) + b

    x = jax.nn.relu(bn(conv(x, params["conv1_w"]), params["bn1_gamma"],
                       params["bn1_beta"], params["bn1_mean"], params["bn1_var"]))
    x = jax.nn.relu(bn(conv(x, params["conv2_w"]), params["bn2_gamma"],
                       params["bn2_beta"], params["bn2_mean"], params["bn2_var"]))
    n = x.shape[0]
    feat = jnp.transpose(x, (0, 3, 1, 2)).reshape(n, -1)   # PyTorch NCHW view
    h = jax.nn.relu(feat @ params["fc1_w"].T + params["fc1_b"])
    logits = h @ params["fc2_w"].T + params["fc2_b"]
    return jax.nn.softmax(logits, axis=1)


# ----------------------------- param construction --------------------------

def init_params(key, x_size, y_size, action_space, stack_size, c1=32, c2=32):
    ks = 3
    img_x = x_size - 2 * (ks - 1)
    img_y = y_size - 2 * (ks - 1)
    img_size = int(c2 * img_x * img_y)
    k = jax.random.split(key, 14)
    params = {
        "conv1_w": 0.1 * jax.random.normal(k[0], (c1, stack_size, ks, ks), jnp.float32),
        "bn1_gamma": 1.0 + 0.05 * jax.random.normal(k[1], (c1,), jnp.float32),
        "bn1_beta": 0.05 * jax.random.normal(k[2], (c1,), jnp.float32),
        "bn1_mean": 0.05 * jax.random.normal(k[3], (c1,), jnp.float32),
        "bn1_var": 1.0 + 0.1 * jax.random.uniform(k[4], (c1,), jnp.float32),
        "conv2_w": 0.05 * jax.random.normal(k[5], (c2, c1, ks, ks), jnp.float32),
        "bn2_gamma": 1.0 + 0.05 * jax.random.normal(k[6], (c2,), jnp.float32),
        "bn2_beta": 0.05 * jax.random.normal(k[7], (c2,), jnp.float32),
        "bn2_mean": 0.05 * jax.random.normal(k[8], (c2,), jnp.float32),
        "bn2_var": 1.0 + 0.1 * jax.random.uniform(k[9], (c2,), jnp.float32),
        "fc1_w": 0.02 * jax.random.normal(k[10], (100, img_size), jnp.float32),
        "fc1_b": 0.01 * jax.random.normal(k[11], (100,), jnp.float32),
        "fc2_w": 0.1 * jax.random.normal(k[12], (action_space, 100), jnp.float32),
        "fc2_b": 0.01 * jax.random.normal(k[13], (action_space,), jnp.float32),
    }
    return params, img_size


# ----------------------------------- main -----------------------------------

if __name__ == "__main__":
    # small shapes: batch=2, stack_size=4, 16x16 frames, 6 actions
    N, stack_size, x_size, y_size, action_space = 2, 4, 16, 16, 6

    root = jax.random.PRNGKey(0)
    pkey, xkey = jax.random.split(root)
    params, img_size = init_params(pkey, x_size, y_size, action_space, stack_size)
    x = jax.random.normal(xkey, (N, stack_size, x_size, y_size), jnp.float32)

    prep = prepare_params(params, x_size, y_size)          # one-time weight prep
    fwd = jax.jit(functools.partial(actor_forward, prep))

    policy = fwd(x)
    jax.block_until_ready(policy)

    assert policy.shape == (N, action_space), policy.shape
    assert bool(jnp.all(jnp.isfinite(policy)))
    # exact softmax normalization -> rows sum to 1 within f32 rounding
    assert bool(jnp.allclose(jnp.sum(policy, axis=1), 1.0, atol=1e-3))

    # compare against a pure-JAX f32 reference (bf16 conv/fc1 matmuls -> loose tol)
    ref = reference_forward(params, x)
    max_err = float(jnp.max(jnp.abs(policy - ref)))
    assert max_err < 5e-2, max_err

    print("KERNEL_OK")
</pallas_src>

<mosaic_0001>
module attributes {stable_mosaic.version = 11 : i64} {
  func.func @_fused_actor_kernel(%arg0: i32, %arg1: memref<16x8x128xf32, #tpu.memory_space<vmem>>, %arg2: memref<384x512xbf16, #tpu.memory_space<vmem>>, %arg3: memref<1x512xf32, #tpu.memory_space<vmem>>, %arg4: memref<1x512xf32, #tpu.memory_space<vmem>>, %arg5: memref<1536x384xbf16, #tpu.memory_space<vmem>>, %arg6: memref<1x384xf32, #tpu.memory_space<vmem>>, %arg7: memref<1x384xf32, #tpu.memory_space<vmem>>, %arg8: memref<12x384x128xbf16, #tpu.memory_space<vmem>>, %arg9: memref<1x128xf32, #tpu.memory_space<vmem>>, %arg10: memref<128x6xf32, #tpu.memory_space<vmem>>, %arg11: memref<1x6xf32, #tpu.memory_space<vmem>>, %arg12: memref<8x6xf32, #tpu.memory_space<vmem>>) attributes {dimension_semantics = [#tpu.dimension_semantics<parallel>], iteration_bounds = array<i64: 1>, scalar_prefetch = 0 : i64, scratch_operands = 0 : i64, tpu.core_type = #tpu.core_type<tc>, window_params = [{transform_indices = @transform_0, window_bounds = array<i64: 16, 8, 128>}, {pipeline_mode = #tpu.pipeline_mode<synchronous>, transform_indices = @transform_1, window_bounds = array<i64: 384, 512>}, {pipeline_mode = #tpu.pipeline_mode<synchronous>, transform_indices = @transform_2, window_bounds = array<i64: 1, 512>}, {pipeline_mode = #tpu.pipeline_mode<synchronous>, transform_indices = @transform_3, window_bounds = array<i64: 1, 512>}, {pipeline_mode = #tpu.pipeline_mode<synchronous>, transform_indices = @transform_4, window_bounds = array<i64: 1536, 384>}, {pipeline_mode = #tpu.pipeline_mode<synchronous>, transform_indices = @transform_5, window_bounds = array<i64: 1, 384>}, {pipeline_mode = #tpu.pipeline_mode<synchronous>, transform_indices = @transform_6, window_bounds = array<i64: 1, 384>}, {pipeline_mode = #tpu.pipeline_mode<synchronous>, transform_indices = @transform_7, window_bounds = array<i64: 12, 384, 128>}, {pipeline_mode = #tpu.pipeline_mode<synchronous>, transform_indices = @transform_8, window_bounds = array<i64: 1, 128>}, {pipeline_mode = #tpu.pipeline_mode<synchronous>, transform_indices = @transform_9, window_bounds = array<i64: 128, 6>}, {pipeline_mode = #tpu.pipeline_mode<synchronous>, transform_indices = @transform_10, window_bounds = array<i64: 1, 6>}, {transform_indices = @transform_11, window_bounds = array<i64: 8, 6>}]} {
    %c0 = arith.constant 0 : index
    %c0_0 = arith.constant 0 : index
    %c0_1 = arith.constant 0 : index
    %0 = vector.load %arg1[%c0, %c0_0, %c0_1] : memref<16x8x128xf32, #tpu.memory_space<vmem>>, vector<16x8x128xf32>
    %1 = vector.extract_strided_slice %0 {offsets = [0, 0, 0], sizes = [14, 8, 128], strides = [1, 1, 1]} : vector<16x8x128xf32> to vector<14x8x128xf32>
    %2 = vector.extract_strided_slice %0 {offsets = [1, 0, 0], sizes = [14, 8, 128], strides = [1, 1, 1]} : vector<16x8x128xf32> to vector<14x8x128xf32>
    %3 = vector.extract_strided_slice %0 {offsets = [2, 0, 0], sizes = [14, 8, 128], strides = [1, 1, 1]} : vector<16x8x128xf32> to vector<14x8x128xf32>
    %4 = tpu.concatenate %1, %2, %3 in 2 : vector<14x8x128xf32>, vector<14x8x128xf32>, vector<14x8x128xf32> -> vector<14x8x384xf32>
    %5 = vector.shape_cast %4 : vector<14x8x384xf32> to vector<112x384xf32>
    %6 = arith.truncf %5 : vector<112x384xf32> to vector<112x384xbf16>
    %c0_2 = arith.constant 0 : index
    %c0_3 = arith.constant 0 : index
    %7 = vector.load %arg2[%c0_2, %c0_3] : memref<384x512xbf16, #tpu.memory_space<vmem>>, vector<384x512xbf16>
    %cst = arith.constant dense<0.000000e+00> : vector<112x512xf32>
    %8 = tpu.matmul %6, %7, %cst {dimension_numbers = #tpu.dot_dimension_numbers<[1], [0], [0], [1], [0, 0, 1, 1], [], []>} : vector<112x384xbf16>, vector<384x512xbf16>, vector<112x512xf32> -> vector<112x512xf32>
    %c0_4 = arith.constant 0 : index
    %c0_5 = arith.constant 0 : index
    %9 = vector.load %arg3[%c0_4, %c0_5] : memref<1x512xf32, #tpu.memory_space<vmem>>, vector<1x512xf32>
    %10 = vector.broadcast %9 : vector<1x512xf32> to vector<112x512xf32>
    %11 = arith.mulf %8, %10 : vector<112x512xf32>
    %c0_6 = arith.constant 0 : index
    %c0_7 = arith.constant 0 : index
    %12 = vector.load %arg4[%c0_6, %c0_7] : memref<1x512xf32, #tpu.memory_space<vmem>>, vector<1x512xf32>
    %13 = vector.broadcast %12 : vector<1x512xf32> to vector<112x512xf32>
    %14 = arith.addf %11, %13 : vector<112x512xf32>
    %cst_8 = arith.constant 0.000000e+00 : f32
    %15 = vector.broadcast %cst_8 : f32 to vector<112x512xf32>
    %16 = arith.maximumf %14, %15 : vector<112x512xf32>
    %17 = vector.shape_cast %16 : vector<112x512xf32> to vector<14x8x512xf32>
    %18 = vector.extract_strided_slice %17 {offsets = [0, 0, 0], sizes = [12, 8, 512], strides = [1, 1, 1]} : vector<14x8x512xf32> to vector<12x8x512xf32>
    %19 = vector.extract_strided_slice %17 {offsets = [1, 0, 0], sizes = [12, 8, 512], strides = [1, 1, 1]} : vector<14x8x512xf32> to vector<12x8x512xf32>
    %20 = vector.extract_strided_slice %17 {offsets = [2, 0, 0], sizes = [12, 8, 512], strides = [1, 1, 1]} : vector<14x8x512xf32> to vector<12x8x512xf32>
    %21 = tpu.concatenate %18, %19, %20 in 2 : vector<12x8x512xf32>, vector<12x8x512xf32>, vector<12x8x512xf32> -> vector<12x8x1536xf32>
    %22 = vector.shape_cast %21 : vector<12x8x1536xf32> to vector<96x1536xf32>
    %23 = arith.truncf %22 : vector<96x1536xf32> to vector<96x1536xbf16>
    %c0_9 = arith.constant 0 : index
    %c0_10 = arith.constant 0 : index
    %24 = vector.load %arg5[%c0_9, %c0_10] : memref<1536x384xbf16, #tpu.memory_space<vmem>>, vector<1536x384xbf16>
    %cst_11 = arith.constant dense<0.000000e+00> : vector<96x384xf32>
    %25 = tpu.matmul %23, %24, %cst_11 {dimension_numbers = #tpu.dot_dimension_numbers<[1], [0], [0], [1], [0, 0, 1, 1], [], []>} : vector<96x1536xbf16>, vector<1536x384xbf16>, vector<96x384xf32> -> vector<96x384xf32>
    %c0_12 = arith.constant 0 : index
    %c0_13 = arith.constant 0 : index
    %26 = vector.load %arg6[%c0_12, %c0_13] : memref<1x384xf32, #tpu.memory_space<vmem>>, vector<1x384xf32>
    %27 = vector.broadcast %26 : vector<1x384xf32> to vector<96x384xf32>
    %28 = arith.mulf %25, %27 : vector<96x384xf32>
    %c0_14 = arith.constant 0 : index
    %c0_15 = arith.constant 0 : index
    %29 = vector.load %arg7[%c0_14, %c0_15] : memref<1x384xf32, #tpu.memory_space<vmem>>, vector<1x384xf32>
    %30 = vector.broadcast %29 : vector<1x384xf32> to vector<96x384xf32>
    %31 = arith.addf %28, %30 : vector<96x384xf32>
    %cst_16 = arith.constant 0.000000e+00 : f32
    %32 = vector.broadcast %cst_16 : f32 to vector<96x384xf32>
    %33 = arith.maximumf %31, %32 : vector<96x384xf32>
    %cst_17 = arith.constant 0.000000e+00 : f32
    %34 = vector.broadcast %cst_17 : f32 to vector<8x128xf32>
    %35 = vector.extract_strided_slice %33 {offsets = [0, 0], sizes = [8, 384], strides = [1, 1]} : vector<96x384xf32> to vector<8x384xf32>
    %36 = arith.truncf %35 : vector<8x384xf32> to vector<8x384xbf16>
    %c0_18 = arith.constant 0 : index
    %c0_19 = arith.constant 0 : index
    %c0_20 = arith.constant 0 : index
    %37 = vector.load %arg8[%c0_18, %c0_19, %c0_20] : memref<12x384x128xbf16, #tpu.memory_space<vmem>>, vector<1x384x128xbf16>
    %38 = vector.shape_cast %37 : vector<1x384x128xbf16> to vector<384x128xbf16>
    %cst_21 = arith.constant dense<0.000000e+00> : vector<8x128xf32>
    %39 = tpu.matmul %36, %38, %cst_21 {dimension_numbers = #tpu.dot_dimension_numbers<[1], [0], [0], [1], [0, 0, 1, 1], [], []>} : vector<8x384xbf16>, vector<384x128xbf16>, vector<8x128xf32> -> vector<8x128xf32>
    %40 = arith.addf %34, %39 : vector<8x128xf32>
    %41 = vector.extract_strided_slice %33 {offsets = [8, 0], sizes = [8, 384], strides = [1, 1]} : vector<96x384xf32> to vector<8x384xf32>
    %42 = arith.truncf %41 : vector<8x384xf32> to vector<8x384xbf16>
    %c1 = arith.constant 1 : index
    %c0_22 = arith.constant 0 : index
    %c0_23 = arith.constant 0 : index
    %43 = vector.load %arg8[%c1, %c0_22, %c0_23] : memref<12x384x128xbf16, #tpu.memory_space<vmem>>, vector<1x384x128xbf16>
    %44 = vector.shape_cast %43 : vector<1x384x128xbf16> to vector<384x128xbf16>
    %cst_24 = arith.constant dense<0.000000e+00> : vector<8x128xf32>
    %45 = tpu.matmul %42, %44, %cst_24 {dimension_numbers = #tpu.dot_dimension_numbers<[1], [0], [0], [1], [0, 0, 1, 1], [], []>} : vector<8x384xbf16>, vector<384x128xbf16>, vector<8x128xf32> -> vector<8x128xf32>
    %46 = arith.addf %40, %45 : vector<8x128xf32>
    %47 = vector.extract_strided_slice %33 {offsets = [16, 0], sizes = [8, 384], strides = [1, 1]} : vector<96x384xf32> to vector<8x384xf32>
    %48 = arith.truncf %47 : vector<8x384xf32> to vector<8x384xbf16>
    %c2 = arith.constant 2 : index
    %c0_25 = arith.constant 0 : index
    %c0_26 = arith.constant 0 : index
    %49 = vector.load %arg8[%c2, %c0_25, %c0_26] : memref<12x384x128xbf16, #tpu.memory_space<vmem>>, vector<1x384x128xbf16>
    %50 = vector.shape_cast %49 : vector<1x384x128xbf16> to vector<384x128xbf16>
    %cst_27 = arith.constant dense<0.000000e+00> : vector<8x128xf32>
    %51 = tpu.matmul %48, %50, %cst_27 {dimension_numbers = #tpu.dot_dimension_numbers<[1], [0], [0], [1], [0, 0, 1, 1], [], []>} : vector<8x384xbf16>, vector<384x128xbf16>, vector<8x128xf32> -> vector<8x128xf32>
    %52 = arith.addf %46, %51 : vector<8x128xf32>
    %53 = vector.extract_strided_slice %33 {offsets = [24, 0], sizes = [8, 384], strides = [1, 1]} : vector<96x384xf32> to vector<8x384xf32>
    %54 = arith.truncf %53 : vector<8x384xf32> to vector<8x384xbf16>
    %c3 = arith.constant 3 : index
    %c0_28 = arith.constant 0 : index
    %c0_29 = arith.constant 0 : index
    %55 = vector.load %arg8[%c3, %c0_28, %c0_29] : memref<12x384x128xbf16, #tpu.memory_space<vmem>>, vector<1x384x128xbf16>
    %56 = vector.shape_cast %55 : vector<1x384x128xbf16> to vector<384x128xbf16>
    %cst_30 = arith.constant dense<0.000000e+00> : vector<8x128xf32>
    %57 = tpu.matmul %54, %56, %cst_30 {dimension_numbers = #tpu.dot_dimension_numbers<[1], [0], [0], [1], [0, 0, 1, 1], [], []>} : vector<8x384xbf16>, vector<384x128xbf16>, vector<8x128xf32> -> vector<8x128xf32>
    %58 = arith.addf %52, %57 : vector<8x128xf32>
    %59 = vector.extract_strided_slice %33 {offsets = [32, 0], sizes = [8, 384], strides = [1, 1]} : vector<96x384xf32> to vector<8x384xf32>
    %60 = arith.truncf %59 : vector<8x384xf32> to vector<8x384xbf16>
    %c4 = arith.constant 4 : index
    %c0_31 = arith.constant 0 : index
    %c0_32 = arith.constant 0 : index
    %61 = vector.load %arg8[%c4, %c0_31, %c0_32] : memref<12x384x128xbf16, #tpu.memory_space<vmem>>, vector<1x384x128xbf16>
    %62 = vector.shape_cast %61 : vector<1x384x128xbf16> to vector<384x128xbf16>
    %cst_33 = arith.constant dense<0.000000e+00> : vector<8x128xf32>
    %63 = tpu.matmul %60, %62, %cst_33 {dimension_numbers = #tpu.dot_dimension_numbers<[1], [0], [0], [1], [0, 0, 1, 1], [], []>} : vector<8x384xbf16>, vector<384x128xbf16>, vector<8x128xf32> -> vector<8x128xf32>
    %64 = arith.addf %58, %63 : vector<8x128xf32>
    %65 = vector.extract_strided_slice %33 {offsets = [40, 0], sizes = [8, 384], strides = [1, 1]} : vector<96x384xf32> to vector<8x384xf32>
    %66 = arith.truncf %65 : vector<8x384xf32> to vector<8x384xbf16>
    %c5 = arith.constant 5 : index
    %c0_34 = arith.constant 0 : index
    %c0_35 = arith.constant 0 : index
    %67 = vector.load %arg8[%c5, %c0_34, %c0_35] : memref<12x384x128xbf16, #tpu.memory_space<vmem>>, vector<1x384x128xbf16>
    %68 = vector.shape_cast %67 : vector<1x384x128xbf16> to vector<384x128xbf16>
    %cst_36 = arith.constant dense<0.000000e+00> : vector<8x128xf32>
    %69 = tpu.matmul %66, %68, %cst_36 {dimension_numbers = #tpu.dot_dimension_numbers<[1], [0], [0], [1], [0, 0, 1, 1], [], []>} : vector<8x384xbf16>, vector<384x128xbf16>, vector<8x128xf32> -> vector<8x128xf32>
    %70 = arith.addf %64, %69 : vector<8x128xf32>
    %71 = vector.extract_strided_slice %33 {offsets = [48, 0], sizes = [8, 384], strides = [1, 1]} : vector<96x384xf32> to vector<8x384xf32>
    %72 = arith.truncf %71 : vector<8x384xf32> to vector<8x384xbf16>
    %c6 = arith.constant 6 : index
    %c0_37 = arith.constant 0 : index
    %c0_38 = arith.constant 0 : index
    %73 = vector.load %arg8[%c6, %c0_37, %c0_38] : memref<12x384x128xbf16, #tpu.memory_space<vmem>>, vector<1x384x128xbf16>
    %74 = vector.shape_cast %73 : vector<1x384x128xbf16> to vector<384x128xbf16>
    %cst_39 = arith.constant dense<0.000000e+00> : vector<8x128xf32>
    %75 = tpu.matmul %72, %74, %cst_39 {dimension_numbers = #tpu.dot_dimension_numbers<[1], [0], [0], [1], [0, 0, 1, 1], [], []>} : vector<8x384xbf16>, vector<384x128xbf16>, vector<8x128xf32> -> vector<8x128xf32>
    %76 = arith.addf %70, %75 : vector<8x128xf32>
    %77 = vector.extract_strided_slice %33 {offsets = [56, 0], sizes = [8, 384], strides = [1, 1]} : vector<96x384xf32> to vector<8x384xf32>
    %78 = arith.truncf %77 : vector<8x384xf32> to vector<8x384xbf16>
    %c7 = arith.constant 7 : index
    %c0_40 = arith.constant 0 : index
    %c0_41 = arith.constant 0 : index
    %79 = vector.load %arg8[%c7, %c0_40, %c0_41] : memref<12x384x128xbf16, #tpu.memory_space<vmem>>, vector<1x384x128xbf16>
    %80 = vector.shape_cast %79 : vector<1x384x128xbf16> to vector<384x128xbf16>
    %cst_42 = arith.constant dense<0.000000e+00> : vector<8x128xf32>
    %81 = tpu.matmul %78, %80, %cst_42 {dimension_numbers = #tpu.dot_dimension_numbers<[1], [0], [0], [1], [0, 0, 1, 1], [], []>} : vector<8x384xbf16>, vector<384x128xbf16>, vector<8x128xf32> -> vector<8x128xf32>
    %82 = arith.addf %76, %81 : vector<8x128xf32>
    %83 = vector.extract_strided_slice %33 {offsets = [64, 0], sizes = [8, 384], strides = [1, 1]} : vector<96x384xf32> to vector<8x384xf32>
    %84 = arith.truncf %83 : vector<8x384xf32> to vector<8x384xbf16>
    %c8 = arith.constant 8 : index
    %c0_43 = arith.constant 0 : index
    %c0_44 = arith.constant 0 : index
    %85 = vector.load %arg8[%c8, %c0_43, %c0_44] : memref<12x384x128xbf16, #tpu.memory_space<vmem>>, vector<1x384x128xbf16>
    %86 = vector.shape_cast %85 : vector<1x384x128xbf16> to vector<384x128xbf16>
    %cst_45 = arith.constant dense<0.000000e+00> : vector<8x128xf32>
    %87 = tpu.matmul %84, %86, %cst_45 {dimension_numbers = #tpu.dot_dimension_numbers<[1], [0], [0], [1], [0, 0, 1, 1], [], []>} : vector<8x384xbf16>, vector<384x128xbf16>, vector<8x128xf32> -> vector<8x128xf32>
    %88 = arith.addf %82, %87 : vector<8x128xf32>
    %89 = vector.extract_strided_slice %33 {offsets = [72, 0], sizes = [8, 384], strides = [1, 1]} : vector<96x384xf32> to vector<8x384xf32>
    %90 = arith.truncf %89 : vector<8x384xf32> to vector<8x384xbf16>
    %c9 = arith.constant 9 : index
    %c0_46 = arith.constant 0 : index
    %c0_47 = arith.constant 0 : index
    %91 = vector.load %arg8[%c9, %c0_46, %c0_47] : memref<12x384x128xbf16, #tpu.memory_space<vmem>>, vector<1x384x128xbf16>
    %92 = vector.shape_cast %91 : vector<1x384x128xbf16> to vector<384x128xbf16>
    %cst_48 = arith.constant dense<0.000000e+00> : vector<8x128xf32>
    %93 = tpu.matmul %90, %92, %cst_48 {dimension_numbers = #tpu.dot_dimension_numbers<[1], [0], [0], [1], [0, 0, 1, 1], [], []>} : vector<8x384xbf16>, vector<384x128xbf16>, vector<8x128xf32> -> vector<8x128xf32>
    %94 = arith.addf %88, %93 : vector<8x128xf32>
    %95 = vector.extract_strided_slice %33 {offsets = [80, 0], sizes = [8, 384], strides = [1, 1]} : vector<96x384xf32> to vector<8x384xf32>
    %96 = arith.truncf %95 : vector<8x384xf32> to vector<8x384xbf16>
    %c10 = arith.constant 10 : index
    %c0_49 = arith.constant 0 : index
    %c0_50 = arith.constant 0 : index
    %97 = vector.load %arg8[%c10, %c0_49, %c0_50] : memref<12x384x128xbf16, #tpu.memory_space<vmem>>, vector<1x384x128xbf16>
    %98 = vector.shape_cast %97 : vector<1x384x128xbf16> to vector<384x128xbf16>
    %cst_51 = arith.constant dense<0.000000e+00> : vector<8x128xf32>
    %99 = tpu.matmul %96, %98, %cst_51 {dimension_numbers = #tpu.dot_dimension_numbers<[1], [0], [0], [1], [0, 0, 1, 1], [], []>} : vector<8x384xbf16>, vector<384x128xbf16>, vector<8x128xf32> -> vector<8x128xf32>
    %100 = arith.addf %94, %99 : vector<8x128xf32>
    %101 = vector.extract_strided_slice %33 {offsets = [88, 0], sizes = [8, 384], strides = [1, 1]} : vector<96x384xf32> to vector<8x384xf32>
    %102 = arith.truncf %101 : vector<8x384xf32> to vector<8x384xbf16>
    %c11 = arith.constant 11 : index
    %c0_52 = arith.constant 0 : index
    %c0_53 = arith.constant 0 : index
    %103 = vector.load %arg8[%c11, %c0_52, %c0_53] : memref<12x384x128xbf16, #tpu.memory_space<vmem>>, vector<1x384x128xbf16>
    %104 = vector.shape_cast %103 : vector<1x384x128xbf16> to vector<384x128xbf16>
    %cst_54 = arith.constant dense<0.000000e+00> : vector<8x128xf32>
    %105 = tpu.matmul %102, %104, %cst_54 {dimension_numbers = #tpu.dot_dimension_numbers<[1], [0], [0], [1], [0, 0, 1, 1], [], []>} : vector<8x384xbf16>, vector<384x128xbf16>, vector<8x128xf32> -> vector<8x128xf32>
    %106 = arith.addf %100, %105 : vector<8x128xf32>
    %c0_55 = arith.constant 0 : index
    %c0_56 = arith.constant 0 : index
    %107 = vector.load %arg9[%c0_55, %c0_56] : memref<1x128xf32, #tpu.memory_space<vmem>>, vector<1x128xf32>
    %108 = vector.broadcast %107 : vector<1x128xf32> to vector<8x128xf32>
    %109 = arith.addf %106, %108 : vector<8x128xf32>
    %cst_57 = arith.constant 0.000000e+00 : f32
    %110 = vector.broadcast %cst_57 : f32 to vector<8x128xf32>
    %111 = arith.maximumf %109, %110 : vector<8x128xf32>
    %c0_58 = arith.constant 0 : index
    %c0_59 = arith.constant 0 : index
    %112 = vector.load %arg10[%c0_58, %c0_59] : memref<128x6xf32, #tpu.memory_space<vmem>>, vector<128x6xf32>
    %cst_60 = arith.constant dense<0.000000e+00> : vector<8x6xf32>
    %113 = tpu.matmul %111, %112, %cst_60 {dimension_numbers = #tpu.dot_dimension_numbers<[1], [0], [0], [1], [0, 0, 1, 1], [], []>} : vector<8x128xf32>, vector<128x6xf32>, vector<8x6xf32> -> vector<8x6xf32>
    %c0_61 = arith.constant 0 : index
    %c0_62 = arith.constant 0 : index
    %114 = vector.load %arg11[%c0_61, %c0_62] : memref<1x6xf32, #tpu.memory_space<vmem>>, vector<1x6xf32>
    %115 = vector.broadcast %114 : vector<1x6xf32> to vector<8x6xf32>
    %116 = arith.addf %113, %115 : vector<8x6xf32>
    %cst_63 = arith.constant dense<0xFF800000> : vector<8xf32>
    %117 = vector.multi_reduction <maximumf>, %116, %cst_63 [1] : vector<8x6xf32> to vector<8xf32>
    %118 = vector.shape_cast %117 : vector<8xf32> to vector<8x1xf32>
    %119 = vector.broadcast %118 : vector<8x1xf32> to vector<8x6xf32>
    %120 = arith.subf %116, %119 : vector<8x6xf32>
    %121 = math.exp %120 : vector<8x6xf32>
    %cst_64 = arith.constant dense<0.000000e+00> : vector<8xf32>
    %122 = vector.multi_reduction <add>, %121, %cst_64 [1] : vector<8x6xf32> to vector<8xf32>
    %123 = vector.shape_cast %122 : vector<8xf32> to vector<8x1xf32>
    %124 = vector.broadcast %123 : vector<8x1xf32> to vector<8x6xf32>
    %125 = arith.divf %121, %124 : vector<8x6xf32>
    %c0_65 = arith.constant 0 : index
    %c0_66 = arith.constant 0 : index
    %126 = vector.load %arg12[%c0_65, %c0_66] : memref<8x6xf32, #tpu.memory_space<vmem>>, vector<8x6xf32>
    tpu.vector_store %arg12[%c0_65, %c0_66], %125 {strides = array<i32>} : memref<8x6xf32, #tpu.memory_space<vmem>>, vector<8x6xf32>,
    return
  }
  func.func @transform_0(%arg0: i32) -> (i32, i32, i32) {
    %c0_i32 = arith.constant 0 : i32
    %c0_i32_0 = arith.constant 0 : i32
    %c0_i32_1 = arith.constant 0 : i32
    return %c0_i32, %arg0, %c0_i32_0 : i32, i32, i32
  }
  func.func @transform_1(%arg0: i32) -> (i32, i32) {
    %c0_i32 = arith.constant 0 : i32
    %c0_i32_0 = arith.constant 0 : i32
    %c0_i32_1 = arith.constant 0 : i32
    return %c0_i32, %c0_i32_0 : i32, i32
  }
  func.func @transform_2(%arg0: i32) -> (i32, i32) {
    %c0_i32 = arith.constant 0 : i32
    %c0_i32_0 = arith.constant 0 : i32
    %c0_i32_1 = arith.constant 0 : i32
    return %c0_i32, %c0_i32_0 : i32, i32
  }
  func.func @transform_3(%arg0: i32) -> (i32, i32) {
    %c0_i32 = arith.constant 0 : i32
    %c0_i32_0 = arith.constant 0 : i32
    %c0_i32_1 = arith.constant 0 : i32
    return %c0_i32, %c0_i32_0 : i32, i32
  }
  func.func @transform_4(%arg0: i32) -> (i32, i32) {
    %c0_i32 = arith.constant 0 : i32
    %c0_i32_0 = arith.constant 0 : i32
    %c0_i32_1 = arith.constant 0 : i32
    return %c0_i32, %c0_i32_0 : i32, i32
  }
  func.func @transform_5(%arg0: i32) -> (i32, i32) {
    %c0_i32 = arith.constant 0 : i32
    %c0_i32_0 = arith.constant 0 : i32
    %c0_i32_1 = arith.constant 0 : i32
    return %c0_i32, %c0_i32_0 : i32, i32
  }
  func.func @transform_6(%arg0: i32) -> (i32, i32) {
    %c0_i32 = arith.constant 0 : i32
    %c0_i32_0 = arith.constant 0 : i32
    %c0_i32_1 = arith.constant 0 : i32
    return %c0_i32, %c0_i32_0 : i32, i32
  }
  func.func @transform_7(%arg0: i32) -> (i32, i32, i32) {
    %c0_i32 = arith.constant 0 : i32
    %c0_i32_0 = arith.constant 0 : i32
    %c0_i32_1 = arith.constant 0 : i32
    %c0_i32_2 = arith.constant 0 : i32
    return %c0_i32, %c0_i32_0, %c0_i32_1 : i32, i32, i32
  }
  func.func @transform_8(%arg0: i32) -> (i32, i32) {
    %c0_i32 = arith.constant 0 : i32
    %c0_i32_0 = arith.constant 0 : i32
    %c0_i32_1 = arith.constant 0 : i32
    return %c0_i32, %c0_i32_0 : i32, i32
  }
  func.func @transform_9(%arg0: i32) -> (i32, i32) {
    %c0_i32 = arith.constant 0 : i32
    %c0_i32_0 = arith.constant 0 : i32
    %c0_i32_1 = arith.constant 0 : i32
    return %c0_i32, %c0_i32_0 : i32, i32
  }
  func.func @transform_10(%arg0: i32) -> (i32, i32) {
    %c0_i32 = arith.constant 0 : i32
    %c0_i32_0 = arith.constant 0 : i32
    %c0_i32_1 = arith.constant 0 : i32
    return %c0_i32, %c0_i32_0 : i32, i32
  }
  func.func @transform_11(%arg0: i32) -> (i32, i32) {
    %c0_i32 = arith.constant 0 : i32
    %c0_i32_0 = arith.constant 0 : i32
    return %arg0, %c0_i32 : i32, i32
  }
}

</mosaic_0001>

<bundles_post_ra>
// kernel: actor_forward.1
= control target key start
LH: loop header
LB: loop body
LE: loop exit
PB: predicated region body
PF: predicated region fallthrough
CT: control target
= control target key end

     0   :  { %vm11072_vm0 = vmmov 0   ;;  %vm7851_vm1 = vcmask 48128   ;;  %s14286_s1 = inlined_call_operand.vmem [shape: bf16[384,512], index: 1, kind: input, shape index: {}]   ;;  %s14287_s0 = inlined_call_operand.vmem [shape: f32[16,8,128], index: 0, kind: input, shape index: {}]   ;;  %s14288_s4 = inlined_call_operand.vmem [shape: bf16[1536,384], index: 4, kind: input, shape index: {}]   ;;  %s14289_s2 = inlined_call_operand.vmem [shape: f32[1,512], index: 2, kind: input, shape index: {}]   ;;  %s14290_s3 = inlined_call_operand.vmem [shape: f32[1,512], index: 3, kind: input, shape index: {}]   ;;  %s14291_s7 = inlined_call_operand.vmem [shape: bf16[12,384,128], index: 7, kind: input, shape index: {}]   ;;  %s14292_s5 = inlined_call_operand.vmem [shape: f32[1,384], index: 5, kind: input, shape index: {}]   ;;  %s14293_s6 = inlined_call_operand.vmem [shape: f32[1,384], index: 6, kind: input, shape index: {}]   ;;  %s14294_s9 = inlined_call_operand.vmem [shape: f32[128,6], index: 9, kind: input, shape index: {}]   ;;  %s14295_s8 = inlined_call_operand.vmem [shape: f32[1,128], index: 8, kind: input, shape index: {}]   ;;  %s14296_s10 = inlined_call_operand.vmem [shape: f32[1,6], index: 10, kind: input, shape index: {}]   ;;  %s14297_s11 = inlined_call_operand.vmem [shape: f32[8,6], index: 11, kind: output, shape index: {}]  }
   0x1   :  { %v10250_v0 = vld [vmem:[%s14286_s1 + $0x4] ss:$16 sps:$4 sm:$0xff]   ;;  %v10252_v1 = vld [vmem:[%s14286_s1 + $0xc] ss:$16 sps:$4 sm:$0xff]   ;;  %v10254_v2 = vld [vmem:[%s14286_s1] ss:$16 sps:$4 sm:$0xff]  }
   0x2   :  { %646 = vmatprep.subr.bf16.mxu0 %v10250_v0  ;;  %v10255_v3 = vld [vmem:[%s14286_s1 + $0x8] ss:$16 sps:$4 sm:$0xff]   ;;  %852 = vmatprep.subr.bf16.mxu1 %v10252_v1  ;;  %v10256_v4 = vld [vmem:[%s14286_s1 + $0x24] ss:$16 sps:$4 sm:$0xff]   ;;  %v10258_v5 = vld [vmem:[%s14286_s1 + $0x2c] ss:$16 sps:$4 sm:$0xff]  }
   0x3   :  { %647 = vmatpush1.bf16.msra.mxu0 %v10254_v2  ;;  %853 = vmatpush1.bf16.msra.mxu1 %v10255_v3  ;;  %v10260_v6 = vld [vmem:[%s14286_s1 + $0x20] ss:$16 sps:$4 sm:$0xff]   ;;  %v10261_v7 = vld [vmem:[%s14286_s1 + $0x28] ss:$16 sps:$4 sm:$0xff]   ;;  %v10262_v8 = vld [vmem:[%s14286_s1 + $0x44] ss:$16 sps:$4 sm:$0xff]  }
   0x4   :  { %648 = vmatprep.subr.bf16.mxu0 %v10256_v4  ;;  %854 = vmatprep.subr.bf16.mxu1 %v10258_v5  ;;  %v10264_v9 = vld [vmem:[%s14286_s1 + $0x4c] ss:$16 sps:$4 sm:$0xff]   ;;  %v10266_v10 = vld [vmem:[%s14286_s1 + $0x40] ss:$16 sps:$4 sm:$0xff]   ;;  %v10267_v11 = vld [vmem:[%s14286_s1 + $0x48] ss:$16 sps:$4 sm:$0xff]  }
   0x5   :  { %v10268_v12 = vld [vmem:[%s14286_s1 + $0x64] ss:$16 sps:$4 sm:$0xff]   ;;  %v10270_v13 = vld [vmem:[%s14286_s1 + $0x6c] ss:$16 sps:$4 sm:$0xff]   ;;  %v10272_v14 = vld [vmem:[%s14286_s1 + $0x60] ss:$16 sps:$4 sm:$0xff]  }
   0x6   :  { %v10273_v15 = vld [vmem:[%s14286_s1 + $0x68] ss:$16 sps:$4 sm:$0xff]   ;;  %v10274_v16 = vld [vmem:[%s14286_s1 + $0x84] ss:$16 sps:$4 sm:$0xff]   ;;  %v10276_v17 = vld [vmem:[%s14286_s1 + $0x8c] ss:$16 sps:$4 sm:$0xff]  }
   0x7   :  { %649 = vmatpush1.bf16.msra.mxu0 %v10260_v6  ;;  %855 = vmatpush1.bf16.msra.mxu1 %v10261_v7  ;;  %v10278_v18 = vld [vmem:[%s14286_s1 + $0x80] ss:$16 sps:$4 sm:$0xff]   ;;  %v10279_v19 = vld [vmem:[%s14286_s1 + $0x88] ss:$16 sps:$4 sm:$0xff]   ;;  %v10280_v20 = vld [vmem:[%s14286_s1 + $0xa4] ss:$16 sps:$4 sm:$0xff]  }
   0x8   :  { %650 = vmatprep.subr.bf16.mxu0 %v10262_v8  ;;  %856 = vmatprep.subr.bf16.mxu1 %v10264_v9  ;;  %v10282_v21 = vld [vmem:[%s14286_s1 + $0xac] ss:$16 sps:$4 sm:$0xff]   ;;  %v10284_v22 = vld [vmem:[%s14286_s1 + $0xa0] ss:$16 sps:$4 sm:$0xff]   ;;  %v10285_v23 = vld [vmem:[%s14286_s1 + $0xa8] ss:$16 sps:$4 sm:$0xff]  }
   0x9   :  { %v10286_v24 = vld [vmem:[%s14286_s1 + $0xc4] ss:$16 sps:$4 sm:$0xff]   ;;  %v10288_v25 = vld [vmem:[%s14286_s1 + $0xcc] ss:$16 sps:$4 sm:$0xff]   ;;  %v10290_v26 = vld [vmem:[%s14286_s1 + $0xc0] ss:$16 sps:$4 sm:$0xff]  }
   0xa   :  { %v10291_v27 = vld [vmem:[%s14286_s1 + $0xc8] ss:$16 sps:$4 sm:$0xff]   ;;  %v10292_v28 = vld [vmem:[%s14286_s1 + $0xe4] ss:$16 sps:$4 sm:$0xff]   ;;  %v10294_v29 = vld [vmem:[%s14286_s1 + $0xec] ss:$16 sps:$4 sm:$0xff]  }
   0xb   :  { %651 = vmatpush1.bf16.msra.mxu0 %v10266_v10  ;;  %857 = vmatpush1.bf16.msra.mxu1 %v10267_v11  ;;  %v10296_v30 = vld [vmem:[%s14286_s1 + $0xe0] ss:$16 sps:$4 sm:$0xff]   ;;  %v10297_v31 = vld [vmem:[%s14286_s1 + $0xe8] ss:$16 sps:$4 sm:$0xff]   ;;  %v10298_v32 = vld [vmem:[%s14286_s1 + $0x104] ss:$16 sps:$4 sm:$0xff]  }
   0xc   :  { %652 = vmatprep.subr.bf16.mxu0 %v10268_v12  ;;  %858 = vmatprep.subr.bf16.mxu1 %v10270_v13  ;;  %v10300_v33 = vld [vmem:[%s14286_s1 + $0x10c] ss:$16 sps:$4 sm:$0xff]   ;;  %v10302_v34 = vld [vmem:[%s14286_s1 + $0x100] ss:$16 sps:$4 sm:$0xff]   ;;  %v10303_v35 = vld [vmem:[%s14286_s1 + $0x108] ss:$16 sps:$4 sm:$0xff]  }
   0xd   :  { %v10304_v36 = vld [vmem:[%s14286_s1 + $0x124] ss:$16 sps:$4 sm:$0xff]   ;;  %v10306_v37 = vld [vmem:[%s14286_s1 + $0x12c] ss:$16 sps:$4 sm:$0xff]   ;;  %v10308_v38 = vld [vmem:[%s14286_s1 + $0x120] ss:$16 sps:$4 sm:$0xff]  }
   0xe   :  { %v10309_v39 = vld [vmem:[%s14286_s1 + $0x128] ss:$16 sps:$4 sm:$0xff]   ;;  %v10310_v40 = vld [vmem:[%s14286_s1 + $0x144] ss:$16 sps:$4 sm:$0xff]   ;;  %v10312_v41 = vld [vmem:[%s14286_s1 + $0x14c] ss:$16 sps:$4 sm:$0xff]  }
   0xf   :  { %653 = vmatpush1.bf16.msra.mxu0 %v10272_v14  ;;  %859 = vmatpush1.bf16.msra.mxu1 %v10273_v15  ;;  %v10314_v42 = vld [vmem:[%s14286_s1 + $0x140] ss:$16 sps:$4 sm:$0xff]   ;;  %v10315_v43 = vld [vmem:[%s14286_s1 + $0x148] ss:$16 sps:$4 sm:$0xff]   ;;  %v10316_v44 = vld [vmem:[%s14286_s1 + $0x164] ss:$16 sps:$4 sm:$0xff]  }
  0x10   :  { %654 = vmatprep.subr.bf16.mxu0 %v10274_v16  ;;  %860 = vmatprep.subr.bf16.mxu1 %v10276_v17  ;;  %v10318_v45 = vld [vmem:[%s14286_s1 + $0x16c] ss:$16 sps:$4 sm:$0xff]   ;;  %v10320_v46 = vld [vmem:[%s14286_s1 + $0x160] ss:$16 sps:$4 sm:$0xff]   ;;  %v10321_v49 = vld [vmem:[%s14286_s1 + $0x168] ss:$16 sps:$4 sm:$0xff]  }
  0x11   :  { %v40_v47 = vld [vmem:[%s14287_s0 + $0x8] sm:$0xff]  ;;  %v11281_v48 = vld [vmem:[%s14287_s0 + $0x10] sm:$0xff]  ;;  %v39_v3 = vld [vmem:[%s14287_s0] sm:$0xff] }
  0x12   :  { %v56_v50 = vpack.c.bf16 %v11281_v48, %v40_v47  ;;  %v10322_v51 = vld [vmem:[%s14286_s1 + $0x184] ss:$16 sps:$4 sm:$0xff]   ;;  %v10324_v52 = vld [vmem:[%s14286_s1 + $0x18c] ss:$16 sps:$4 sm:$0xff]   ;;  %v10326_v53 = vld [vmem:[%s14286_s1 + $0x180] ss:$16 sps:$4 sm:$0xff]   ;;  %v55_v8 = vpack.c.bf16 %v40_v47, %v39_v3 }
  0x13   :  { %655 = vmatpush1.bf16.msra.mxu0 %v10278_v18  ;;  %861 = vmatpush1.bf16.msra.mxu1 %v10279_v19  ;;  %v10327_v54 = vld [vmem:[%s14286_s1 + $0x188] ss:$16 sps:$4 sm:$0xff]   ;;  %v10328_v55 = vld [vmem:[%s14286_s1 + $0x1a4] ss:$16 sps:$4 sm:$0xff]   ;;  %v10330_v56 = vld [vmem:[%s14286_s1 + $0x1ac] ss:$16 sps:$4 sm:$0xff]  }
  0x14   :  { %656 = vmatprep.subr.bf16.mxu0 %v10280_v20  ;;  %862 = vmatprep.subr.bf16.mxu1 %v10282_v21  ;;  %v10332_v57 = vld [vmem:[%s14286_s1 + $0x1a0] ss:$16 sps:$4 sm:$0xff]   ;;  %v10333_v58 = vld [vmem:[%s14286_s1 + $0x1a8] ss:$16 sps:$4 sm:$0xff]   ;;  %v10334_v59 = vld [vmem:[%s14286_s1 + $0x1c4] ss:$16 sps:$4 sm:$0xff]  }
  0x15   :  { %678 = vmatprep.mubr.bf16.mxu0 %v56_v50  ;;  %884 = vmatprep.mubr.bf16.mxu1 %v56_v50  ;;  %v10336_v60 = vld [vmem:[%s14286_s1 + $0x1cc] ss:$16 sps:$4 sm:$0xff]   ;;  %v10338_v61 = vld [vmem:[%s14286_s1 + $0x1c0] ss:$16 sps:$4 sm:$0xff]   ;;  %v10339_v62 = vld [vmem:[%s14286_s1 + $0x1c8] ss:$16 sps:$4 sm:$0xff]  }
  0x16   :  { %v10340_v63 = vld [vmem:[%s14286_s1 + $0x1e4] ss:$16 sps:$4 sm:$0xff]   ;;  %v10342_v0 = vld [vmem:[%s14286_s1 + $0x1ec] ss:$16 sps:$4 sm:$0xff]   ;;  %v10344_v1 = vld [vmem:[%s14286_s1 + $0x1e0] ss:$16 sps:$4 sm:$0xff]  }
  0x17   :  { %657 = vmatpush1.bf16.msra.mxu0 %v10284_v22  ;;  %863 = vmatpush1.bf16.msra.mxu1 %v10285_v23  ;;  %v10345_v2 = vld [vmem:[%s14286_s1 + $0x1e8] ss:$16 sps:$4 sm:$0xff]   ;;  %v10348_v5 = vld [vmem:[%s14286_s1 + $0x204] ss:$16 sps:$4 sm:$0xff]   ;;  %v10360_v7 = vld [vmem:[%s14286_s1 + $0x20c] ss:$16 sps:$4 sm:$0xff]  }
  0x18   :  { %658 = vmatprep.subr.bf16.mxu0 %v10286_v24  ;;  %864 = vmatprep.subr.bf16.mxu1 %v10288_v25  ;;  %v42_v4 = vld [vmem:[%s14287_s0 + $0x18] sm:$0xff]  ;;  %v43_v6 = vld [vmem:[%s14287_s0 + $0x20] sm:$0xff]  ;;  %v44_v16 = vld [vmem:[%s14287_s0 + $0x28] sm:$0xff] }
  0x19   :  { %v10346_v9 = vld [vmem:[%s14286_s1 + $0x200] ss:$16 sps:$4 sm:$0xff]   ;;  %v58_v10 = vpack.c.bf16 %v43_v6, %v42_v4  ;;  %v10351_v11 = vld [vmem:[%s14286_s1 + $0x224] ss:$16 sps:$4 sm:$0xff]   ;;  %v10358_v12 = vld [vmem:[%s14286_s1 + $0x208] ss:$16 sps:$4 sm:$0xff]   ;;  %v11378_v19 = vpack.c.bf16 %v42_v4, %v11281_v48 }
  0x1a   :  { %v10349_v13 = vld [vmem:[%s14286_s1 + $0x220] ss:$16 sps:$4 sm:$0xff]   ;;  %v10366_v14 = vld [vmem:[%s14286_s1 + $0x22c] ss:$16 sps:$4 sm:$0xff]   ;;  %v10354_v15 = vld [vmem:[%s14286_s1 + $0x244] ss:$16 sps:$4 sm:$0xff]  }
  0x1b   :  { %659 = vmatpush1.bf16.msra.mxu0 %v10290_v26  ;;  %865 = vmatpush1.bf16.msra.mxu1 %v10291_v27  ;;  %v45_v17 = vld [vmem:[%s14287_s0 + $0x30] sm:$0xff]  ;;  %v10364_v18 = vld [vmem:[%s14286_s1 + $0x228] ss:$16 sps:$4 sm:$0xff]   ;;  %v10369_v24 = vld [vmem:[%s14286_s1 + $0x24c] ss:$16 sps:$4 sm:$0xff]  }
  0x1c   :  { %660 = vmatprep.subr.bf16.mxu0 %v10292_v28  ;;  %866 = vmatprep.subr.bf16.mxu1 %v10294_v29  ;;  %v10352_v20 = vld [vmem:[%s14286_s1 + $0x240] ss:$16 sps:$4 sm:$0xff]   ;;  %v60_v21 = vpack.c.bf16 %v45_v17, %v44_v16  ;;  %v10357_v22 = vld [vmem:[%s14286_s1 + $0x264] ss:$16 sps:$4 sm:$0xff]   ;;  %v46_v25 = vld [vmem:[%s14287_s0 + $0x38] sm:$0xff] }
  0x1d   :  { %v10355_v23 = vld [vmem:[%s14286_s1 + $0x260] ss:$16 sps:$4 sm:$0xff]   ;;  %v10367_v27 = vld [vmem:[%s14286_s1 + $0x248] ss:$16 sps:$4 sm:$0xff]   ;;  %v10375_v28 = vld [vmem:[%s14286_s1 + $0x26c] ss:$16 sps:$4 sm:$0xff]  }
  0x1e   :  { %v47_v26 = vld [vmem:[%s14287_s0 + $0x40] sm:$0xff]  ;;  %v50_v48 = vld [vmem:[%s14287_s0 + $0x58] sm:$0xff] }
  0x1f   :  { %661 = vmatpush1.bf16.msra.mxu0 %v10296_v30  ;;  %867 = vmatpush1.bf16.msra.mxu1 %v10297_v31  ;;  %v10363_v29 = vld [vmem:[%s14286_s1 + $0x284] ss:$16 sps:$4 sm:$0xff]   ;;  %v11409_v30 = vpack.c.bf16 %v44_v16, %v43_v6  ;;  %v10361_v31 = vld [vmem:[%s14286_s1 + $0x280] ss:$16 sps:$4 sm:$0xff]   ;;  %v10385_v50 = vld [vmem:[%s14286_s1 + $0x2c8] ss:$16 sps:$4 sm:$0xff]  }
  0x20   :  { %662 = vmatprep.subr.bf16.mxu0 %v10298_v32  ;;  %868 = vmatprep.subr.bf16.mxu1 %v10300_v33  ;;  %v62_v32 = vpack.c.bf16 %v47_v26, %v46_v25  ;;  %v10372_v33 = vld [vmem:[%s14286_s1 + $0x2a4] ss:$16 sps:$4 sm:$0xff]   ;;  %v10426_v3 = vld [vmem:[%s14288_s4 + $0xe0] ss:$12 sps:$4 sm:$0xff]  }
  0x21   :  { %v10390_v47 = vld [vmem:[%s14286_s1 + $0x2e4] ss:$16 sps:$4 sm:$0xff]   ;;  %v10406_v16 = vld [vmem:[%s14288_s4 + $0x60] ss:$12 sps:$4 sm:$0xff]  }
  0x22   :  { %v10397_v4 = vld [vmem:[%s14288_s4 + $0x18] ss:$12 sps:$4 sm:$0xff]   ;;  %v10402_v6 = vld [vmem:[%s14288_s4 + $0x34] ss:$12 sps:$4 sm:$0xff]  }
  0x23   :  { %663 = vmatpush1.bf16.msra.mxu0 %v10302_v34  ;;  %869 = vmatpush1.bf16.msra.mxu1 %v10303_v35  ;;  %v10373_v34 = vld [vmem:[%s14286_s1 + $0x268] ss:$16 sps:$4 sm:$0xff]   ;;  %v10378_v35 = vld [vmem:[%s14286_s1 + $0x28c] ss:$16 sps:$4 sm:$0xff]  }
  0x24   :  { %664 = vmatprep.subr.bf16.mxu0 %v10304_v36  ;;  %870 = vmatprep.subr.bf16.mxu1 %v10306_v37  ;;  %v48_v36 = vld [vmem:[%s14287_s0 + $0x48] sm:$0xff]  ;;  %v49_v37 = vld [vmem:[%s14287_s0 + $0x50] sm:$0xff] }
  0x27   :  { %665 = vmatpush1.bf16.msra.mxu0 %v10308_v38  ;;  %871 = vmatpush1.bf16.msra.mxu1 %v10309_v39  ;;  %v10370_v38 = vld [vmem:[%s14286_s1 + $0x2a0] ss:$16 sps:$4 sm:$0xff]   ;;  %v10376_v39 = vld [vmem:[%s14286_s1 + $0x288] ss:$16 sps:$4 sm:$0xff]  }
  0x28   :  { %666 = vmatprep.subr.bf16.mxu0 %v10310_v40  ;;  %872 = vmatprep.subr.bf16.mxu1 %v10312_v41  ;;  %v10381_v40 = vld [vmem:[%s14286_s1 + $0x2c4] ss:$16 sps:$4 sm:$0xff]   ;;  %v10384_v41 = vld [vmem:[%s14286_s1 + $0x2ac] ss:$16 sps:$4 sm:$0xff]  }
  0x2b   :  { %667 = vmatpush1.bf16.msra.mxu0 %v10314_v42  ;;  %873 = vmatpush1.bf16.msra.mxu1 %v10315_v43  ;;  %v11443_v42 = vpack.c.bf16 %v46_v25, %v45_v17  ;;  %v10379_v43 = vld [vmem:[%s14286_s1 + $0x2c0] ss:$16 sps:$4 sm:$0xff]   ;;  %v10442_v17 = vld [vmem:[%s14288_s4 + $0x68] ss:$12 sps:$4 sm:$0xff]  }
  0x2c   :  { %668 = vmatprep.subr.bf16.mxu0 %v10316_v44  ;;  %874 = vmatprep.subr.bf16.mxu1 %v10318_v45  ;;  %v64_v44 = vpack.c.bf16 %v49_v37, %v48_v36  ;;  %v10382_v45 = vld [vmem:[%s14286_s1 + $0x2a8] ss:$16 sps:$4 sm:$0xff]   ;;  %v10418_v25 = vld [vmem:[%s14288_s4 + $0xc0] ss:$12 sps:$4 sm:$0xff]  }
  0x2f   :  { %669 = vmatpush1.bf16.msra.mxu0 %v10320_v46  ;;  %875 = vmatpush1.bf16.msra.mxu1 %v10321_v49  ;;  %v10387_v46 = vld [vmem:[%s14286_s1 + $0x2cc] ss:$16 sps:$4 sm:$0xff]   ;;  %v51_v49 = vld [vmem:[%s14287_s0 + $0x60] sm:$0xff] }
  0x30   :  { %670 = vmatprep.subr.bf16.mxu0 %v10322_v51  ;;  %876 = vmatprep.subr.bf16.mxu1 %v10324_v52  ;;  %v10388_v51 = vld [vmem:[%s14286_s1 + $0x2e0] ss:$16 sps:$4 sm:$0xff]   ;;  %v10393_v52 = vld [vmem:[%s14286_s1 + $0x2ec] ss:$16 sps:$4 sm:$0xff]  }
  0x33   :  { %671 = vmatpush1.bf16.msra.mxu0 %v10326_v53  ;;  %877 = vmatpush1.bf16.msra.mxu1 %v10327_v54  ;;  %v10396_v53 = vld [vmem:[%s14288_s4 + $0x4] ss:$12 sps:$4 sm:$0xff]   ;;  %v11477_v54 = vpack.c.bf16 %v48_v36, %v47_v26  ;;  %v10425_v26 = vld [vmem:[%s14288_s4 + $0xdc] ss:$12 sps:$4 sm:$0xff]  }
  0x34   :  { %672 = vmatprep.subr.bf16.mxu0 %v10328_v55  ;;  %878 = vmatprep.subr.bf16.mxu1 %v10330_v56  ;;  %v10391_v55 = vld [vmem:[%s14286_s1 + $0x2e8] ss:$16 sps:$4 sm:$0xff]   ;;  %v66_v56 = vpack.c.bf16 %v51_v49, %v50_v48 }
  0x35   :  { %v10445_v36 = vld [vmem:[%s14288_s4 + $0x13c] ss:$12 sps:$4 sm:$0xff]  }
  0x37   :  { %673 = vmatpush1.bf16.msra.mxu0 %v10332_v57  ;;  %879 = vmatpush1.bf16.msra.mxu1 %v10333_v58  ;;  %v10421_v57 = vld [vmem:[%s14288_s4 + $0xc8] ss:$12 sps:$4 sm:$0xff]  }
  0x38   :  { %674 = vmatprep.subr.bf16.mxu0 %v10334_v59  ;;  %880 = vmatprep.subr.bf16.mxu1 %v10336_v60  ;;  %v52_v58 = vld [vmem:[%s14287_s0 + $0x68] sm:$0xff]  ;;  %v11493_v59 = vld [vmem:[%s14287_s0 + $0x70] sm:$0xff]  ;;  %v11495_v60 = vpack.c.bf16 %v50_v48, %v49_v37  ;;  %v10443_v37 = vld [vmem:[%s14288_s4 + $0x138] ss:$12 sps:$4 sm:$0xff]  }
  0x39   :  { %v10460_v48 = vld [vmem:[%s14288_s4 + $0x184] ss:$12 sps:$4 sm:$0xff]  }
  0x3b   :  { %675 = vmatpush1.bf16.msra.mxu0 %v10338_v61  ;;  %881 = vmatpush1.bf16.msra.mxu1 %v10339_v62  ;;  %v68_v61 = vpack.c.bf16 %v11493_v59, %v52_v58  ;;  %v11500_v62 = vpack.c.bf16 %v52_v58, %v51_v49  ;;  %v10473_v49 = vld [vmem:[%s14288_s4 + $0x248] ss:$12 sps:$4 sm:$0xff]  }
  0x3c   :  { %676 = vmatprep.subr.bf16.mxu0 %v10340_v63  ;;  %882 = vmatprep.subr.bf16.mxu1 %v10342_v0  ;;  %v11070_v63 = vmov 0   ;;  %v10394_v0 = vld [vmem:[%s14288_s4] ss:$12 sps:$4 sm:$0xff]  }
  0x3f   :  { %677 = vmatpush1.bf16.msra.mxu0 %v10344_v1  ;;  %883 = vmatpush1.bf16.msra.mxu1 %v10345_v2  ;;  %v10422_v1 = vld [vmem:[%s14288_s4 + $0x8] ss:$12 sps:$4 sm:$0xff]  }
  0x40   :  { %749 = vmatprep.subr.bf16.mxu0 %v10348_v5  ;;  %955 = vmatprep.subr.bf16.mxu1 %v10360_v7  ;;  %v10399_v2 = vld [vmem:[%s14288_s4 + $0x1c] ss:$12 sps:$4 sm:$0xff]   ;;  %v10427_v5 = vld [vmem:[%s14288_s4 + $0x20] ss:$12 sps:$4 sm:$0xff]   ;;  %v10431_v7 = vld [vmem:[%s14288_s4 + $0xf8] ss:$12 sps:$4 sm:$0xff]  }
  0x42   :  { %679 = vmatmul.mubr.bf16.vlgmr.msra.gmra.mrb[0].mxu0 %v55_v8  ;;  %885 = vmatmul.mubr.bf16.vlgmr.msra.gmra.mrb[0].mxu1 %v55_v8  ;;  %v10400_v8 = vld [vmem:[%s14288_s4 + $0x30] ss:$12 sps:$4 sm:$0xff]  }
  0x43   :  { %750 = vmatpush1.bf16.msra.mxu0 %v10346_v9  ;;  %688 = vmatprep.mubr.bf16.mxu0 %v58_v10  ;;  %v10432_v9 = vld [vmem:[%s14288_s4 + $0x38] ss:$12 sps:$4 sm:$0xff]  }
  0x44   :  { %751 = vmatprep.subr.bf16.mxu0 %v10351_v11  ;;  %894 = vmatprep.mubr.bf16.mxu1 %v58_v10  ;;  %v10405_v10 = vld [vmem:[%s14288_s4 + $0x4c] ss:$12 sps:$4 sm:$0xff]   ;;  %v10436_v11 = vld [vmem:[%s14288_s4 + $0x110] ss:$12 sps:$4 sm:$0xff]  }
  0x45   :  { %956 = vmatpush1.bf16.msra.mxu1 %v10358_v12  ;;  %v10403_v12 = vld [vmem:[%s14288_s4 + $0x48] ss:$12 sps:$4 sm:$0xff]  }
  0x46   :  { %957 = vmatprep.subr.bf16.mxu1 %v10366_v14  ;;  %v10408_v14 = vld [vmem:[%s14288_s4 + $0x64] ss:$12 sps:$4 sm:$0xff]  }
  0x47   :  { %752 = vmatpush1.bf16.msra.mxu0 %v10349_v13  ;;  %v10437_v13 = vld [vmem:[%s14288_s4 + $0x50] ss:$12 sps:$4 sm:$0xff]  }
  0x48   :  { %753 = vmatprep.subr.bf16.mxu0 %v10354_v15  ;;  %v10441_v15 = vld [vmem:[%s14288_s4 + $0x128] ss:$12 sps:$4 sm:$0xff]  }
  0x49   :  { %958 = vmatpush1.bf16.msra.mxu1 %v10364_v18  ;;  %v10411_v18 = vld [vmem:[%s14288_s4 + $0x7c] ss:$12 sps:$4 sm:$0xff]  }
  0x4a   :  { %689 = vmatmul.mubr.bf16.gmra.mrb[4].mxu0 %v11378_v19  ;;  %895 = vmatmul.mubr.bf16.gmra.mrb[4].mxu1 %v11378_v19 }
  0x4b   :  { %698 = vmatprep.mubr.bf16.mxu0 %v60_v21  ;;  %754 = vmatpush1.bf16.msra.mxu0 %v10352_v20  ;;  %v10414_v20 = vld [vmem:[%s14288_s4 + $0x94] ss:$12 sps:$4 sm:$0xff]  }
  0x4c   :  { %904 = vmatprep.mubr.bf16.mxu1 %v60_v21  ;;  %755 = vmatprep.subr.bf16.mxu0 %v10357_v22  ;;  %v10412_v21 = vld [vmem:[%s14288_s4 + $0x90] ss:$12 sps:$4 sm:$0xff]   ;;  %v10417_v22 = vld [vmem:[%s14288_s4 + $0xac] ss:$12 sps:$4 sm:$0xff]  }
  0x4d   :  { %959 = vmatprep.subr.bf16.mxu1 %v10369_v24  ;;  %v10420_v24 = vld [vmem:[%s14288_s4 + $0xc4] ss:$12 sps:$4 sm:$0xff]  }
  0x4e   :  { %960 = vmatpush1.bf16.msra.mxu1 %v10367_v27  ;;  %v10423_v27 = vld [vmem:[%s14288_s4 + $0xd8] ss:$12 sps:$4 sm:$0xff]  }
  0x4f   :  { %756 = vmatpush1.bf16.msra.mxu0 %v10355_v23  ;;  %961 = vmatprep.subr.bf16.mxu1 %v10375_v28  ;;  %v10415_v23 = vld [vmem:[%s14288_s4 + $0xa8] ss:$12 sps:$4 sm:$0xff]  }
  0x50   :  { %757 = vmatprep.subr.bf16.mxu0 %v10363_v29  ;;  %v10430_v28 = vld [vmem:[%s14288_s4 + $0xf4] ss:$12 sps:$4 sm:$0xff]   ;;  %v10428_v29 = vld [vmem:[%s14288_s4 + $0xf0] ss:$12 sps:$4 sm:$0xff]  }
  0x52   :  { %699 = vmatmul.mubr.bf16.gmra.mrb[8].mxu0 %v11409_v30  ;;  %905 = vmatmul.mubr.bf16.gmra.mrb[8].mxu1 %v11409_v30 }
  0x53   :  { %708 = vmatprep.mubr.bf16.mxu0 %v62_v32  ;;  %914 = vmatprep.mubr.bf16.mxu1 %v62_v32  ;;  %v10433_v32 = vld [vmem:[%s14288_s4 + $0x108] ss:$12 sps:$4 sm:$0xff]  }
  0x54   :  { %758 = vmatpush1.bf16.msra.mxu0 %v10361_v31  ;;  %962 = vmatpush1.bf16.msra.mxu1 %v10373_v34  ;;  %v54_v31 = vld [vmem:[%s14287_s0 + $0x78] sm:$0xff] }
  0x55   :  { %759 = vmatprep.subr.bf16.mxu0 %v10372_v33  ;;  %963 = vmatprep.subr.bf16.mxu1 %v10378_v35  ;;  %v10440_v33 = vld [vmem:[%s14288_s4 + $0x124] ss:$12 sps:$4 sm:$0xff]   ;;  %v69_v34 = vpack.c.bf16 %v54_v31, %v11493_v59  ;;  %v10438_v35 = vld [vmem:[%s14288_s4 + $0x120] ss:$12 sps:$4 sm:$0xff]  }
  0x58   :  { %760 = vmatpush1.bf16.msra.mxu0 %v10370_v38  ;;  %964 = vmatpush1.bf16.msra.mxu1 %v10376_v39  ;;  %v10446_v38 = vld [vmem:[%s14288_s4 + $0x140] ss:$12 sps:$4 sm:$0xff]  }
  0x59   :  { %761 = vmatprep.subr.bf16.mxu0 %v10381_v40  ;;  %965 = vmatprep.subr.bf16.mxu1 %v10384_v41  ;;  %v10447_v39 = vld [vmem:[%s14288_s4 + $0x80] ss:$12 sps:$4 sm:$0xff]   ;;  %v10448_v41 = vld [vmem:[%s14288_s4 + $0x150] ss:$12 sps:$4 sm:$0xff]  }
  0x5a   :  { %709 = vmatmul.mubr.bf16.gmra.mrb[12].mxu0 %v11443_v42  ;;  %915 = vmatmul.mubr.bf16.gmra.mrb[12].mxu1 %v11443_v42  ;;  %v10450_v40 = vld [vmem:[%s14288_s4 + $0x154] ss:$12 sps:$4 sm:$0xff]  }
  0x5b   :  { %718 = vmatprep.mubr.bf16.mxu0 %v64_v44  ;;  %924 = vmatprep.mubr.bf16.mxu1 %v64_v44  ;;  %v10455_v44 = vld [vmem:[%s14288_s4 + $0x16c] ss:$12 sps:$4 sm:$0xff]  }
  0x5c   :  { %762 = vmatpush1.bf16.msra.mxu0 %v10379_v43  ;;  %966 = vmatpush1.bf16.msra.mxu1 %v10382_v45  ;;  %v10452_v43 = vld [vmem:[%s14288_s4 + $0x98] ss:$12 sps:$4 sm:$0xff]   ;;  %v10453_v45 = vld [vmem:[%s14288_s4 + $0x168] ss:$12 sps:$4 sm:$0xff]  }
  0x5d   :  { %967 = vmatprep.subr.bf16.mxu1 %v10387_v46  ;;  %763 = vmatprep.subr.bf16.mxu0 %v10390_v47  ;;  %v10456_v46 = vld [vmem:[%s14288_s4 + $0x170] ss:$12 sps:$4 sm:$0xff]  }
  0x5e   :  { %v10457_v47 = vld [vmem:[%s14288_s4 + $0xb0] ss:$12 sps:$4 sm:$0xff]  }
  0x60   :  { %968 = vmatpush1.bf16.msra.mxu1 %v10385_v50  ;;  %764 = vmatpush1.bf16.msra.mxu0 %v10388_v51  ;;  %v1060_v50 = vlaneseq }
  0x61   :  { %969 = vmatprep.subr.bf16.mxu1 %v10393_v52  ;;  %3242 = vmatprep.subr.bf16.mxu0 %v10396_v53 }
  0x62   :  { %719 = vmatmul.mubr.bf16.gmra.mrb[16].mxu0 %v11477_v54  ;;  %925 = vmatmul.mubr.bf16.gmra.mrb[16].mxu1 %v11477_v54  ;;  %v1061_v51 = vshrl.u32 %v1060_v50, 7 }
  0x63   :  { %728 = vmatprep.mubr.bf16.mxu0 %v66_v56  ;;  %934 = vmatprep.mubr.bf16.mxu1 %v66_v56 }
  0x64   :  { %970 = vmatpush1.bf16.msra.mxu1 %v10391_v55  ;;  %v11678_v52 = vsub.s32 0, %v1061_v51  ;;  %v11680_v53 = vsub.s32 2, %v1061_v51  ;;  %v11685_v55 = vsub.s32 1, %v1061_v51  ;;  %v1074_v56 = vsub.s32 3, %v1061_v51 }
  0x65   :  { %9070 = vmatprep.subr.bf16.mxu1 %v10421_v57  ;;  %v1136_v57 = vld [vmem:[%s14290_s3] sm:$0xf] }
  0x66   :  { %14320 = vst [vmem:[#allocation2_spill] sm:$0xff] %v11678_v52  ;;  %14321 = vst [vmem:[#allocation3_spill] sm:$0xff] %v11680_v53 }
  0x67   :  { %14322 = vst [vmem:[#allocation4_spill] sm:$0xff] %v11685_v55 }
  0x6a   :  { %729 = vmatmul.mubr.bf16.gmra.mrb[20].mxu0 %v11495_v60  ;;  %935 = vmatmul.mubr.bf16.gmra.mrb[20].mxu1 %v11495_v60 }
  0x6b   :  { %738 = vmatprep.mubr.bf16.mxu0 %v68_v61  ;;  %944 = vmatprep.mubr.bf16.mxu1 %v68_v61 }
  0x72   :  { %739 = vmatmul.mubr.bf16.gmra.mrb[24].mxu0 %v11500_v62  ;;  %945 = vmatmul.mubr.bf16.gmra.mrb[24].mxu1 %v11500_v62 }
  0x73   :  { %781 = vmatprep.mubr.bf16.mxu0 %v11070_v63  ;;  %987 = vmatprep.mubr.bf16.mxu1 %v11070_v63 }
  0x7a   :  { %782 = vmatmul.mubr.bf16.vlgmr.msra.gmra.mrb[0].mxu0 %v11378_v19  ;;  %988 = vmatmul.mubr.bf16.vlgmr.msra.gmra.mrb[0].mxu1 %v11378_v19  ;;  %v10409_v19 = vld [vmem:[%s14288_s4 + $0x78] ss:$12 sps:$4 sm:$0xff]  }
  0x7b   :  { %791 = vmatprep.mubr.bf16.mxu0 %v11070_v63  ;;  %997 = vmatprep.mubr.bf16.mxu1 %v11070_v63 }
  0x7c   :  { %3243 = vmatpush1.bf16.msra.mxu0 %v10394_v0  ;;  %9071 = vmatpush3.bf16.msra.mxu1 %v10422_v1  ;;  %v11708_v1 = vrot.slane %v1136_v57, %v11685_v55 }
  0x7d   :  { %3244 = vmatprep.subr.bf16.mxu0 %v10399_v2  ;;  %9072 = vmatprep.subr.bf16.mxu1 %v10426_v3  ;;  %v11710_v3 = vrot.slane %v1136_v57, %v1074_v56 }
  0x80   :  { %3245 = vmatpush1.bf16.msra.mxu0 %v10397_v4  ;;  %9073 = vmatpush3.bf16.msra.mxu1 %v10427_v5 }
  0x81   :  { %3246 = vmatprep.subr.bf16.mxu0 %v10402_v6  ;;  %9074 = vmatprep.subr.bf16.mxu1 %v10431_v7 }
  0x82   :  { %792 = vmatmul.mubr.bf16.gmra.mrb[4].mxu0 %v11409_v30  ;;  %998 = vmatmul.mubr.bf16.gmra.mrb[4].mxu1 %v11409_v30  ;;  %v10435_v30 = vld [vmem:[%s14288_s4 + $0x10c] ss:$12 sps:$4 sm:$0xff]  }
  0x83   :  { %801 = vmatprep.mubr.bf16.mxu0 %v11070_v63  ;;  %1007 = vmatprep.mubr.bf16.mxu1 %v11070_v63 }
  0x84   :  { %3247 = vmatpush1.bf16.msra.mxu0 %v10400_v8  ;;  %9075 = vmatpush3.bf16.msra.mxu1 %v10432_v9 }
  0x85   :  { %3248 = vmatprep.subr.bf16.mxu0 %v10405_v10  ;;  %9076 = vmatprep.subr.bf16.mxu1 %v10436_v11 }
  0x88   :  { %3249 = vmatpush1.bf16.msra.mxu0 %v10403_v12  ;;  %9077 = vmatpush3.bf16.msra.mxu1 %v10437_v13 }
  0x89   :  { %3250 = vmatprep.subr.bf16.mxu0 %v10408_v14  ;;  %9078 = vmatprep.subr.bf16.mxu1 %v10441_v15 }
  0x8a   :  { %802 = vmatmul.mubr.bf16.gmra.mrb[8].mxu0 %v11443_v42  ;;  %1008 = vmatmul.mubr.bf16.gmra.mrb[8].mxu1 %v11443_v42  ;;  %v10451_v42 = vld [vmem:[%s14288_s4 + $0x158] ss:$12 sps:$4 sm:$0xff]  }
  0x8b   :  { %811 = vmatprep.mubr.bf16.mxu0 %v11070_v63  ;;  %1017 = vmatprep.mubr.bf16.mxu1 %v11070_v63 }
  0x8c   :  { %3251 = vmatpush1.bf16.msra.mxu0 %v10406_v16  ;;  %9079 = vmatpush3.bf16.msra.mxu1 %v10442_v17 }
  0x8d   :  { %3252 = vmatprep.subr.bf16.mxu0 %v10411_v18  ;;  %9080 = vmatprep.subr.bf16.mxu1 %v10446_v38 }
  0x90   :  { %3253 = vmatpush1.bf16.msra.mxu0 %v10409_v19  ;;  %9081 = vmatpush3.bf16.msra.mxu1 %v10447_v39 }
  0x91   :  { %3254 = vmatprep.subr.bf16.mxu0 %v10414_v20  ;;  %9082 = vmatprep.subr.bf16.mxu1 %v10451_v42 }
  0x92   :  { %812 = vmatmul.mubr.bf16.gmra.mrb[12].mxu0 %v11477_v54  ;;  %1018 = vmatmul.mubr.bf16.gmra.mrb[12].mxu1 %v11477_v54  ;;  %v1058_v54 = vld [vmem:[%s14289_s2] sm:$0xf] }
  0x93   :  { %821 = vmatprep.mubr.bf16.mxu0 %v11070_v63  ;;  %1027 = vmatprep.mubr.bf16.mxu1 %v11070_v63  ;;  %v11691_v58 = vrot.slane %v1058_v54, %v11678_v52  ;;  %v11694_v59 = vrot.slane %v1058_v54, %v11680_v53  ;;  %v11699_v61 = vrot.slane %v1058_v54, %v1074_v56 }
  0x94   :  { %3255 = vmatpush1.bf16.msra.mxu0 %v10412_v21  ;;  %9083 = vmatpush3.bf16.msra.mxu1 %v10452_v43 }
  0x95   :  { %3256 = vmatprep.subr.bf16.mxu0 %v10417_v22  ;;  %9084 = vmatprep.subr.bf16.mxu1 %v10456_v46  ;;  %v10458_v46 = vld [vmem:[%s14288_s4 + $0x180] ss:$12 sps:$4 sm:$0xff]  }
  0x98   :  { %3257 = vmatpush1.bf16.msra.mxu0 %v10415_v23  ;;  %9085 = vmatpush3.bf16.msra.mxu1 %v10457_v47 }
  0x99   :  { %3258 = vmatprep.subr.bf16.mxu0 %v10420_v24  ;;  %9122 = vmatprep.subr.bf16.mxu1 %v10473_v49 }
  0x9a   :  { %822 = vmatmul.mubr.bf16.gmra.mrb[16].mxu0 %v11495_v60  ;;  %1028 = vmatmul.mubr.bf16.gmra.mrb[16].mxu1 %v11495_v60  ;;  %v11697_v60 = vrot.slane %v1058_v54, %v11685_v55 }
  0x9b   :  { %831 = vmatprep.mubr.bf16.mxu0 %v11070_v63  ;;  %1037 = vmatprep.mubr.bf16.mxu1 %v11070_v63 }
  0x9c   :  { %3259 = vmatpush1.bf16.msra.mxu0 %v10418_v25 }
  0x9d   :  { %3260 = vmatprep.subr.bf16.mxu0 %v10425_v26 }
  0xa0   :  { %3261 = vmatpush1.bf16.msra.mxu0 %v10423_v27 }
  0xa1   :  { %3262 = vmatprep.subr.bf16.mxu0 %v10430_v28 }
  0xa2   :  { %832 = vmatmul.mubr.bf16.gmra.mrb[20].mxu0 %v11500_v62  ;;  %1038 = vmatmul.mubr.bf16.gmra.mrb[20].mxu1 %v11500_v62  ;;  %v11702_v62 = vrot.slane %v1136_v57, %v11678_v52 }
  0xa3   :  { %841 = vmatprep.mubr.bf16.mxu0 %v11070_v63  ;;  %1047 = vmatprep.mubr.bf16.mxu1 %v11070_v63  ;;  %v11705_v63 = vrot.slane %v1136_v57, %v11680_v53 }
  0xa4   :  { %3263 = vmatpush1.bf16.msra.mxu0 %v10428_v29 }
  0xa5   :  { %3264 = vmatprep.subr.bf16.mxu0 %v10435_v30 }
  0xa8   :  { %3265 = vmatpush1.bf16.msra.mxu0 %v10433_v32 }
  0xa9   :  { %3266 = vmatprep.subr.bf16.mxu0 %v10440_v33 }
  0xaa   :  { %842 = vmatmul.mubr.bf16.gmra.mrb[24].mxu0 %v69_v34  ;;  %1048 = vmatmul.mubr.bf16.gmra.mrb[24].mxu1 %v69_v34 }
  0xac   :  { %3267 = vmatpush1.bf16.msra.mxu0 %v10438_v35 }
  0xad   :  { %3268 = vmatprep.subr.bf16.mxu0 %v10445_v36 }
  0xb0   :  { %3269 = vmatpush1.bf16.msra.mxu0 %v10443_v37 }
  0xb1   :  { %3270 = vmatprep.subr.bf16.mxu0 %v10450_v40 }
  0xb4   :  { %3271 = vmatpush1.bf16.msra.mxu0 %v10448_v41 }
  0xb5   :  { %3272 = vmatprep.subr.bf16.mxu0 %v10455_v44 }
  0xb8   :  { %3273 = vmatpush1.bf16.msra.mxu0 %v10453_v45 }
  0xb9   :  { %3335 = vmatprep.subr.bf16.mxu0 %v10460_v48  ;;  %v10474_v48 = vld [vmem:[%s14288_s4 + $0x188] ss:$12 sps:$4 sm:$0xff]  }
 0x14d   :  { %v783_v0 = vpop.f32.mrb[0].mxu0  ;;  %v989_v2 = vpop.f32.mrb[0].mxu1 }
 0x14e   :  { %v1080_v4 = vmul.f32 %v11691_v58, %v783_v0  ;;  %v785_v5 = vpop.f32.mrb[1].mxu0  ;;  %v1082_v6 = vmul.f32 %v11694_v59, %v989_v2  ;;  %v991_v7 = vpop.f32.mrb[1].mxu1  ;;  %v10463_v2 = vld [vmem:[%s14288_s4 + $0x19c] ss:$12 sps:$4 sm:$0xff]  }
 0x14f   :  { %v1081_v8 = vmul.f32 %v11697_v60, %v785_v5  ;;  %v787_v9 = vpop.f32.mrb[2].mxu0  ;;  %v1083_v10 = vmul.f32 %v11699_v61, %v991_v7  ;;  %v993_v11 = vpop.f32.mrb[2].mxu1 }
 0x150   :  { %v1158_v12 = vadd.f32 %v11702_v62, %v1080_v4  ;;  %v1084_v13 = vmul.f32 %v11691_v58, %v787_v9  ;;  %v789_v14 = vpop.f32.mrb[3].mxu0  ;;  %v1160_v15 = vadd.f32 %v11705_v63, %v1082_v6  ;;  %v1086_v16 = vmul.f32 %v11694_v59, %v993_v11  ;;  %v995_v17 = vpop.f32.mrb[3].mxu1  ;;  %v10478_v4 = vld [vmem:[%s14288_s4 + $0x260] ss:$12 sps:$4 sm:$0xff]  }
 0x151   :  { %v1159_v18 = vadd.f32 %v11708_v1, %v1081_v8  ;;  %v1085_v19 = vmul.f32 %v11697_v60, %v789_v14  ;;  %v1161_v20 = vadd.f32 %v11710_v3, %v1083_v10  ;;  %v1087_v21 = vmul.f32 %v11699_v61, %v995_v17  ;;  %v10479_v17 = vld [vmem:[%s14288_s4 + $0x1a0] ss:$12 sps:$4 sm:$0xff]  }
 0x152   :  { %v1162_v22 = vadd.f32 %v11702_v62, %v1084_v13  ;;  %v1216_v23 = vmax.f32 %v1160_v15, 0.0  ;;  %v1164_v24 = vadd.f32 %v11705_v63, %v1086_v16  ;;  %v1214_v28 = vmax.f32 %v1158_v12, 0.0  ;;  %v10461_v16 = vld [vmem:[%s14288_s4 + $0x198] ss:$12 sps:$4 sm:$0xff]  }
 0x153   :  { %v11727_v25 = vadd.f32 %v11708_v1, %v1085_v19  ;;  %v1217_v26 = vmax.f32 %v1161_v20, 0.0  ;;  %v11730_v27 = vadd.f32 %v11710_v3, %v1087_v21  ;;  %v1215_v31 = vmax.f32 %v1159_v18, 0.0 }
 0x154   :  { %v1218_v29 = vmax.f32 %v1162_v22, 0.0  ;;  %v1220_v30 = vmax.f32 %v1164_v24, 0.0  ;;  %v10466_v22 = vld [vmem:[%s14288_s4 + $0x1b4] ss:$12 sps:$4 sm:$0xff]  }
 0x155   :  { %v1219_v32 = vmax.f32 %v11727_v25, 0.0  ;;  %v1221_v33 = vmax.f32 %v11730_v27, 0.0  ;;  %v793_v34 = vpop.f32.mrb[4].mxu0  ;;  %v999_v35 = vpop.f32.mrb[4].mxu1 }
 0x156   :  { %v1270_v36 = vpack.c.bf16 %v1218_v29, %v1214_v28  ;;  %v11734_v37 = vpack.c.bf16 %v1220_v30, %v1216_v23  ;;  %v1088_v38 = vmul.f32 %v11691_v58, %v793_v34  ;;  %v1090_v39 = vmul.f32 %v11694_v59, %v999_v35  ;;  %v795_v40 = vpop.f32.mrb[5].mxu0  ;;  %v1001_v41 = vpop.f32.mrb[5].mxu1 }
 0x157   :  { %v1089_v42 = vmul.f32 %v11697_v60, %v795_v40  ;;  %v1091_v43 = vmul.f32 %v11699_v61, %v1001_v41  ;;  %v797_v44 = vpop.f32.mrb[6].mxu0  ;;  %v1271_v45 = vpack.c.bf16 %v1219_v32, %v1215_v31  ;;  %v1003_v47 = vpop.f32.mrb[6].mxu1  ;;  %v11746_v49 = vpack.c.bf16 %v1221_v33, %v1217_v26  ;;  %v10464_v41 = vld [vmem:[%s14288_s4 + $0x1b0] ss:$12 sps:$4 sm:$0xff]  }
 0x158   :  { %v1166_v50 = vadd.f32 %v11702_v62, %v1088_v38  ;;  %v1168_v51 = vadd.f32 %v11705_v63, %v1090_v39  ;;  %v1092_v54 = vmul.f32 %v11691_v58, %v797_v44  ;;  %v799_v56 = vpop.f32.mrb[7].mxu0  ;;  %v1094_v57 = vmul.f32 %v11694_v59, %v1003_v47  ;;  %v1005_v0 = vpop.f32.mrb[7].mxu1 }
 0x159   :  { %v1167_v5 = vadd.f32 %v11708_v1, %v1089_v42  ;;  %v1169_v6 = vadd.f32 %v11710_v3, %v1091_v43  ;;  %v1093_v7 = vmul.f32 %v11697_v60, %v799_v56  ;;  %3274 = vmatprep.mubr.bf16.mxu0 %v1271_v45  ;;  %3832 = vmatprep.mubr.bf16.mxu1 %v1271_v45 }
 0x15a   :  { %v1222_v8 = vmax.f32 %v1166_v50, 0.0  ;;  %v1224_v9 = vmax.f32 %v1168_v51, 0.0  ;;  %v11762_v10 = vadd.f32 %v11702_v62, %v1092_v54  ;;  %3275 = vmatmul.mubr.bf16.vlgmr.msra.gmra.mrb[28].mxu0 %v1270_v36  ;;  %3833 = vmatmul.mubr.bf16.vlgmr.msra.gmra.mrb[28].mxu1 %v1270_v36  ;;  %v11765_v11 = vadd.f32 %v11705_v63, %v1094_v57  ;;  %v10469_v50 = vld [vmem:[%s14288_s4 + $0x1cc] ss:$12 sps:$4 sm:$0xff]  }
 0x15b   :  { %v1223_v12 = vmax.f32 %v1167_v5, 0.0  ;;  %v1225_v13 = vmax.f32 %v1169_v6, 0.0  ;;  %v11768_v14 = vadd.f32 %v11708_v1, %v1093_v7  ;;  %3336 = vmatpush1.bf16.msra.mxu0 %v10458_v46  ;;  %v1095_v15 = vmul.f32 %v11699_v61, %v1005_v0  ;;  %9123 = vmatpush3.bf16.msra.mxu1 %v10474_v48  ;;  %v10483_v51 = vld [vmem:[%s14288_s4 + $0x278] ss:$12 sps:$4 sm:$0xff]  }
 0x15c   :  { %v11777_v18 = vpack.c.bf16 %v1222_v8, %v1218_v29  ;;  %v11779_v19 = vpack.c.bf16 %v1224_v9, %v1220_v30  ;;  %v1226_v20 = vmax.f32 %v11762_v10, 0.0  ;;  %v1228_v21 = vmax.f32 %v11765_v11, 0.0  ;;  %3337 = vmatprep.subr.bf16.mxu0 %v10463_v2  ;;  %9124 = vmatprep.subr.bf16.mxu1 %v10478_v4  ;;  %v10484_v2 = vld [vmem:[%s14288_s4 + $0x1b8] ss:$12 sps:$4 sm:$0xff]  }
 0x15d   :  { %v1227_v23 = vmax.f32 %v11768_v14, 0.0  ;;  %v11788_v24 = vadd.f32 %v11710_v3, %v1095_v15  ;;  %v803_v25 = vpop.f32.mrb[8].mxu0  ;;  %v1009_v26 = vpop.f32.mrb[8].mxu1  ;;  %v11790_v27 = vpack.c.bf16 %v1223_v12, %v1219_v32  ;;  %v11792_v28 = vpack.c.bf16 %v1225_v13, %v1221_v33 }
 0x15e   :  { %v11794_v29 = vpack.c.bf16 %v1226_v20, %v1222_v8  ;;  %v11796_v30 = vpack.c.bf16 %v1228_v21, %v1224_v9  ;;  %v1096_v31 = vmul.f32 %v11691_v58, %v803_v25  ;;  %v1098_v34 = vmul.f32 %v11694_v59, %v1009_v26  ;;  %v805_v35 = vpop.f32.mrb[9].mxu0  ;;  %v1011_v36 = vpop.f32.mrb[9].mxu1  ;;  %v10488_v8 = vld [vmem:[%s14288_s4 + $0x290] ss:$12 sps:$4 sm:$0xff]  }
 0x15f   :  { %v11800_v38 = vpack.c.bf16 %v1227_v23, %v1223_v12  ;;  %v1229_v39 = vmax.f32 %v11788_v24, 0.0  ;;  %v1097_v40 = vmul.f32 %v11697_v60, %v805_v35  ;;  %v1099_v32 = vmul.f32 %v11699_v61, %v1011_v36  ;;  %3338 = vmatpush1.bf16.msra.mxu0 %v10461_v16  ;;  %v807_v33 = vpop.f32.mrb[10].mxu0  ;;  %v1013_v42 = vpop.f32.mrb[10].mxu1  ;;  %9125 = vmatpush3.bf16.msra.mxu1 %v10479_v17  ;;  %v10472_v16 = vld [vmem:[%s14288_s4 + $0x1e4] ss:$12 sps:$4 sm:$0xff]  }
 0x160   :  { %14323 = vst [vmem:[#allocation5_spill] sm:$0xff] %v11794_v29  ;;  %v1174_v43 = vadd.f32 %v11702_v62, %v1096_v31  ;;  %v1176_v44 = vadd.f32 %v11705_v63, %v1098_v34  ;;  %v1100_v45 = vmul.f32 %v11691_v58, %v807_v33  ;;  %v809_v46 = vpop.f32.mrb[11].mxu0  ;;  %3339 = vmatprep.subr.bf16.mxu0 %v10466_v22  ;;  %v1015_v48 = vpop.f32.mrb[11].mxu1 }
 0x161   :  { %14324 = vst [vmem:[#allocation6_spill] sm:$0xff] %v11800_v38  ;;  %v1102_v47 = vmul.f32 %v11694_v59, %v1013_v42  ;;  %v11818_v54 = vpack.c.bf16 %v1229_v39, %v1225_v13  ;;  %v1175_v56 = vadd.f32 %v11708_v1, %v1097_v40  ;;  %v1177_v57 = vadd.f32 %v11710_v3, %v1099_v32  ;;  %v10467_v13 = vld [vmem:[%s14288_s4 + $0x1c8] ss:$12 sps:$4 sm:$0xff]  }
 0x162   :  { %v1101_v0 = vmul.f32 %v11697_v60, %v809_v46  ;;  %3284 = vmatprep.mubr.bf16.mxu0 %v11800_v38  ;;  %v1230_v4 = vmax.f32 %v1174_v43, 0.0  ;;  %v1232_v5 = vmax.f32 %v1176_v44, 0.0  ;;  %v11828_v6 = vadd.f32 %v11702_v62, %v1100_v45  ;;  %3840 = vmatprep.mubr.bf16.mxu1 %v11800_v38  ;;  %v10470_v44 = vld [vmem:[%s14288_s4 + $0x1e0] ss:$12 sps:$4 sm:$0xff]  }
 0x163   :  { %3285 = vmatmul.mubr.bf16.gmra.mrb[32].mxu0 %v11794_v29  ;;  %v11833_v7 = vadd.f32 %v11705_v63, %v1102_v47  ;;  %v1231_v9 = vmax.f32 %v1175_v56, 0.0  ;;  %v1233_v10 = vmax.f32 %v1177_v57, 0.0  ;;  %3841 = vmatmul.mubr.bf16.gmra.mrb[32].mxu1 %v11794_v29  ;;  %v1103_v12 = vmul.f32 %v11699_v61, %v1015_v48  ;;  %v10477_v57 = vld [vmem:[%s14288_s4 + $0x1fc] ss:$12 sps:$4 sm:$0xff]  }
 0x164   :  { %v11839_v11 = vadd.f32 %v11708_v1, %v1101_v0  ;;  %3340 = vmatpush1.bf16.msra.mxu0 %v10464_v41  ;;  %v1234_v14 = vmax.f32 %v11828_v6, 0.0  ;;  %9126 = vmatprep.subr.bf16.mxu1 %v10483_v51  ;;  %v11851_v17 = vpack.c.bf16 %v1230_v4, %v1226_v20  ;;  %v11853_v22 = vpack.c.bf16 %v1232_v5, %v1228_v21  ;;  %v10489_v0 = vld [vmem:[%s14288_s4 + $0x1d0] ss:$12 sps:$4 sm:$0xff]  }
 0x165   :  { %v1236_v15 = vmax.f32 %v11833_v7, 0.0  ;;  %3341 = vmatprep.subr.bf16.mxu0 %v10469_v50  ;;  %v11857_v25 = vadd.f32 %v11710_v3, %v1103_v12  ;;  %v813_v26 = vpop.f32.mrb[12].mxu0  ;;  %v1019_v31 = vpop.f32.mrb[12].mxu1  ;;  %9127 = vmatpush3.bf16.msra.mxu1 %v10484_v2  ;;  %v11859_v34 = vpack.c.bf16 %v1231_v9, %v1227_v23  ;;  %v11861_v35 = vpack.c.bf16 %v1233_v10, %v1229_v39  ;;  %v10493_v7 = vld [vmem:[%s14288_s4 + $0x2a8] ss:$12 sps:$4 sm:$0xff]  }
 0x166   :  { %v1235_v24 = vmax.f32 %v11839_v11, 0.0  ;;  %v11863_v36 = vpack.c.bf16 %v1234_v14, %v1230_v4  ;;  %v1104_v20 = vmul.f32 %v11691_v58, %v813_v26  ;;  %v1106_v21 = vmul.f32 %v11694_v59, %v1019_v31  ;;  %v815_v32 = vpop.f32.mrb[13].mxu0  ;;  %v1021_v33 = vpop.f32.mrb[13].mxu1  ;;  %9128 = vmatprep.subr.bf16.mxu1 %v10488_v8  ;;  %v10475_v26 = vld [vmem:[%s14288_s4 + $0x1f8] ss:$12 sps:$4 sm:$0xff]  }
 0x167   :  { %v11865_v40 = vpack.c.bf16 %v1236_v15, %v1232_v5  ;;  %v1237_v42 = vmax.f32 %v11857_v25, 0.0  ;;  %v1105_v23 = vmul.f32 %v11697_v60, %v815_v32  ;;  %v1107_v39 = vmul.f32 %v11699_v61, %v1021_v33  ;;  %v817_v43 = vpop.f32.mrb[14].mxu0  ;;  %v1023_v45 = vpop.f32.mrb[14].mxu1 }
 0x168   :  { %14325 = vst [vmem:[#allocation7_spill] sm:$0xff] %v11863_v36  ;;  %v11869_v41 = vpack.c.bf16 %v1235_v24, %v1231_v9  ;;  %3342 = vmatpush1.bf16.msra.mxu0 %v10467_v13  ;;  %v1182_v46 = vadd.f32 %v11702_v62, %v1104_v20  ;;  %v1184_v47 = vadd.f32 %v11705_v63, %v1106_v21  ;;  %v819_v50 = vpop.f32.mrb[15].mxu0  ;;  %v1025_v56 = vpop.f32.mrb[15].mxu1  ;;  %v10482_v21 = vld [vmem:[%s14288_s4 + $0x214] ss:$12 sps:$4 sm:$0xff]  }
 0x169   :  { %v1108_v48 = vmul.f32 %v11691_v58, %v817_v43  ;;  %3343 = vmatprep.subr.bf16.mxu0 %v10472_v16  ;;  %v1110_v51 = vmul.f32 %v11694_v59, %v1023_v45  ;;  %v11887_v2 = vpack.c.bf16 %v1237_v42, %v1233_v10  ;;  %v1183_v4 = vadd.f32 %v11708_v1, %v1105_v23 }
 0x16a   :  { %14326 = vst [vmem:[#allocation8_spill] sm:$0xff] %v11869_v41  ;;  %v1185_v5 = vadd.f32 %v11710_v3, %v1107_v39  ;;  %v1109_v6 = vmul.f32 %v11697_v60, %v819_v50  ;;  %3294 = vmatprep.mubr.bf16.mxu0 %v11869_v41  ;;  %v1238_v8 = vmax.f32 %v1182_v46, 0.0  ;;  %v1240_v9 = vmax.f32 %v1184_v47, 0.0  ;;  %3848 = vmatprep.mubr.bf16.mxu1 %v11869_v41 }
 0x16b   :  { %v11897_v11 = vadd.f32 %v11702_v62, %v1108_v48  ;;  %3295 = vmatmul.mubr.bf16.gmra.mrb[36].mxu0 %v11863_v36  ;;  %v11902_v10 = vadd.f32 %v11705_v63, %v1110_v51  ;;  %v1239_v12 = vmax.f32 %v1183_v4, 0.0  ;;  %3849 = vmatmul.mubr.bf16.gmra.mrb[36].mxu1 %v11863_v36  ;;  %v1111_v25 = vmul.f32 %v11699_v61, %v1025_v56  ;;  %v10480_v4 = vld [vmem:[%s14288_s4 + $0x210] ss:$12 sps:$4 sm:$0xff]  }
 0x16c   :  { %v1241_v13 = vmax.f32 %v1185_v5, 0.0  ;;  %v11905_v16 = vadd.f32 %v11708_v1, %v1109_v6  ;;  %3344 = vmatpush1.bf16.msra.mxu0 %v10470_v44  ;;  %9129 = vmatpush3.bf16.msra.mxu1 %v10489_v0  ;;  %v11917_v32 = vpack.c.bf16 %v1238_v8, %v1234_v14  ;;  %v11919_v33 = vpack.c.bf16 %v1240_v9, %v1236_v15 }
 0x16d   :  { %v1242_v31 = vmax.f32 %v11897_v11, 0.0  ;;  %v1244_v20 = vmax.f32 %v11902_v10, 0.0  ;;  %3345 = vmatprep.subr.bf16.mxu0 %v10477_v57  ;;  %v1189_v39 = vadd.f32 %v11710_v3, %v1111_v25  ;;  %v823_v43 = vpop.f32.mrb[16].mxu0  ;;  %v1029_v44 = vpop.f32.mrb[16].mxu1  ;;  %9130 = vmatprep.subr.bf16.mxu1 %v10493_v7  ;;  %v11923_v45 = vpack.c.bf16 %v1239_v12, %v1235_v24 }
 0x16e   :  { %v1243_v23 = vmax.f32 %v11905_v16, 0.0  ;;  %v11925_v46 = vpack.c.bf16 %v1241_v13, %v1237_v42  ;;  %v1112_v14 = vmul.f32 %v11691_v58, %v823_v43  ;;  %v1114_v15 = vmul.f32 %v11694_v59, %v1029_v44  ;;  %v825_v50 = vpop.f32.mrb[17].mxu0  ;;  %v1031_v51 = vpop.f32.mrb[17].mxu1  ;;  %v10494_v16 = vld [vmem:[%s14288_s4 + $0x1e8] ss:$12 sps:$4 sm:$0xff]  }
 0x16f   :  { %v11927_v47 = vpack.c.bf16 %v1242_v31, %v1238_v8  ;;  %v11929_v48 = vpack.c.bf16 %v1244_v20, %v1240_v9  ;;  %v1245_v57 = vmax.f32 %v1189_v39, 0.0  ;;  %v1113_v0 = vmul.f32 %v11697_v60, %v825_v50  ;;  %v827_v42 = vpop.f32.mrb[18].mxu0  ;;  %v1033_v5 = vpop.f32.mrb[18].mxu1 }
 0x170   :  { %v11933_v56 = vpack.c.bf16 %v1243_v23, %v1239_v12  ;;  %v1115_v24 = vmul.f32 %v11699_v61, %v1031_v51  ;;  %3346 = vmatpush1.bf16.msra.mxu0 %v10475_v26  ;;  %v1190_v6 = vadd.f32 %v11702_v62, %v1112_v14  ;;  %v1192_v7 = vadd.f32 %v11705_v63, %v1114_v15  ;;  %v829_v9 = vpop.f32.mrb[19].mxu0  ;;  %v1035_v10 = vpop.f32.mrb[19].mxu1  ;;  %v10487_v12 = vld [vmem:[%s14288_s4 + $0x22c] ss:$12 sps:$4 sm:$0xff]  }
 0x171   :  { %14327 = vst [vmem:[#allocation9_spill] sm:$0xff] %v11927_v47  ;;  %v1116_v8 = vmul.f32 %v11691_v58, %v827_v42  ;;  %3347 = vmatprep.subr.bf16.mxu0 %v10482_v21  ;;  %v1118_v11 = vmul.f32 %v11694_v59, %v1033_v5  ;;  %v11950_v25 = vpack.c.bf16 %v1245_v57, %v1241_v13  ;;  %v10498_v21 = vld [vmem:[%s14288_s4 + $0x2c0] ss:$12 sps:$4 sm:$0xff]   ;;  %v10485_v42 = vld [vmem:[%s14288_s4 + $0x228] ss:$12 sps:$4 sm:$0xff]  }
 0x172   :  { %14328 = vst [vmem:[#allocation10_spill] sm:$0xff] %v11933_v56  ;;  %v1191_v26 = vadd.f32 %v11708_v1, %v1113_v0  ;;  %v1193_v39 = vadd.f32 %v11710_v3, %v1115_v24  ;;  %v1117_v43 = vmul.f32 %v11697_v60, %v829_v9  ;;  %3304 = vmatprep.mubr.bf16.mxu0 %v11933_v56  ;;  %v1246_v44 = vmax.f32 %v1190_v6, 0.0 }
 0x173   :  { %v1248_v14 = vmax.f32 %v1192_v7, 0.0  ;;  %v11960_v15 = vadd.f32 %v11702_v62, %v1116_v8  ;;  %3856 = vmatprep.mubr.bf16.mxu1 %v11933_v56  ;;  %3305 = vmatmul.mubr.bf16.gmra.mrb[40].mxu0 %v11927_v47  ;;  %v11965_v13 = vadd.f32 %v11705_v63, %v1118_v11  ;;  %v1119_v24 = vmul.f32 %v11699_v61, %v1035_v10  ;;  %v10492_v7 = vld [vmem:[%s14288_s4 + $0x244] ss:$12 sps:$4 sm:$0xff]  }
 0x174   :  { %v1247_v50 = vmax.f32 %v1191_v26, 0.0  ;;  %v1249_v51 = vmax.f32 %v1193_v39, 0.0  ;;  %v11968_v0 = vadd.f32 %v11708_v1, %v1117_v43  ;;  %3348 = vmatpush1.bf16.msra.mxu0 %v10480_v4  ;;  %3857 = vmatmul.mubr.bf16.gmra.mrb[40].mxu1 %v11927_v47  ;;  %v11980_v8 = vpack.c.bf16 %v1246_v44, %v1242_v31 }
 0x175   :  { %v1250_v5 = vmax.f32 %v11960_v15, 0.0  ;;  %v1252_v6 = vmax.f32 %v11965_v13, 0.0  ;;  %3349 = vmatprep.subr.bf16.mxu0 %v10487_v12  ;;  %9131 = vmatpush3.bf16.msra.mxu1 %v10494_v16  ;;  %v11982_v4 = vpack.c.bf16 %v1248_v14, %v1244_v20  ;;  %v11986_v11 = vadd.f32 %v11710_v3, %v1119_v24  ;;  %v833_v10 = vpop.f32.mrb[20].mxu0  ;;  %v1039_v26 = vpop.f32.mrb[20].mxu1 }
 0x176   :  { %v1251_v9 = vmax.f32 %v11968_v0, 0.0  ;;  %9132 = vmatprep.subr.bf16.mxu1 %v10498_v21  ;;  %v11988_v39 = vpack.c.bf16 %v1247_v50, %v1243_v23  ;;  %v11990_v12 = vpack.c.bf16 %v1249_v51, %v1245_v57  ;;  %v1120_v31 = vmul.f32 %v11691_v58, %v833_v10  ;;  %v835_v16 = vpop.f32.mrb[21].mxu0  ;;  %v1041_v13 = vpop.f32.mrb[21].mxu1 }
 0x177   :  { %v11992_v43 = vpack.c.bf16 %v1250_v5, %v1246_v44  ;;  %v11994_v15 = vpack.c.bf16 %v1252_v6, %v1248_v14  ;;  %v1122_v20 = vmul.f32 %v11694_v59, %v1039_v26  ;;  %v1253_v24 = vmax.f32 %v11986_v11, 0.0  ;;  %v837_v57 = vpop.f32.mrb[22].mxu0  ;;  %v10490_v44 = vld [vmem:[%s14288_s4 + $0x240] ss:$12 sps:$4 sm:$0xff]   ;;  %v1043_v14 = vpop.f32.mrb[22].mxu1 }
 0x178   :  { %v11998_v0 = vpack.c.bf16 %v1251_v9, %v1247_v50  ;;  %v1121_v21 = vmul.f32 %v11697_v60, %v835_v16  ;;  %v1123_v23 = vmul.f32 %v11699_v61, %v1041_v13  ;;  %3350 = vmatpush1.bf16.msra.mxu0 %v10485_v42  ;;  %v1198_v10 = vadd.f32 %v11702_v62, %v1120_v31  ;;  %v839_v55 = vpop.f32.mrb[23].mxu0  ;;  %v1045_v16 = vpop.f32.mrb[23].mxu1  ;;  %v10497_v42 = vld [vmem:[%s14288_s4 + $0x25c] ss:$12 sps:$4 sm:$0xff]   ;;  %v10499_v13 = vld [vmem:[%s14288_s4 + $0x200] ss:$12 sps:$4 sm:$0xff]  }
 0x179   :  { %14329 = vst [vmem:[#allocation11_spill] sm:$0xff] %v11992_v43  ;;  %v1200_v26 = vadd.f32 %v11705_v63, %v1122_v20  ;;  %v1124_v50 = vmul.f32 %v11691_v58, %v837_v57  ;;  %3351 = vmatprep.subr.bf16.mxu0 %v10492_v7  ;;  %v1126_v11 = vmul.f32 %v11694_v59, %v1043_v14  ;;  %v10503_v7 = vld [vmem:[%s14288_s4 + $0x2d8] ss:$12 sps:$4 sm:$0xff]  }
 0x17a   :  { %14330 = vst [vmem:[#allocation12_spill] sm:$0xff] %v11998_v0  ;;  %v12016_v52 = vpack.c.bf16 %v1253_v24, %v1249_v51  ;;  %v1199_v31 = vadd.f32 %v11708_v1, %v1121_v21  ;;  %v1201_v20 = vadd.f32 %v11710_v3, %v1123_v23  ;;  %v1125_v57 = vmul.f32 %v11697_v60, %v839_v55 }
 0x17b   :  { %3314 = vmatprep.mubr.bf16.mxu0 %v11998_v0  ;;  %v1254_v14 = vmax.f32 %v1198_v10, 0.0  ;;  %v1256_v53 = vmax.f32 %v1200_v26, 0.0  ;;  %v12026_v47 = vadd.f32 %v11702_v62, %v1124_v50  ;;  %3864 = vmatprep.mubr.bf16.mxu1 %v11998_v0  ;;  %v12031_v51 = vadd.f32 %v11705_v63, %v1126_v11  ;;  %v10495_v26 = vld [vmem:[%s14288_s4 + $0x258] ss:$12 sps:$4 sm:$0xff]   ;;  %v10502_v11 = vld [vmem:[%s14288_s4 + $0x274] ss:$12 sps:$4 sm:$0xff]  }
 0x17c   :  { %3315 = vmatmul.mubr.bf16.gmra.mrb[44].mxu0 %v11992_v43  ;;  %v1255_v21 = vmax.f32 %v1199_v31, 0.0  ;;  %v1257_v55 = vmax.f32 %v1201_v20, 0.0  ;;  %v12034_v23 = vadd.f32 %v11708_v1, %v1125_v57  ;;  %3865 = vmatmul.mubr.bf16.gmra.mrb[44].mxu1 %v11992_v43  ;;  %v1127_v10 = vmul.f32 %v11699_v61, %v1045_v16 }
 0x17d   :  { %3352 = vmatpush1.bf16.msra.mxu0 %v10490_v44  ;;  %9133 = vmatpush3.bf16.msra.mxu1 %v10499_v13  ;;  %v10504_v44 = vld [vmem:[%s14288_s4 + $0x218] ss:$12 sps:$4 sm:$0xff]   ;;  %v12049_v31 = vpack.c.bf16 %v1254_v14, %v1250_v5  ;;  %v12051_v16 = vpack.c.bf16 %v1256_v53, %v1252_v6  ;;  %v843_v50 = vpop.f32.mrb[24].mxu0  ;;  %v1049_v0 = vpop.f32.mrb[24].mxu1  ;;  %v14331_v43 = vmax.f32 %v12026_v47, 0.0  ;;  %v14332_v5 = vmax.f32 %v12031_v51, 0.0 }
 0x17e   :  { %3353 = vmatprep.subr.bf16.mxu0 %v10497_v42  ;;  %v1259_v20 = vmax.f32 %v12034_v23, 0.0  ;;  %v1205_v57 = vadd.f32 %v11710_v3, %v1127_v10  ;;  %9134 = vmatprep.subr.bf16.mxu1 %v10503_v7  ;;  %v12055_v42 = vpack.c.bf16 %v1255_v21, %v1251_v9  ;;  %v12057_v13 = vpack.c.bf16 %v1257_v55, %v1253_v24  ;;  %v845_v10 = vpop.f32.mrb[25].mxu0  ;;  %v1051_v41 = vpop.f32.mrb[25].mxu1 }
 0x17f   :  { %v12061_v56 = vpack.c.bf16 %v14331_v43, %v1254_v14  ;;  %v12065_v36 = vpack.c.bf16 %v14332_v5, %v1256_v53  ;;  %v1128_v6 = vmul.f32 %v11691_v58, %v843_v50  ;;  %v1130_v23 = vmul.f32 %v11694_v59, %v1049_v0  ;;  %v847_v43 = vpop.f32.mrb[26].mxu0  ;;  %v10500_v53 = vld [vmem:[%s14288_s4 + $0x270] ss:$12 sps:$4 sm:$0xff]   ;;  %v1053_v14 = vpop.f32.mrb[26].mxu1 }
 0x180   :  { %v12069_v29 = vpack.c.bf16 %v1259_v20, %v1255_v21  ;;  %v1261_v9 = vmax.f32 %v1205_v57, 0.0  ;;  %v1129_v24 = vmul.f32 %v11697_v60, %v845_v10  ;;  %v1131_v7 = vmul.f32 %v11699_v61, %v1051_v41  ;;  %v849_v21 = vpop.f32.mrb[27].mxu0  ;;  %v1055_v57 = vpop.f32.mrb[27].mxu1 }
 0x181   :  { %3354 = vmatpush1.bf16.msra.mxu0 %v10495_v26  ;;  %v1206_v50 = vadd.f32 %v11702_v62, %v1128_v6  ;;  %v1208_v0 = vadd.f32 %v11705_v63, %v1130_v23  ;;  %v1132_v5 = vmul.f32 %v11691_v58, %v847_v43  ;;  %9135 = vmatpush3.bf16.msra.mxu1 %v10504_v44  ;;  %v10507_v6 = vld [vmem:[%s14288_s4 + $0x28c] ss:$12 sps:$4 sm:$0xff]   ;;  %v10508_v58 = vld [vmem:[%s14288_s4 + $0x2f0] ss:$12 sps:$4 sm:$0xff]  }
 0x182   :  { %3355 = vmatprep.subr.bf16.mxu0 %v10502_v11  ;;  %v12079_v10 = vpack.c.bf16 %v1261_v9, %v1257_v55  ;;  %v1207_v41 = vadd.f32 %v11708_v1, %v1129_v24  ;;  %v1209_v26 = vadd.f32 %v11710_v3, %v1131_v7  ;;  %v1133_v38 = vmul.f32 %v11697_v60, %v849_v21  ;;  %v10509_v23 = vld [vmem:[%s14288_s4 + $0x230] ss:$12 sps:$4 sm:$0xff]  }
 0x183   :  { %3324 = vmatprep.mubr.bf16.mxu0 %v12069_v29  ;;  %v1262_v11 = vmax.f32 %v1206_v50, 0.0  ;;  %v1264_v44 = vmax.f32 %v1208_v0, 0.0  ;;  %v1210_v55 = vadd.f32 %v11702_v62, %v1132_v5  ;;  %3872 = vmatprep.mubr.bf16.mxu1 %v12069_v29  ;;  %v1134_v60 = vmul.f32 %v11694_v59, %v1053_v14  ;;  %v10505_v62 = vld [vmem:[%s14288_s4 + $0x288] ss:$12 sps:$4 sm:$0xff]  }
 0x184   :  { %3325 = vmatmul.mubr.bf16.gmra.mrb[48].mxu0 %v12061_v56  ;;  %v1263_v24 = vmax.f32 %v1207_v41, 0.0  ;;  %v1265_v7 = vmax.f32 %v1209_v26, 0.0  ;;  %v1211_v43 = vadd.f32 %v11708_v1, %v1133_v38  ;;  %3873 = vmatmul.mubr.bf16.gmra.mrb[48].mxu1 %v12061_v56  ;;  %v1135_v50 = vmul.f32 %v11699_v61, %v1055_v57  ;;  %v10525_v59 = vld [vmem:[%s14288_s4 + $0x3c8] ss:$12 sps:$4 sm:$0xff]   ;;  %v10512_v38 = vld [vmem:[%s14288_s4 + $0x2a4] ss:$12 sps:$4 sm:$0xff]  }
 0x185   :  { %3356 = vmatpush1.bf16.msra.mxu0 %v10500_v53  ;;  %v1266_v14 = vmax.f32 %v1210_v55, 0.0  ;;  %3367 = vmatprep.mubr.bf16.mxu0 %v11746_v49  ;;  %v1212_v1 = vadd.f32 %v11705_v63, %v1134_v60  ;;  %v14333_v53 = vmax.f32 %v12026_v47, 0.0  ;;  %v14334_v61 = vmax.f32 %v12031_v51, 0.0  ;;  %v10510_v51 = vld [vmem:[%s14288_s4 + $0x2a0] ss:$12 sps:$4 sm:$0xff]  }
 0x186   :  { %3913 = vmatprep.mubr.bf16.mxu1 %v11746_v49  ;;  %v1267_v21 = vmax.f32 %v1211_v43, 0.0  ;;  %3357 = vmatprep.subr.bf16.mxu0 %v10507_v6  ;;  %v1213_v57 = vadd.f32 %v11710_v3, %v1135_v50  ;;  %v12122_v49 = vpack.c.bf16 %v1263_v24, %v1259_v20  ;;  %v12124_v63 = vpack.c.bf16 %v1265_v7, %v1261_v9  ;;  %v10515_v3 = vld [vmem:[%s14288_s4 + $0x2bc] ss:$12 sps:$4 sm:$0xff]   ;;  %v10531_v60 = vld [vmem:[%s14288_s4 + $0x320] ss:$12 sps:$4 sm:$0xff]  }
 0x187   :  { %v12115_v0 = vpack.c.bf16 %v1262_v11, %v14333_v53  ;;  %v12119_v5 = vpack.c.bf16 %v1264_v44, %v14334_v61  ;;  %9136 = vmatprep.subr.bf16.mxu1 %v10508_v58  ;;  %v1268_v41 = vmax.f32 %v1212_v1, 0.0  ;;  %v12126_v26 = vpack.c.bf16 %v1266_v14, %v1262_v11  ;;  %v10526_v9 = vld [vmem:[%s14288_s4 + $0x308] ss:$12 sps:$4 sm:$0xff]   ;;  %v10530_v58 = vld [vmem:[%s14288_s4 + $0x3e0] ss:$12 sps:$4 sm:$0xff]  }
 0x188   :  { %9137 = vmatpush3.bf16.msra.mxu1 %v10509_v23  ;;  %v1269_v47 = vmax.f32 %v1213_v57, 0.0  ;;  %v12131_v55 = vpack.c.bf16 %v1267_v21, %v1263_v24  ;;  %v10513_v11 = vld [vmem:[%s14288_s4 + $0x2b8] ss:$12 sps:$4 sm:$0xff]   ;;  %v10516_v24 = vld [vmem:[%s14288_s4 + $0x2d0] ss:$12 sps:$4 sm:$0xff]  }
 0x189   :  { %3358 = vmatpush1.bf16.msra.mxu0 %v10505_v62  ;;  %9174 = vmatprep.subr.bf16.mxu1 %v10525_v59  ;;  %v12136_v20 = vpack.c.bf16 %v1268_v41, %v1264_v44  ;;  %v10518_v44 = vld [vmem:[%s14288_s4 + $0x2d4] ss:$12 sps:$4 sm:$0xff]   ;;  %v10535_v23 = vld [vmem:[%s14288_s4 + $0x3f8] ss:$12 sps:$4 sm:$0xff]   ;;  %v10540_v62 = vld [vmem:[%s14288_s4 + $0x410] ss:$12 sps:$4 sm:$0xff]  }
 0x18a   :  { %3359 = vmatprep.subr.bf16.mxu0 %v10512_v38  ;;  %v12141_v6 = vpack.c.bf16 %v1269_v47, %v1265_v7  ;;  %v10521_v7 = vld [vmem:[%s14288_s4 + $0x2ec] ss:$12 sps:$4 sm:$0xff]   ;;  %v10519_v50 = vld [vmem:[%s14288_s4 + $0x2e8] ss:$12 sps:$4 sm:$0xff]   ;;  %v10524_v59 = vld [vmem:[%s14288_s4 + $0x304] ss:$12 sps:$4 sm:$0xff]  }
 0x18b   :  { %v10536_v43 = vld [vmem:[%s14288_s4 + $0x338] ss:$12 sps:$4 sm:$0xff]   ;;  %v10541_v14 = vld [vmem:[%s14288_s4 + $0x350] ss:$12 sps:$4 sm:$0xff]   ;;  %v10545_v1 = vld [vmem:[%s14288_s4 + $0x428] ss:$12 sps:$4 sm:$0xff]  }
 0x18c   :  { %3914 = vmatmul.mubr.bf16.vlgmr.msra.gmra.mrb[52].mxu1 %v11734_v37  ;;  %v10522_v38 = vld [vmem:[%s14288_s4 + $0x300] ss:$12 sps:$4 sm:$0xff]   ;;  %v10529_v53 = vld [vmem:[%s14288_s4 + $0x31c] ss:$12 sps:$4 sm:$0xff]   ;;  %v10527_v57 = vld [vmem:[%s14288_s4 + $0x318] ss:$12 sps:$4 sm:$0xff]  }
 0x18d   :  { %3360 = vmatpush1.bf16.msra.mxu0 %v10510_v51  ;;  %3921 = vmatprep.mubr.bf16.mxu1 %v11818_v54  ;;  %v10546_v61 = vld [vmem:[%s14288_s4 + $0x368] ss:$12 sps:$4 sm:$0xff]   ;;  %v10550_v21 = vld [vmem:[%s14288_s4 + $0x440] ss:$12 sps:$4 sm:$0xff]   ;;  %v10555_v47 = vld [vmem:[%s14288_s4 + $0x458] ss:$12 sps:$4 sm:$0xff]  }
 0x18e   :  { %3361 = vmatprep.subr.bf16.mxu0 %v10515_v3  ;;  %9175 = vmatpush3.bf16.msra.mxu1 %v10526_v9  ;;  %v10534_v41 = vld [vmem:[%s14288_s4 + $0x334] ss:$12 sps:$4 sm:$0xff]   ;;  %v10532_v51 = vld [vmem:[%s14288_s4 + $0x330] ss:$12 sps:$4 sm:$0xff]   ;;  %v10539_v3 = vld [vmem:[%s14288_s4 + $0x34c] ss:$12 sps:$4 sm:$0xff]  }
 0x18f   :  { %9176 = vmatprep.subr.bf16.mxu1 %v10530_v58  ;;  %v10556_v9 = vld [vmem:[%s14288_s4 + $0x398] ss:$12 sps:$4 sm:$0xff]   ;;  %v10560_v58 = vld [vmem:[%s14288_s4 + $0x470] ss:$12 sps:$4 sm:$0xff]  }
 0x191   :  { %3362 = vmatpush1.bf16.msra.mxu0 %v10513_v11  ;;  %v10537_v11 = vld [vmem:[%s14288_s4 + $0x348] ss:$12 sps:$4 sm:$0xff]  }
 0x192   :  { %3363 = vmatprep.subr.bf16.mxu0 %v10518_v44  ;;  %9177 = vmatpush3.bf16.msra.mxu1 %v10531_v60  ;;  %v10544_v44 = vld [vmem:[%s14288_s4 + $0x364] ss:$12 sps:$4 sm:$0xff]  }
 0x193   :  { %9178 = vmatprep.subr.bf16.mxu1 %v10535_v23  ;;  %v10561_v60 = vld [vmem:[%s14288_s4 + $0x3b0] ss:$12 sps:$4 sm:$0xff]   ;;  %v10577_v23 = vld [vmem:[%s14288_s4 + $0x548] ss:$12 sps:$4 sm:$0xff]  }
 0x194   :  { %3922 = vmatmul.mubr.bf16.gmra.mrb[56].mxu1 %v11796_v30 }
 0x195   :  { %3364 = vmatpush1.bf16.msra.mxu0 %v10516_v24  ;;  %3929 = vmatprep.mubr.bf16.mxu1 %v11887_v2  ;;  %v10542_v24 = vld [vmem:[%s14288_s4 + $0x360] ss:$12 sps:$4 sm:$0xff]  }
 0x196   :  { %3365 = vmatprep.subr.bf16.mxu0 %v10521_v7  ;;  %9179 = vmatpush3.bf16.msra.mxu1 %v10536_v43  ;;  %v10549_v7 = vld [vmem:[%s14288_s4 + $0x37c] ss:$12 sps:$4 sm:$0xff]   ;;  %v10547_v43 = vld [vmem:[%s14288_s4 + $0x378] ss:$12 sps:$4 sm:$0xff]  }
 0x197   :  { %9180 = vmatprep.subr.bf16.mxu1 %v10540_v62  ;;  %v10554_v62 = vld [vmem:[%s14288_s4 + $0x394] ss:$12 sps:$4 sm:$0xff]  }
 0x199   :  { %3366 = vmatpush1.bf16.msra.mxu0 %v10519_v50  ;;  %v10552_v50 = vld [vmem:[%s14288_s4 + $0x390] ss:$12 sps:$4 sm:$0xff]  }
 0x19a   :  { %3428 = vmatprep.subr.bf16.mxu0 %v10524_v59  ;;  %9181 = vmatpush3.bf16.msra.mxu1 %v10541_v14  ;;  %v10559_v59 = vld [vmem:[%s14288_s4 + $0x3ac] ss:$12 sps:$4 sm:$0xff]   ;;  %v10557_v14 = vld [vmem:[%s14288_s4 + $0x3a8] ss:$12 sps:$4 sm:$0xff]  }
 0x19b   :  { %9182 = vmatprep.subr.bf16.mxu1 %v10545_v1  ;;  %v10564_v1 = vld [vmem:[%s14288_s4 + $0x3c4] ss:$12 sps:$4 sm:$0xff]  }
 0x19c   :  { %3368 = vmatmul.mubr.bf16.vlgmr.msra.gmra.mrb[28].mxu0 %v11734_v37  ;;  %3930 = vmatmul.mubr.bf16.gmra.mrb[60].mxu1 %v11865_v40  ;;  %v10551_v37 = vld [vmem:[%s14288_s4 + $0x380] ss:$12 sps:$4 sm:$0xff]  }
 0x19d   :  { %3377 = vmatprep.mubr.bf16.mxu0 %v11818_v54  ;;  %3429 = vmatpush1.bf16.msra.mxu0 %v10522_v38  ;;  %v10562_v38 = vld [vmem:[%s14288_s4 + $0x3c0] ss:$12 sps:$4 sm:$0xff]  }
 0x19e   :  { %3430 = vmatprep.subr.bf16.mxu0 %v10529_v53  ;;  %3937 = vmatprep.mubr.bf16.mxu1 %v11950_v25  ;;  %v10567_v53 = vld [vmem:[%s14288_s4 + $0x3dc] ss:$12 sps:$4 sm:$0xff]  }
 0x19f   :  { %9183 = vmatpush3.bf16.msra.mxu1 %v10546_v61  ;;  %v10578_v61 = vld [vmem:[%s14288_s4 + $0x488] ss:$12 sps:$4 sm:$0xff]  }
 0x1a0   :  { %9184 = vmatprep.subr.bf16.mxu1 %v10550_v21  ;;  %v10582_v21 = vld [vmem:[%s14288_s4 + $0x560] ss:$12 sps:$4 sm:$0xff]  }
 0x1a1   :  { %3431 = vmatpush1.bf16.msra.mxu0 %v10527_v57  ;;  %v10565_v57 = vld [vmem:[%s14288_s4 + $0x3d8] ss:$12 sps:$4 sm:$0xff]  }
 0x1a2   :  { %3432 = vmatprep.subr.bf16.mxu0 %v10534_v41  ;;  %v10570_v41 = vld [vmem:[%s14288_s4 + $0x3f4] ss:$12 sps:$4 sm:$0xff]  }
 0x1a3   :  { %9185 = vmatpush3.bf16.msra.mxu1 %v10551_v37  ;;  %v10583_v37 = vld [vmem:[%s14288_s4 + $0x4a0] ss:$12 sps:$4 sm:$0xff]  }
 0x1a4   :  { %3378 = vmatmul.mubr.bf16.gmra.mrb[32].mxu0 %v11796_v30  ;;  %9186 = vmatprep.subr.bf16.mxu1 %v10555_v47  ;;  %v10587_v47 = vld [vmem:[%s14288_s4 + $0x578] ss:$12 sps:$4 sm:$0xff]  }
 0x1a5   :  { %3387 = vmatprep.mubr.bf16.mxu0 %v11887_v2  ;;  %3433 = vmatpush1.bf16.msra.mxu0 %v10532_v51  ;;  %v10568_v51 = vld [vmem:[%s14288_s4 + $0x3f0] ss:$12 sps:$4 sm:$0xff]  }
 0x1a6   :  { %3938 = vmatmul.mubr.bf16.gmra.mrb[64].mxu1 %v11929_v48  ;;  %3434 = vmatprep.subr.bf16.mxu0 %v10539_v3  ;;  %v10573_v3 = vld [vmem:[%s14288_s4 + $0x40c] ss:$12 sps:$4 sm:$0xff]  }
 0x1a7   :  { %3945 = vmatprep.mubr.bf16.mxu1 %v12016_v52  ;;  %9187 = vmatpush3.bf16.msra.mxu1 %v10556_v9  ;;  %v10588_v9 = vld [vmem:[%s14288_s4 + $0x4b8] ss:$12 sps:$4 sm:$0xff]  }
 0x1a8   :  { %9188 = vmatprep.subr.bf16.mxu1 %v10560_v58  ;;  %v10592_v58 = vld [vmem:[%s14288_s4 + $0x590] ss:$12 sps:$4 sm:$0xff]  }
 0x1a9   :  { %3435 = vmatpush1.bf16.msra.mxu0 %v10537_v11  ;;  %v10571_v11 = vld [vmem:[%s14288_s4 + $0x408] ss:$12 sps:$4 sm:$0xff]  }
 0x1aa   :  { %3436 = vmatprep.subr.bf16.mxu0 %v10544_v44  ;;  %v10576_v44 = vld [vmem:[%s14288_s4 + $0x424] ss:$12 sps:$4 sm:$0xff]  }
 0x1ab   :  { %9189 = vmatpush3.bf16.msra.mxu1 %v10561_v60  ;;  %v10593_v60 = vld [vmem:[%s14288_s4 + $0x4d0] ss:$12 sps:$4 sm:$0xff]  }
 0x1ac   :  { %3388 = vmatmul.mubr.bf16.gmra.mrb[36].mxu0 %v11865_v40  ;;  %9226 = vmatprep.subr.bf16.mxu1 %v10577_v23  ;;  %v10574_v23 = vld [vmem:[%s14288_s4 + $0x420] ss:$12 sps:$4 sm:$0xff]  }
 0x1ad   :  { %3397 = vmatprep.mubr.bf16.mxu0 %v11950_v25  ;;  %3437 = vmatpush1.bf16.msra.mxu0 %v10542_v24  ;;  %v10581_v24 = vld [vmem:[%s14288_s4 + $0x43c] ss:$12 sps:$4 sm:$0xff]  }
 0x1ae   :  { %3946 = vmatmul.mubr.bf16.gmra.mrb[68].mxu1 %v11994_v15  ;;  %3438 = vmatprep.subr.bf16.mxu0 %v10549_v7  ;;  %v10598_v7 = vld [vmem:[%s14288_s4 + $0x4e8] ss:$12 sps:$4 sm:$0xff]  }
 0x1af   :  { %3953 = vmatprep.mubr.bf16.mxu1 %v12079_v10 }
 0x1b1   :  { %3439 = vmatpush1.bf16.msra.mxu0 %v10547_v43  ;;  %v10602_v43 = vld [vmem:[%s14288_s4 + $0x5c0] ss:$12 sps:$4 sm:$0xff]  }
 0x1b2   :  { %3440 = vmatprep.subr.bf16.mxu0 %v10554_v62  ;;  %v10579_v62 = vld [vmem:[%s14288_s4 + $0x438] ss:$12 sps:$4 sm:$0xff]  }
 0x1b4   :  { %3398 = vmatmul.mubr.bf16.gmra.mrb[40].mxu0 %v11929_v48 }
 0x1b5   :  { %3407 = vmatprep.mubr.bf16.mxu0 %v12016_v52  ;;  %3441 = vmatpush1.bf16.msra.mxu0 %v10552_v50  ;;  %v10586_v50 = vld [vmem:[%s14288_s4 + $0x454] ss:$12 sps:$4 sm:$0xff]  }
 0x1b6   :  { %3954 = vmatmul.mubr.bf16.gmra.mrb[72].mxu1 %v12065_v36  ;;  %3442 = vmatprep.subr.bf16.mxu0 %v10559_v59  ;;  %v10603_v59 = vld [vmem:[%s14288_s4 + $0x500] ss:$12 sps:$4 sm:$0xff]  }
 0x1b7   :  { %3994 = vmatprep.mubr.bf16.mxu1 %v11790_v27 }
 0x1b9   :  { %3443 = vmatpush1.bf16.msra.mxu0 %v10557_v14  ;;  %v10607_v14 = vld [vmem:[%s14288_s4 + $0x5d8] ss:$12 sps:$4 sm:$0xff]  }
 0x1ba   :  { %3444 = vmatprep.subr.bf16.mxu0 %v10564_v1  ;;  %v10584_v1 = vld [vmem:[%s14288_s4 + $0x450] ss:$12 sps:$4 sm:$0xff]  }
 0x1bc   :  { %3408 = vmatmul.mubr.bf16.gmra.mrb[44].mxu0 %v11994_v15 }
 0x1bd   :  { %3417 = vmatprep.mubr.bf16.mxu0 %v12079_v10  ;;  %3445 = vmatpush1.bf16.msra.mxu0 %v10562_v38  ;;  %v10591_v38 = vld [vmem:[%s14288_s4 + $0x46c] ss:$12 sps:$4 sm:$0xff]  }
 0x1be   :  { %3995 = vmatmul.mubr.bf16.vlgmr.msra.gmra.mrb[76].mxu1 %v11777_v18  ;;  %3446 = vmatprep.subr.bf16.mxu0 %v10567_v53  ;;  %v10608_v53 = vld [vmem:[%s14288_s4 + $0x518] ss:$12 sps:$4 sm:$0xff]  }
 0x1bf   :  { %4002 = vmatprep.mubr.bf16.mxu1 %v11859_v34  ;;  %9227 = vmatpush3.bf16.msra.mxu1 %v10578_v61  ;;  %v10612_v61 = vld [vmem:[%s14288_s4 + $0x5f0] ss:$12 sps:$4 sm:$0xff]  }
 0x1c0   :  { %9228 = vmatprep.subr.bf16.mxu1 %v10582_v21  ;;  %v10589_v21 = vld [vmem:[%s14288_s4 + $0x468] ss:$12 sps:$4 sm:$0xff]  }
 0x1c1   :  { %3447 = vmatpush1.bf16.msra.mxu0 %v10565_v57  ;;  %v10596_v57 = vld [vmem:[%s14288_s4 + $0x484] ss:$12 sps:$4 sm:$0xff]  }
 0x1c2   :  { %3448 = vmatprep.subr.bf16.mxu0 %v10570_v41  ;;  %v10613_v41 = vld [vmem:[%s14288_s4 + $0x530] ss:$12 sps:$4 sm:$0xff]  }
 0x1c3   :  { %9229 = vmatpush3.bf16.msra.mxu1 %v10583_v37  ;;  %v10629_v37 = vld [vmem:[%s14288_s4 + $0x6c8] ss:$12 sps:$4 sm:$0xff]  }
 0x1c4   :  { %3418 = vmatmul.mubr.bf16.gmra.mrb[48].mxu0 %v12065_v36  ;;  %9230 = vmatprep.subr.bf16.mxu1 %v10587_v47  ;;  %v10594_v47 = vld [vmem:[%s14288_s4 + $0x480] ss:$12 sps:$4 sm:$0xff]  }
 0x1c5   :  { %3449 = vmatpush1.bf16.msra.mxu0 %v10568_v51  ;;  %3460 = vmatprep.mubr.bf16.mxu0 %v11790_v27  ;;  %v10597_v27 = vld [vmem:[%s14288_s4 + $0x5a8] ss:$12 sps:$4 sm:$0xff]  }
 0x1c6   :  { %4003 = vmatmul.mubr.bf16.gmra.mrb[80].mxu1 %v11851_v17  ;;  %3450 = vmatprep.subr.bf16.mxu0 %v10573_v3  ;;  %v10601_v51 = vld [vmem:[%s14288_s4 + $0x49c] ss:$12 sps:$4 sm:$0xff]   ;;  %v10599_v3 = vld [vmem:[%s14288_s4 + $0x498] ss:$12 sps:$4 sm:$0xff]  }
 0x1c7   :  { %4010 = vmatprep.mubr.bf16.mxu1 %v11923_v45  ;;  %9231 = vmatpush3.bf16.msra.mxu1 %v10588_v9  ;;  %v10606_v9 = vld [vmem:[%s14288_s4 + $0x4b4] ss:$12 sps:$4 sm:$0xff]  }
 0x1c8   :  { %9232 = vmatprep.subr.bf16.mxu1 %v10592_v58  ;;  %v10609_v58 = vld [vmem:[%s14288_s4 + $0x4c8] ss:$12 sps:$4 sm:$0xff]  }
 0x1c9   :  { %3451 = vmatpush1.bf16.msra.mxu0 %v10571_v11  ;;  %v10616_v11 = vld [vmem:[%s14288_s4 + $0x4e4] ss:$12 sps:$4 sm:$0xff]  }
 0x1ca   :  { %3452 = vmatprep.subr.bf16.mxu0 %v10576_v44  ;;  %v10630_v44 = vld [vmem:[%s14288_s4 + $0x608] ss:$12 sps:$4 sm:$0xff]  }
 0x1cb   :  { %9233 = vmatpush3.bf16.msra.mxu1 %v10593_v60  ;;  %v10634_v60 = vld [vmem:[%s14288_s4 + $0x6e0] ss:$12 sps:$4 sm:$0xff]  }
 0x1cc   :  { %9234 = vmatprep.subr.bf16.mxu1 %v10597_v27  ;;  %v10617_v27 = vld [vmem:[%s14288_s4 + $0x4f8] ss:$12 sps:$4 sm:$0xff]  }
 0x1cd   :  { %3453 = vmatpush1.bf16.msra.mxu0 %v10574_v23  ;;  %v10622_v23 = vld [vmem:[%s14288_s4 + $0x514] ss:$12 sps:$4 sm:$0xff]  }
 0x1ce   :  { %4011 = vmatmul.mubr.bf16.gmra.mrb[84].mxu1 %v11917_v32  ;;  %3454 = vmatprep.subr.bf16.mxu0 %v10581_v24  ;;  %v10620_v24 = vld [vmem:[%s14288_s4 + $0x510] ss:$12 sps:$4 sm:$0xff]  }
 0x1cf   :  { %4018 = vmatprep.mubr.bf16.mxu1 %v11988_v39  ;;  %9235 = vmatpush3.bf16.msra.mxu1 %v10598_v7  ;;  %v10625_v7 = vld [vmem:[%s14288_s4 + $0x52c] ss:$12 sps:$4 sm:$0xff]  }
 0x1d0   :  { %9236 = vmatprep.subr.bf16.mxu1 %v10602_v43  ;;  %v10640_v43 = vld [vmem:[%s14288_s4 + $0x638] ss:$12 sps:$4 sm:$0xff]  }
 0x1d1   :  { %3455 = vmatpush1.bf16.msra.mxu0 %v10579_v62  ;;  %v10644_v62 = vld [vmem:[%s14288_s4 + $0x710] ss:$12 sps:$4 sm:$0xff]  }
 0x1d2   :  { %3456 = vmatprep.subr.bf16.mxu0 %v10586_v50  ;;  %v10623_v50 = vld [vmem:[%s14288_s4 + $0x528] ss:$12 sps:$4 sm:$0xff]  }
 0x1d3   :  { %9237 = vmatpush3.bf16.msra.mxu1 %v10603_v59  ;;  %v10628_v59 = vld [vmem:[%s14288_s4 + $0x544] ss:$12 sps:$4 sm:$0xff]  }
 0x1d4   :  { %9238 = vmatprep.subr.bf16.mxu1 %v10607_v14  ;;  %v10626_v14 = vld [vmem:[%s14288_s4 + $0x540] ss:$12 sps:$4 sm:$0xff]  }
 0x1d5   :  { %3457 = vmatpush1.bf16.msra.mxu0 %v10584_v1  ;;  %v10633_v1 = vld [vmem:[%s14288_s4 + $0x55c] ss:$12 sps:$4 sm:$0xff]  }
 0x1d6   :  { %4019 = vmatmul.mubr.bf16.gmra.mrb[88].mxu1 %v11980_v8  ;;  %3458 = vmatprep.subr.bf16.mxu0 %v10591_v38  ;;  %v10650_v38 = vld [vmem:[%s14288_s4 + $0x668] ss:$12 sps:$4 sm:$0xff]  }
 0x1d7   :  { %4026 = vmatprep.mubr.bf16.mxu1 %v12055_v42  ;;  %9239 = vmatpush3.bf16.msra.mxu1 %v10608_v53  ;;  %v10654_v53 = vld [vmem:[%s14288_s4 + $0x740] ss:$12 sps:$4 sm:$0xff]  }
 0x1d8   :  { %9240 = vmatprep.subr.bf16.mxu1 %v10612_v61  ;;  %v10631_v61 = vld [vmem:[%s14288_s4 + $0x558] ss:$12 sps:$4 sm:$0xff]  }
 0x1d9   :  { %3459 = vmatpush1.bf16.msra.mxu0 %v10589_v21  ;;  %v10638_v21 = vld [vmem:[%s14288_s4 + $0x574] ss:$12 sps:$4 sm:$0xff]  }
 0x1da   :  { %3521 = vmatprep.subr.bf16.mxu0 %v10596_v57  ;;  %v10636_v57 = vld [vmem:[%s14288_s4 + $0x570] ss:$12 sps:$4 sm:$0xff]  }
 0x1db   :  { %9241 = vmatpush3.bf16.msra.mxu1 %v10613_v41  ;;  %v10643_v41 = vld [vmem:[%s14288_s4 + $0x58c] ss:$12 sps:$4 sm:$0xff]  }
 0x1dc   :  { %3461 = vmatmul.mubr.bf16.vlgmr.msra.gmra.mrb[28].mxu0 %v11777_v18  ;;  %9278 = vmatprep.subr.bf16.mxu1 %v10629_v37  ;;  %v10604_v18 = vld [vmem:[%s14288_s4 + $0x4b0] ss:$12 sps:$4 sm:$0xff]   ;;  %v10660_v37 = vld [vmem:[%s14288_s4 + $0x698] ss:$12 sps:$4 sm:$0xff]  }
 0x1dd   :  { %3470 = vmatprep.mubr.bf16.mxu0 %v11859_v34  ;;  %3522 = vmatpush1.bf16.msra.mxu0 %v10594_v47  ;;  %v10611_v34 = vld [vmem:[%s14288_s4 + $0x4cc] ss:$12 sps:$4 sm:$0xff]   ;;  %v10664_v47 = vld [vmem:[%s14288_s4 + $0x770] ss:$12 sps:$4 sm:$0xff]  }
 0x1de   :  { %4027 = vmatmul.mubr.bf16.gmra.mrb[92].mxu1 %v12049_v31  ;;  %3523 = vmatprep.subr.bf16.mxu0 %v10601_v51  ;;  %v10641_v51 = vld [vmem:[%s14288_s4 + $0x588] ss:$12 sps:$4 sm:$0xff]  }
 0x1df   :  { %4034 = vmatprep.mubr.bf16.mxu1 %v12122_v49 }
 0x1e1   :  { %3524 = vmatpush1.bf16.msra.mxu0 %v10599_v3  ;;  %v10648_v3 = vld [vmem:[%s14288_s4 + $0x5a4] ss:$12 sps:$4 sm:$0xff]  }
 0x1e2   :  { %3525 = vmatprep.subr.bf16.mxu0 %v10606_v9  ;;  %v10646_v9 = vld [vmem:[%s14288_s4 + $0x5a0] ss:$12 sps:$4 sm:$0xff]  }
 0x1e4   :  { %3471 = vmatmul.mubr.bf16.gmra.mrb[32].mxu0 %v11851_v17  ;;  %v10614_v17 = vld [vmem:[%s14288_s4 + $0x4e0] ss:$12 sps:$4 sm:$0xff]  }
 0x1e5   :  { %3480 = vmatprep.mubr.bf16.mxu0 %v11923_v45  ;;  %3526 = vmatpush1.bf16.msra.mxu0 %v10604_v18  ;;  %v10619_v45 = vld [vmem:[%s14288_s4 + $0x4fc] ss:$12 sps:$4 sm:$0xff]  }
 0x1e6   :  { %4035 = vmatmul.mubr.bf16.gmra.mrb[96].mxu1 %v12115_v0  ;;  %3527 = vmatprep.subr.bf16.mxu0 %v10611_v34  ;;  %v10653_v18 = vld [vmem:[%s14288_s4 + $0x5bc] ss:$12 sps:$4 sm:$0xff]   ;;  %v10651_v34 = vld [vmem:[%s14288_s4 + $0x5b8] ss:$12 sps:$4 sm:$0xff]  }
 0x1e7   :  { %4075 = vmatprep.mubr.bf16.mxu1 %v11792_v28 }
 0x1e9   :  { %3528 = vmatpush1.bf16.msra.mxu0 %v10609_v58  ;;  %v10658_v58 = vld [vmem:[%s14288_s4 + $0x5d4] ss:$12 sps:$4 sm:$0xff]  }
 0x1ea   :  { %3529 = vmatprep.subr.bf16.mxu0 %v10616_v11  ;;  %v10656_v11 = vld [vmem:[%s14288_s4 + $0x5d0] ss:$12 sps:$4 sm:$0xff]  }
 0x1ec   :  { %3481 = vmatmul.mubr.bf16.gmra.mrb[36].mxu0 %v11917_v32  ;;  %v10635_v32 = vld [vmem:[%s14288_s4 + $0x620] ss:$12 sps:$4 sm:$0xff]  }
 0x1ed   :  { %3490 = vmatprep.mubr.bf16.mxu0 %v11988_v39  ;;  %3530 = vmatpush1.bf16.msra.mxu0 %v10614_v17  ;;  %v10639_v39 = vld [vmem:[%s14288_s4 + $0x6f8] ss:$12 sps:$4 sm:$0xff]  }
 0x1ee   :  { %4076 = vmatmul.mubr.bf16.vlgmr.msra.gmra.mrb[100].mxu1 %v11779_v19  ;;  %3531 = vmatprep.subr.bf16.mxu0 %v10619_v45  ;;  %v10663_v17 = vld [vmem:[%s14288_s4 + $0x5ec] ss:$12 sps:$4 sm:$0xff]   ;;  %v10661_v45 = vld [vmem:[%s14288_s4 + $0x5e8] ss:$12 sps:$4 sm:$0xff]  }
 0x1ef   :  { %4083 = vmatprep.mubr.bf16.mxu1 %v11861_v35  ;;  %9279 = vmatpush3.bf16.msra.mxu1 %v10630_v44  ;;  %v10668_v44 = vld [vmem:[%s14288_s4 + $0x604] ss:$12 sps:$4 sm:$0xff]  }
 0x1f0   :  { %9280 = vmatprep.subr.bf16.mxu1 %v10634_v60  ;;  %v14335_v60 = vld [vmem:[#allocation6_spill] sm:$0xff] }
 0x1f1   :  { %3532 = vmatpush1.bf16.msra.mxu0 %v10617_v27  ;;  %v10666_v27 = vld [vmem:[%s14288_s4 + $0x600] ss:$12 sps:$4 sm:$0xff]  }
 0x1f2   :  { %3533 = vmatprep.subr.bf16.mxu0 %v10622_v23  ;;  %v10671_v23 = vld [vmem:[%s14288_s4 + $0x61c] ss:$12 sps:$4 sm:$0xff]  }
 0x1f3   :  { %9281 = vmatpush3.bf16.msra.mxu1 %v10635_v32  ;;  %v10682_v32 = vld [vmem:[%s14288_s4 + $0x788] ss:$12 sps:$4 sm:$0xff]  }
 0x1f4   :  { %3491 = vmatmul.mubr.bf16.gmra.mrb[40].mxu0 %v11980_v8  ;;  %9282 = vmatprep.subr.bf16.mxu1 %v10639_v39  ;;  %v10645_v8 = vld [vmem:[%s14288_s4 + $0x650] ss:$12 sps:$4 sm:$0xff]   ;;  %v10686_v39 = vld [vmem:[%s14288_s4 + $0x860] ss:$12 sps:$4 sm:$0xff]  }
 0x1f5   :  { %3500 = vmatprep.mubr.bf16.mxu0 %v12055_v42  ;;  %3534 = vmatpush1.bf16.msra.mxu0 %v10620_v24  ;;  %v10649_v42 = vld [vmem:[%s14288_s4 + $0x728] ss:$12 sps:$4 sm:$0xff]   ;;  %v10669_v24 = vld [vmem:[%s14288_s4 + $0x618] ss:$12 sps:$4 sm:$0xff]  }
 0x1f6   :  { %4084 = vmatmul.mubr.bf16.gmra.mrb[104].mxu1 %v11853_v22  ;;  %3535 = vmatprep.subr.bf16.mxu0 %v10625_v7  ;;  %v14336_v7 = vld [vmem:[#allocation5_spill] sm:$0xff] }
 0x1f7   :  { %4091 = vmatprep.mubr.bf16.mxu1 %v11925_v46  ;;  %9283 = vmatpush3.bf16.msra.mxu1 %v10640_v43  ;;  %v10674_v43 = vld [vmem:[%s14288_s4 + $0x634] ss:$12 sps:$4 sm:$0xff]  }
 0x1f8   :  { %9284 = vmatprep.subr.bf16.mxu1 %v10644_v62  ;;  %v14337_v62 = vld [vmem:[#allocation8_spill] sm:$0xff] }
 0x1f9   :  { %3536 = vmatpush1.bf16.msra.mxu0 %v10623_v50  ;;  %v10672_v50 = vld [vmem:[%s14288_s4 + $0x630] ss:$12 sps:$4 sm:$0xff]  }
 0x1fa   :  { %3537 = vmatprep.subr.bf16.mxu0 %v10628_v59  ;;  %v10677_v59 = vld [vmem:[%s14288_s4 + $0x64c] ss:$12 sps:$4 sm:$0xff]  }
 0x1fb   :  { %9285 = vmatpush3.bf16.msra.mxu1 %v10645_v8  ;;  %v10692_v8 = vld [vmem:[%s14288_s4 + $0x7b8] ss:$12 sps:$4 sm:$0xff]  }
 0x1fc   :  { %3501 = vmatmul.mubr.bf16.gmra.mrb[44].mxu0 %v12049_v31  ;;  %9286 = vmatprep.subr.bf16.mxu1 %v10649_v42  ;;  %v10655_v31 = vld [vmem:[%s14288_s4 + $0x680] ss:$12 sps:$4 sm:$0xff]   ;;  %v10696_v42 = vld [vmem:[%s14288_s4 + $0x890] ss:$12 sps:$4 sm:$0xff]  }
 0x1fd   :  { %3510 = vmatprep.mubr.bf16.mxu0 %v12122_v49  ;;  %3538 = vmatpush1.bf16.msra.mxu0 %v10626_v14  ;;  %v10659_v49 = vld [vmem:[%s14288_s4 + $0x758] ss:$12 sps:$4 sm:$0xff]   ;;  %v10675_v14 = vld [vmem:[%s14288_s4 + $0x648] ss:$12 sps:$4 sm:$0xff]  }
 0x1fe   :  { %4092 = vmatmul.mubr.bf16.gmra.mrb[108].mxu1 %v11919_v33  ;;  %3539 = vmatprep.subr.bf16.mxu0 %v10633_v1  ;;  %v14338_v1 = vld [vmem:[#allocation7_spill] sm:$0xff] }
 0x1ff   :  { %4099 = vmatprep.mubr.bf16.mxu1 %v11990_v12  ;;  %9287 = vmatpush3.bf16.msra.mxu1 %v10650_v38  ;;  %v10680_v38 = vld [vmem:[%s14288_s4 + $0x664] ss:$12 sps:$4 sm:$0xff]  }
 0x200   :  { %9288 = vmatprep.subr.bf16.mxu1 %v10654_v53  ;;  %v10697_v53 = vld [vmem:[%s14288_s4 + $0x7d0] ss:$12 sps:$4 sm:$0xff]  }
 0x201   :  { %3540 = vmatpush1.bf16.msra.mxu0 %v10631_v61  ;;  %v10678_v61 = vld [vmem:[%s14288_s4 + $0x660] ss:$12 sps:$4 sm:$0xff]  }
 0x202   :  { %3541 = vmatprep.subr.bf16.mxu0 %v10638_v21  ;;  %v10685_v21 = vld [vmem:[%s14288_s4 + $0x67c] ss:$12 sps:$4 sm:$0xff]  }
 0x203   :  { %9289 = vmatpush3.bf16.msra.mxu1 %v10655_v31  ;;  %v10702_v31 = vld [vmem:[%s14288_s4 + $0x7e8] ss:$12 sps:$4 sm:$0xff]  }
 0x204   :  { %3511 = vmatmul.mubr.bf16.gmra.mrb[48].mxu0 %v12115_v0  ;;  %9290 = vmatprep.subr.bf16.mxu1 %v10659_v49  ;;  %v10665_v0 = vld [vmem:[%s14288_s4 + $0x6b0] ss:$12 sps:$4 sm:$0xff]   ;;  %v10706_v49 = vld [vmem:[%s14288_s4 + $0x8c0] ss:$12 sps:$4 sm:$0xff]  }
 0x205   :  { %3542 = vmatpush1.bf16.msra.mxu0 %v10636_v57  ;;  %3553 = vmatprep.mubr.bf16.mxu0 %v11792_v28  ;;  %v10681_v28 = vld [vmem:[%s14288_s4 + $0x848] ss:$12 sps:$4 sm:$0xff]   ;;  %v10683_v57 = vld [vmem:[%s14288_s4 + $0x678] ss:$12 sps:$4 sm:$0xff]  }
 0x206   :  { %4100 = vmatmul.mubr.bf16.gmra.mrb[112].mxu1 %v11982_v4  ;;  %3543 = vmatprep.subr.bf16.mxu0 %v10643_v41  ;;  %v14340_v41 = vld [vmem:[#allocation9_spill] sm:$0xff] }
 0x207   :  { %4107 = vmatprep.mubr.bf16.mxu1 %v12057_v13  ;;  %9291 = vmatpush3.bf16.msra.mxu1 %v10660_v37  ;;  %v10690_v37 = vld [vmem:[%s14288_s4 + $0x694] ss:$12 sps:$4 sm:$0xff]  }
 0x208   :  { %9292 = vmatprep.subr.bf16.mxu1 %v10664_v47 }
 0x209   :  { %3544 = vmatpush1.bf16.msra.mxu0 %v10641_v51 }
 0x20a   :  { %3545 = vmatprep.subr.bf16.mxu0 %v10648_v3  ;;  %v10711_v3 = vld [vmem:[%s14288_s4 + $0x8d8] ss:$12 sps:$4 sm:$0xff]  }
 0x20b   :  { %9293 = vmatpush3.bf16.msra.mxu1 %v10665_v0 }
 0x20c   :  { %9330 = vmatprep.subr.bf16.mxu1 %v10681_v28 }
 0x20d   :  { %3546 = vmatpush1.bf16.msra.mxu0 %v10646_v9  ;;  %v10688_v9 = vld [vmem:[%s14288_s4 + $0x690] ss:$12 sps:$4 sm:$0xff]  }
 0x20e   :  { %4108 = vmatmul.mubr.bf16.gmra.mrb[116].mxu1 %v12051_v16  ;;  %3547 = vmatprep.subr.bf16.mxu0 %v10653_v18 }
 0x20f   :  { %4115 = vmatprep.mubr.bf16.mxu1 %v12124_v63 }
 0x211   :  { %3548 = vmatpush1.bf16.msra.mxu0 %v10651_v34  ;;  %v10695_v34 = vld [vmem:[%s14288_s4 + $0x6ac] ss:$12 sps:$4 sm:$0xff]  }
 0x212   :  { %3549 = vmatprep.subr.bf16.mxu0 %v10658_v58 }
 0x215   :  { %3550 = vmatpush1.bf16.msra.mxu0 %v10656_v11  ;;  %v10712_v11 = vld [vmem:[%s14288_s4 + $0x818] ss:$12 sps:$4 sm:$0xff]  }
 0x216   :  { %4116 = vmatmul.mubr.bf16.gmra.mrb[120].mxu1 %v12119_v5  ;;  %3551 = vmatprep.subr.bf16.mxu0 %v10663_v17  ;;  %v10716_v17 = vld [vmem:[%s14288_s4 + $0x8f0] ss:$12 sps:$4 sm:$0xff]  }
 0x217   :  { %4156 = vmatprep.mubr.bf16.mxu1 %v14335_v60 }
 0x219   :  { %3552 = vmatpush1.bf16.msra.mxu0 %v10661_v45  ;;  %v10693_v45 = vld [vmem:[%s14288_s4 + $0x6a8] ss:$12 sps:$4 sm:$0xff]  }
 0x21a   :  { %3614 = vmatprep.subr.bf16.mxu0 %v10668_v44  ;;  %v14342_v44 = vld [vmem:[#allocation11_spill] sm:$0xff] }
 0x21c   :  { %3554 = vmatmul.mubr.bf16.vlgmr.msra.gmra.mrb[28].mxu0 %v11779_v19  ;;  %v10687_v19 = vld [vmem:[%s14288_s4 + $0x7a0] ss:$12 sps:$4 sm:$0xff]  }
 0x21d   :  { %3563 = vmatprep.mubr.bf16.mxu0 %v11861_v35  ;;  %3615 = vmatpush1.bf16.msra.mxu0 %v10666_v27  ;;  %v10691_v35 = vld [vmem:[%s14288_s4 + $0x878] ss:$12 sps:$4 sm:$0xff]  }
 0x21e   :  { %4157 = vmatmul.mubr.bf16.vlgmr.msra.gmra.mrb[124].mxu1 %v14336_v7  ;;  %3616 = vmatprep.subr.bf16.mxu0 %v10671_v23  ;;  %v10700_v27 = vld [vmem:[%s14288_s4 + $0x6c4] ss:$12 sps:$4 sm:$0xff]  }
 0x21f   :  { %4164 = vmatprep.mubr.bf16.mxu1 %v14337_v62  ;;  %9331 = vmatpush3.bf16.msra.mxu1 %v10682_v32  ;;  %v10698_v32 = vld [vmem:[%s14288_s4 + $0x6c0] ss:$12 sps:$4 sm:$0xff]  }
 0x220   :  { %9332 = vmatprep.subr.bf16.mxu1 %v10686_v39 }
 0x221   :  { %3617 = vmatpush1.bf16.msra.mxu0 %v10669_v24 }
 0x222   :  { %3618 = vmatprep.subr.bf16.mxu0 %v10674_v43  ;;  %v10705_v43 = vld [vmem:[%s14288_s4 + $0x6dc] ss:$12 sps:$4 sm:$0xff]  }
 0x223   :  { %9333 = vmatpush3.bf16.msra.mxu1 %v10687_v19 }
 0x224   :  { %3564 = vmatmul.mubr.bf16.gmra.mrb[32].mxu0 %v11853_v22  ;;  %9334 = vmatprep.subr.bf16.mxu1 %v10691_v35  ;;  %v14339_v22 = vld [vmem:[#allocation10_spill] sm:$0xff] }
 0x225   :  { %3573 = vmatprep.mubr.bf16.mxu0 %v11925_v46  ;;  %3619 = vmatpush1.bf16.msra.mxu0 %v10672_v50  ;;  %v10701_v46 = vld [vmem:[%s14288_s4 + $0x8a8] ss:$12 sps:$4 sm:$0xff]   ;;  %v10703_v50 = vld [vmem:[%s14288_s4 + $0x6d8] ss:$12 sps:$4 sm:$0xff]  }
 0x226   :  { %4165 = vmatmul.mubr.bf16.gmra.mrb[128].mxu1 %v14338_v1  ;;  %3620 = vmatprep.subr.bf16.mxu0 %v10677_v59  ;;  %v10710_v59 = vld [vmem:[%s14288_s4 + $0x6f4] ss:$12 sps:$4 sm:$0xff]  }
 0x227   :  { %4172 = vmatprep.mubr.bf16.mxu1 %v14339_v22  ;;  %9335 = vmatpush3.bf16.msra.mxu1 %v10692_v8 }
 0x228   :  { %9336 = vmatprep.subr.bf16.mxu1 %v10696_v42 }
 0x229   :  { %3621 = vmatpush1.bf16.msra.mxu0 %v10675_v14 }
 0x22a   :  { %3622 = vmatprep.subr.bf16.mxu0 %v10680_v38  ;;  %v10715_v38 = vld [vmem:[%s14288_s4 + $0x70c] ss:$12 sps:$4 sm:$0xff]  }
 0x22b   :  { %9337 = vmatpush3.bf16.msra.mxu1 %v10697_v53 }
 0x22c   :  { %3574 = vmatmul.mubr.bf16.gmra.mrb[36].mxu0 %v11919_v33  ;;  %9338 = vmatprep.subr.bf16.mxu1 %v10701_v46  ;;  %v14341_v33 = vld [vmem:[#allocation12_spill] sm:$0xff] }
 0x22d   :  { %3583 = vmatprep.mubr.bf16.mxu0 %v11990_v12  ;;  %3623 = vmatpush1.bf16.msra.mxu0 %v10678_v61  ;;  %v9086_v47 = vpop.f32.mrb[28].mxu1  ;;  %v10707_v12 = vld [vmem:[%s14288_s4 + $0x800] ss:$12 sps:$4 sm:$0xff]   ;;  %v10713_v61 = vld [vmem:[%s14288_s4 + $0x708] ss:$12 sps:$4 sm:$0xff]  }
 0x22e   :  { %4173 = vmatmul.mubr.bf16.gmra.mrb[132].mxu1 %v14340_v41  ;;  %3624 = vmatprep.subr.bf16.mxu0 %v10685_v21  ;;  %v9087_v51 = vpop.f32.mrb[29].mxu1  ;;  %v10720_v21 = vld [vmem:[%s14288_s4 + $0x724] ss:$12 sps:$4 sm:$0xff]  }
 0x22f   :  { %4180 = vmatprep.mubr.bf16.mxu1 %v14341_v33  ;;  %9339 = vmatpush3.bf16.msra.mxu1 %v10702_v31  ;;  %v12638_v0 = vadd.f32 %v9087_v51, %v9086_v47  ;;  %v9089_v28 = vpop.f32.mrb[30].mxu1  ;;  %v10721_v51 = vld [vmem:[%s14288_s4 + $0x738] ss:$12 sps:$4 sm:$0xff]  }
 0x230   :  { %9340 = vmatprep.subr.bf16.mxu1 %v10706_v49  ;;  %v9090_v18 = vpop.f32.mrb[31].mxu1 }
 0x231   :  { %3625 = vmatpush1.bf16.msra.mxu0 %v10683_v57  ;;  %v12646_v58 = vadd.f32 %v9090_v18, %v9089_v28  ;;  %v10724_v18 = vld [vmem:[%s14288_s4 + $0x750] ss:$12 sps:$4 sm:$0xff]  }
 0x232   :  { %3626 = vmatprep.subr.bf16.mxu0 %v10690_v37  ;;  %v10723_v37 = vld [vmem:[%s14288_s4 + $0x73c] ss:$12 sps:$4 sm:$0xff]  }
 0x233   :  { %9341 = vmatpush3.bf16.msra.mxu1 %v10707_v12 }
 0x234   :  { %3584 = vmatmul.mubr.bf16.gmra.mrb[40].mxu0 %v11982_v4  ;;  %9342 = vmatprep.subr.bf16.mxu1 %v10711_v3  ;;  %v10717_v4 = vld [vmem:[%s14288_s4 + $0x830] ss:$12 sps:$4 sm:$0xff]   ;;  %v10726_v3 = vld [vmem:[%s14288_s4 + $0x754] ss:$12 sps:$4 sm:$0xff]  }
 0x235   :  { %3593 = vmatprep.mubr.bf16.mxu0 %v12057_v13  ;;  %3627 = vmatpush1.bf16.msra.mxu0 %v10688_v9 }
 0x236   :  { %4181 = vmatmul.mubr.bf16.gmra.mrb[136].mxu1 %v14342_v44  ;;  %3628 = vmatprep.subr.bf16.mxu0 %v10695_v34  ;;  %v9092_v13 = vpop.f32.mrb[32].mxu1 }
 0x237   :  { %4188 = vmatprep.mubr.bf16.mxu1 %v12069_v29  ;;  %9343 = vmatpush3.bf16.msra.mxu1 %v10712_v11  ;;  %v9093_v23 = vpop.f32.mrb[33].mxu1 }
 0x238   :  { %9344 = vmatprep.subr.bf16.mxu1 %v10716_v17  ;;  %v12670_v39 = vadd.f32 %v9093_v23, %v9092_v13  ;;  %v9095_v24 = vpop.f32.mrb[34].mxu1  ;;  %v10729_v17 = vld [vmem:[%s14288_s4 + $0x76c] ss:$12 sps:$4 sm:$0xff]   ;;  %v10732_v13 = vld [vmem:[%s14288_s4 + $0x784] ss:$12 sps:$4 sm:$0xff]  }
 0x239   :  { %3629 = vmatpush1.bf16.msra.mxu0 %v10693_v45  ;;  %v9096_v19 = vpop.f32.mrb[35].mxu1 }
 0x23a   :  { %3630 = vmatprep.subr.bf16.mxu0 %v10700_v27  ;;  %v12675_v35 = vadd.f32 %v9096_v19, %v9095_v24  ;;  %v10730_v24 = vld [vmem:[%s14288_s4 + $0x780] ss:$12 sps:$4 sm:$0xff]  }
 0x23b   :  { %9345 = vmatpush3.bf16.msra.mxu1 %v10717_v4  ;;  %v10727_v4 = vld [vmem:[%s14288_s4 + $0x768] ss:$12 sps:$4 sm:$0xff]  }
 0x23c   :  { %3594 = vmatmul.mubr.bf16.gmra.mrb[44].mxu0 %v12051_v16  ;;  %v10708_v16 = vld [vmem:[%s14288_s4 + $0x6f0] ss:$12 sps:$4 sm:$0xff]  }
 0x23d   :  { %3603 = vmatprep.mubr.bf16.mxu0 %v12124_v63  ;;  %3631 = vmatpush1.bf16.msra.mxu0 %v10698_v32 }
 0x23e   :  { %4189 = vmatmul.mubr.bf16.gmra.mrb[140].mxu1 %v12061_v56  ;;  %3632 = vmatprep.subr.bf16.mxu0 %v10705_v43  ;;  %v9098_v8 = vpop.f32.mrb[36].mxu1 }
 0x23f   :  { %4196 = vmatprep.mubr.bf16.mxu1 %v12131_v55  ;;  %v9099_v42 = vpop.f32.mrb[37].mxu1 }
 0x240   :  { %v12690_v63 = vadd.f32 %v9099_v42, %v9098_v8  ;;  %v9101_v14 = vpop.f32.mrb[38].mxu1  ;;  %v10733_v42 = vld [vmem:[%s14288_s4 + $0x798] ss:$12 sps:$4 sm:$0xff]  }
 0x241   :  { %3633 = vmatpush1.bf16.msra.mxu0 %v10703_v50  ;;  %v9102_v53 = vpop.f32.mrb[39].mxu1  ;;  %v10735_v50 = vld [vmem:[%s14288_s4 + $0x79c] ss:$12 sps:$4 sm:$0xff]  }
 0x242   :  { %3634 = vmatprep.subr.bf16.mxu0 %v10710_v59  ;;  %v12695_v46 = vadd.f32 %v9102_v53, %v9101_v14 }
 0x244   :  { %3604 = vmatmul.mubr.bf16.gmra.mrb[48].mxu0 %v12119_v5  ;;  %v10718_v5 = vld [vmem:[%s14288_s4 + $0x720] ss:$12 sps:$4 sm:$0xff]  }
 0x245   :  { %3635 = vmatpush1.bf16.msra.mxu0 %v10708_v16  ;;  %3646 = vmatprep.mubr.bf16.mxu0 %v14335_v60  ;;  %v10738_v16 = vld [vmem:[%s14288_s4 + $0x7b4] ss:$12 sps:$4 sm:$0xff]  }
 0x246   :  { %4197 = vmatmul.mubr.bf16.gmra.mrb[144].mxu1 %v12126_v26  ;;  %3636 = vmatprep.subr.bf16.mxu0 %v10715_v38 }
 0x247   :  { %4237 = vmatprep.mubr.bf16.mxu1 %v11818_v54  ;;  %v9104_v31 = vpop.f32.mrb[40].mxu1 }
 0x248   :  { %v9105_v49 = vpop.f32.mrb[41].mxu1 }
 0x249   :  { %3637 = vmatpush1.bf16.msra.mxu0 %v10713_v61  ;;  %v12710_v60 = vadd.f32 %v9105_v49, %v9104_v31  ;;  %v9107_v57 = vpop.f32.mrb[42].mxu1  ;;  %v10741_v61 = vld [vmem:[%s14288_s4 + $0x7cc] ss:$12 sps:$4 sm:$0xff]  }
 0x24a   :  { %3638 = vmatprep.subr.bf16.mxu0 %v10720_v21  ;;  %v9108_v47 = vpop.f32.mrb[43].mxu1 }
 0x24b   :  { %v12715_v12 = vadd.f32 %v9108_v47, %v9107_v57 }
 0x24d   :  { %3639 = vmatpush1.bf16.msra.mxu0 %v10718_v5  ;;  %v10739_v5 = vld [vmem:[%s14288_s4 + $0x7c8] ss:$12 sps:$4 sm:$0xff]  }
 0x24e   :  { %4238 = vmatmul.mubr.bf16.vlgmr.msra.gmra.mrb[148].mxu1 %v11796_v30  ;;  %3640 = vmatprep.subr.bf16.mxu0 %v10723_v37  ;;  %v10742_v37 = vld [vmem:[%s14288_s4 + $0x7e0] ss:$12 sps:$4 sm:$0xff]  }
 0x24f   :  { %4245 = vmatprep.mubr.bf16.mxu1 %v11887_v2  ;;  %v9110_v28 = vpop.f32.mrb[44].mxu1 }
 0x250   :  { %v9111_v9 = vpop.f32.mrb[45].mxu1 }
 0x251   :  { %3641 = vmatpush1.bf16.msra.mxu0 %v10721_v51  ;;  %v12728_v34 = vadd.f32 %v9111_v9, %v9110_v28  ;;  %v9113_v11 = vpop.f32.mrb[46].mxu1 }
 0x252   :  { %3642 = vmatprep.subr.bf16.mxu0 %v10726_v3  ;;  %v9114_v45 = vpop.f32.mrb[47].mxu1 }
 0x253   :  { %v12733_v27 = vadd.f32 %v9114_v45, %v9113_v11 }
 0x255   :  { %3643 = vmatpush1.bf16.msra.mxu0 %v10724_v18  ;;  %v10745_v18 = vld [vmem:[%s14288_s4 + $0x7f8] ss:$12 sps:$4 sm:$0xff]  }
 0x256   :  { %4246 = vmatmul.mubr.bf16.gmra.mrb[152].mxu1 %v11865_v40  ;;  %3644 = vmatprep.subr.bf16.mxu0 %v10729_v17 }
 0x257   :  { %4253 = vmatprep.mubr.bf16.mxu1 %v11950_v25  ;;  %v9116_v23 = vpop.f32.mrb[48].mxu1 }
 0x258   :  { %v9117_v32 = vpop.f32.mrb[49].mxu1 }
 0x259   :  { %3645 = vmatpush1.bf16.msra.mxu0 %v10727_v4  ;;  %v12746_v43 = vadd.f32 %v9117_v32, %v9116_v23  ;;  %v9119_v19 = vpop.f32.mrb[50].mxu1 }
 0x25a   :  { %3707 = vmatprep.subr.bf16.mxu0 %v10732_v13  ;;  %v9120_v59 = vpop.f32.mrb[51].mxu1 }
 0x25b   :  { %v12751_v8 = vadd.f32 %v9120_v59, %v9119_v19  ;;  %v10756_v19 = vld [vmem:[%s14288_s4 + $0x844] ss:$12 sps:$4 sm:$0xff]   ;;  %v10759_v59 = vld [vmem:[%s14288_s4 + $0x85c] ss:$12 sps:$4 sm:$0xff]  }
 0x25c   :  { %3647 = vmatmul.mubr.bf16.vlgmr.msra.gmra.mrb[28].mxu0 %v14336_v7  ;;  %v10736_v7 = vld [vmem:[%s14288_s4 + $0x7b0] ss:$12 sps:$4 sm:$0xff]  }
 0x25d   :  { %3656 = vmatprep.mubr.bf16.mxu0 %v14337_v62  ;;  %3708 = vmatpush1.bf16.msra.mxu0 %v10730_v24  ;;  %v10751_v24 = vld [vmem:[%s14288_s4 + $0x828] ss:$12 sps:$4 sm:$0xff]  }
 0x25e   :  { %4254 = vmatmul.mubr.bf16.gmra.mrb[156].mxu1 %v11929_v48  ;;  %3709 = vmatprep.subr.bf16.mxu0 %v10735_v50 }
 0x25f   :  { %4261 = vmatprep.mubr.bf16.mxu1 %v12016_v52  ;;  %v9138_v14 = vpop.f32.mrb[52].mxu1 }
 0x260   :  { %v9139_v38 = vpop.f32.mrb[53].mxu1 }
 0x261   :  { %3710 = vmatpush1.bf16.msra.mxu0 %v10733_v42  ;;  %v9140_v62 = vadd.f32 %v9139_v38, %v9138_v14  ;;  %v9141_v53 = vpop.f32.mrb[54].mxu1 }
 0x262   :  { %3711 = vmatprep.subr.bf16.mxu0 %v10738_v16  ;;  %v9142_v21 = vpop.f32.mrb[55].mxu1 }
 0x263   :  { %v12770_v31 = vadd.f32 %v9140_v62, %v12638_v0  ;;  %v9143_v49 = vadd.f32 %v9142_v21, %v9141_v53  ;;  %v10744_v0 = vld [vmem:[%s14288_s4 + $0x7e4] ss:$12 sps:$4 sm:$0xff]   ;;  %v10762_v62 = vld [vmem:[%s14288_s4 + $0x874] ss:$12 sps:$4 sm:$0xff]  }
 0x264   :  { %3657 = vmatmul.mubr.bf16.gmra.mrb[32].mxu0 %v14338_v1 }
 0x265   :  { %3666 = vmatprep.mubr.bf16.mxu0 %v14339_v22  ;;  %3712 = vmatpush1.bf16.msra.mxu0 %v10736_v7  ;;  %v12778_v57 = vadd.f32 %v9143_v49, %v12646_v58  ;;  %v10747_v58 = vld [vmem:[%s14288_s4 + $0x7fc] ss:$12 sps:$4 sm:$0xff]   ;;  %v10757_v7 = vld [vmem:[%s14288_s4 + $0x858] ss:$12 sps:$4 sm:$0xff]  }
 0x266   :  { %4262 = vmatmul.mubr.bf16.gmra.mrb[160].mxu1 %v11994_v15  ;;  %3713 = vmatprep.subr.bf16.mxu0 %v10741_v61  ;;  %v10765_v61 = vld [vmem:[%s14288_s4 + $0x88c] ss:$12 sps:$4 sm:$0xff]  }
 0x267   :  { %4269 = vmatprep.mubr.bf16.mxu1 %v12079_v10  ;;  %v9144_v1 = vpop.f32.mrb[56].mxu1 }
 0x268   :  { %v9145_v22 = vpop.f32.mrb[57].mxu1 }
 0x269   :  { %3714 = vmatpush1.bf16.msra.mxu0 %v10739_v5  ;;  %v9146_v47 = vadd.f32 %v9145_v22, %v9144_v1  ;;  %v9147_v51 = vpop.f32.mrb[58].mxu1  ;;  %v10763_v1 = vld [vmem:[%s14288_s4 + $0x888] ss:$12 sps:$4 sm:$0xff]   ;;  %v10768_v22 = vld [vmem:[%s14288_s4 + $0x8a4] ss:$12 sps:$4 sm:$0xff]  }
 0x26a   :  { %3715 = vmatprep.subr.bf16.mxu0 %v10744_v0  ;;  %v9148_v3 = vpop.f32.mrb[59].mxu1 }
 0x26b   :  { %v12792_v28 = vadd.f32 %v9146_v47, %v12670_v39  ;;  %v9149_v9 = vadd.f32 %v9148_v3, %v9147_v51  ;;  %v10750_v39 = vld [vmem:[%s14288_s4 + $0x814] ss:$12 sps:$4 sm:$0xff]  }
 0x26c   :  { %3667 = vmatmul.mubr.bf16.gmra.mrb[36].mxu0 %v14340_v41 }
 0x26d   :  { %3676 = vmatprep.mubr.bf16.mxu0 %v14341_v33  ;;  %3716 = vmatpush1.bf16.msra.mxu0 %v10742_v37  ;;  %v12800_v11 = vadd.f32 %v9149_v9, %v12675_v35  ;;  %v10748_v33 = vld [vmem:[%s14288_s4 + $0x810] ss:$12 sps:$4 sm:$0xff]   ;;  %v10753_v35 = vld [vmem:[%s14288_s4 + $0x82c] ss:$12 sps:$4 sm:$0xff]  }
 0x26e   :  { %4270 = vmatmul.mubr.bf16.gmra.mrb[164].mxu1 %v12065_v36  ;;  %3717 = vmatprep.subr.bf16.mxu0 %v10747_v58 }
 0x26f   :  { %4277 = vmatprep.mubr.bf16.mxu1 %v12141_v6  ;;  %v9150_v41 = vpop.f32.mrb[60].mxu1 }
 0x270   :  { %v9151_v17 = vpop.f32.mrb[61].mxu1 }
 0x271   :  { %3718 = vmatpush1.bf16.msra.mxu0 %v10745_v18  ;;  %v9152_v45 = vadd.f32 %v9151_v17, %v9150_v41  ;;  %v9153_v4 = vpop.f32.mrb[62].mxu1  ;;  %v10777_v17 = vld [vmem:[%s14288_s4 + $0x8ec] ss:$12 sps:$4 sm:$0xff]  }
 0x272   :  { %3719 = vmatprep.subr.bf16.mxu0 %v10750_v39  ;;  %v9154_v13 = vpop.f32.mrb[63].mxu1  ;;  %v10774_v39 = vld [vmem:[%s14288_s4 + $0x8d4] ss:$12 sps:$4 sm:$0xff]  }
 0x273   :  { %v12815_v23 = vadd.f32 %v9152_v45, %v12690_v63  ;;  %v9155_v32 = vadd.f32 %v9154_v13, %v9153_v4  ;;  %v10775_v13 = vld [vmem:[%s14288_s4 + $0x8e8] ss:$12 sps:$4 sm:$0xff]  }
 0x274   :  { %3677 = vmatmul.mubr.bf16.gmra.mrb[40].mxu0 %v14342_v44 }
 0x275   :  { %3686 = vmatprep.mubr.bf16.mxu0 %v12069_v29  ;;  %3720 = vmatpush1.bf16.msra.mxu0 %v10748_v33  ;;  %v12826_v44 = vadd.f32 %v9155_v32, %v12695_v46  ;;  %v10754_v29 = vld [vmem:[%s14288_s4 + $0x840] ss:$12 sps:$4 sm:$0xff]   ;;  %v10772_v33 = vld [vmem:[%s14288_s4 + $0x8d0] ss:$12 sps:$4 sm:$0xff]  }
 0x276   :  { %4278 = vmatmul.mubr.bf16.gmra.mrb[168].mxu1 %v12136_v20  ;;  %3721 = vmatprep.subr.bf16.mxu0 %v10753_v35 }
 0x279   :  { %v9156_v63 = vpop.f32.mrb[64].mxu1  ;;  %3722 = vmatpush1.bf16.msra.mxu0 %v10751_v24 }
 0x27a   :  { %v9157_v50 = vpop.f32.mrb[65].mxu1  ;;  %3723 = vmatprep.subr.bf16.mxu0 %v10756_v19 }
 0x27b   :  { %v9158_v42 = vadd.f32 %v9157_v50, %v9156_v63  ;;  %v9159_v16 = vpop.f32.mrb[66].mxu1 }
 0x27c   :  { %v9160_v14 = vpop.f32.mrb[67].mxu1  ;;  %3687 = vmatmul.mubr.bf16.gmra.mrb[44].mxu0 %v12061_v56 }
 0x27d   :  { %v12836_v46 = vadd.f32 %v9158_v42, %v12710_v60  ;;  %v9161_v38 = vadd.f32 %v9160_v14, %v9159_v16  ;;  %3696 = vmatprep.mubr.bf16.mxu0 %v12131_v55  ;;  %3724 = vmatpush1.bf16.msra.mxu0 %v10754_v29  ;;  %v10760_v60 = vld [vmem:[%s14288_s4 + $0x870] ss:$12 sps:$4 sm:$0xff]   ;;  %v10778_v29 = vld [vmem:[%s14291_s7 + $0x80] sm:$0xff]  }
 0x27e   :  { %3725 = vmatprep.subr.bf16.mxu0 %v10759_v59  ;;  %v11071_v59 = vmov 0.0  }
 0x27f   :  { %v12846_v53 = vadd.f32 %v9161_v38, %v12715_v12  ;;  %v10779_v38 = vld [vmem:[%s14291_s7 + $0x88] sm:$0xff]  }
 0x281   :  { %v9162_v56 = vpop.f32.mrb[68].mxu1  ;;  %3726 = vmatpush1.bf16.msra.mxu0 %v10757_v7 }
 0x282   :  { %v9163_v55 = vpop.f32.mrb[69].mxu1  ;;  %3727 = vmatprep.subr.bf16.mxu0 %v10762_v62 }
 0x283   :  { %v9164_v21 = vadd.f32 %v9163_v55, %v9162_v56  ;;  %v9165_v49 = vpop.f32.mrb[70].mxu1 }
 0x284   :  { %v9166_v5 = vpop.f32.mrb[71].mxu1  ;;  %3697 = vmatmul.mubr.bf16.gmra.mrb[48].mxu0 %v12126_v26 }
 0x285   :  { %v12856_v12 = vadd.f32 %v9164_v21, %v12728_v34  ;;  %v9167_v0 = vadd.f32 %v9166_v5, %v9165_v49  ;;  %3728 = vmatpush1.bf16.msra.mxu0 %v10760_v60  ;;  %3739 = vmatprep.mubr.bf16.mxu0 %v11818_v54  ;;  %v10766_v34 = vld [vmem:[%s14288_s4 + $0x8a0] ss:$12 sps:$4 sm:$0xff]   ;;  %v10771_v54 = vld [vmem:[%s14288_s4 + $0x8bc] ss:$12 sps:$4 sm:$0xff]  }
 0x286   :  { %3729 = vmatprep.subr.bf16.mxu0 %v10765_v61 }
 0x287   :  { %v12866_v37 = vadd.f32 %v9167_v0, %v12733_v27  ;;  %v10769_v27 = vld [vmem:[%s14288_s4 + $0x8b8] ss:$12 sps:$4 sm:$0xff]  }
 0x289   :  { %v9168_v26 = vpop.f32.mrb[72].mxu1  ;;  %3730 = vmatpush1.bf16.msra.mxu0 %v10763_v1 }
 0x28a   :  { %v9169_v47 = vpop.f32.mrb[73].mxu1  ;;  %3731 = vmatprep.subr.bf16.mxu0 %v10768_v22 }
 0x28b   :  { %v9170_v51 = vadd.f32 %v9169_v47, %v9168_v26  ;;  %v9171_v58 = vpop.f32.mrb[74].mxu1 }
 0x28c   :  { %v9172_v3 = vpop.f32.mrb[75].mxu1 }
 0x28d   :  { %v12878_v9 = vadd.f32 %v9170_v51, %v12746_v43  ;;  %v9173_v18 = vadd.f32 %v9172_v3, %v9171_v58  ;;  %3732 = vmatpush1.bf16.msra.mxu0 %v10766_v34  ;;  %v10785_v51 = vld [vmem:[%s14291_s7 + $0xb8] sm:$0xff]  }
 0x28e   :  { %3733 = vmatprep.subr.bf16.mxu0 %v10771_v54 }
 0x28f   :  { %v12884_v41 = vadd.f32 %v9173_v18, %v12751_v8 }
 0x291   :  { %v9190_v43 = vpop.f32.mrb[76].mxu1  ;;  %3734 = vmatpush1.bf16.msra.mxu0 %v10769_v27 }
 0x292   :  { %v9191_v35 = vpop.f32.mrb[77].mxu1  ;;  %3735 = vmatprep.subr.bf16.mxu0 %v10774_v39 }
 0x293   :  { %v9192_v45 = vadd.f32 %v9191_v35, %v9190_v43  ;;  %v9193_v4 = vpop.f32.mrb[78].mxu1 }
 0x294   :  { %v9194_v8 = vpop.f32.mrb[79].mxu1 }
 0x295   :  { %v12896_v32 = vadd.f32 %v9192_v45, %v12770_v31  ;;  %v9195_v24 = vadd.f32 %v9194_v8, %v9193_v4  ;;  %3736 = vmatpush1.bf16.msra.mxu0 %v10772_v33 }
 0x296   :  { %3737 = vmatprep.subr.bf16.mxu0 %v10777_v17 }
 0x297   :  { %v12899_v19 = vadd.f32 %v9195_v24, %v12778_v57 }
 0x299   :  { %v9196_v63 = vpop.f32.mrb[80].mxu1  ;;  %3738 = vmatpush1.bf16.msra.mxu0 %v10775_v13 }
 0x29a   :  { %v9197_v50 = vpop.f32.mrb[81].mxu1  ;;  %9791 = vmatprep.subr.bf16.mxu0 %v11071_v59 }
 0x29b   :  { %v9198_v42 = vadd.f32 %v9197_v50, %v9196_v63  ;;  %v9199_v16 = vpop.f32.mrb[82].mxu1 }
 0x29c   :  { %v9200_v31 = vpop.f32.mrb[83].mxu1  ;;  %3740 = vmatmul.mubr.bf16.vlgmr.msra.gmra.mrb[28].mxu0 %v11796_v30  ;;  %v10780_v30 = vld [vmem:[%s14291_s7 + $0x90] sm:$0xff]  }
 0x29d   :  { %v12907_v14 = vadd.f32 %v9198_v42, %v12792_v28  ;;  %v9201_v57 = vadd.f32 %v9200_v31, %v9199_v16  ;;  %3749 = vmatprep.mubr.bf16.mxu0 %v11887_v2  ;;  %9792 = vmatpush3.bf16.msra.mxu0 %v10778_v29 }
 0x29e   :  { %9793 = vmatprep.subr.bf16.mxu0 %v11071_v59 }
 0x29f   :  { %v12915_v7 = vadd.f32 %v9201_v57, %v12800_v11  ;;  %v10781_v11 = vld [vmem:[%s14291_s7 + $0x98] sm:$0xff]  }
 0x2a1   :  { %v9202_v62 = vpop.f32.mrb[84].mxu1  ;;  %9794 = vmatpush3.bf16.msra.mxu0 %v10779_v38 }
 0x2a2   :  { %v9203_v28 = vpop.f32.mrb[85].mxu1  ;;  %9795 = vmatprep.subr.bf16.mxu0 %v11071_v59 }
 0x2a3   :  { %v9204_v2 = vadd.f32 %v9203_v28, %v9202_v62  ;;  %v9205_v56 = vpop.f32.mrb[86].mxu1  ;;  %v10794_v62 = vld [vmem:[%s14291_s7 + $0x100] sm:$0xff]   ;;  %v10799_v28 = vld [vmem:[%s14291_s7 + $0xc8] sm:$0xff]  }
 0x2a4   :  { %v9206_v60 = vpop.f32.mrb[87].mxu1  ;;  %3750 = vmatmul.mubr.bf16.gmra.mrb[32].mxu0 %v11865_v40  ;;  %v10782_v40 = vld [vmem:[%s14291_s7 + $0xa0] sm:$0xff]   ;;  %9382 = vmatprep.subr.bf16.mxu1 %v10794_v62 }
 0x2a5   :  { %v12923_v55 = vadd.f32 %v9204_v2, %v12815_v23  ;;  %v9207_v61 = vadd.f32 %v9206_v60, %v9205_v56  ;;  %3759 = vmatprep.mubr.bf16.mxu0 %v11950_v25  ;;  %9796 = vmatpush3.bf16.msra.mxu0 %v10780_v30  ;;  %v10801_v56 = vld [vmem:[%s14291_s7 + $0x110] sm:$0xff]  }
 0x2a6   :  { %9797 = vmatprep.subr.bf16.mxu0 %v11071_v59 }
 0x2a7   :  { %v12931_v21 = vadd.f32 %v9207_v61, %v12826_v44  ;;  %v10783_v44 = vld [vmem:[%s14291_s7 + $0xa8] sm:$0xff]  }
 0x2a9   :  { %v9208_v49 = vpop.f32.mrb[88].mxu1  ;;  %9798 = vmatpush3.bf16.msra.mxu0 %v10781_v11 }
 0x2aa   :  { %v9209_v23 = vpop.f32.mrb[89].mxu1  ;;  %9799 = vmatprep.subr.bf16.mxu0 %v11071_v59 }
 0x2ab   :  { %v9210_v25 = vadd.f32 %v9209_v23, %v9208_v49  ;;  %v9211_v5 = vpop.f32.mrb[90].mxu1  ;;  %v10804_v23 = vld [vmem:[%s14291_s7 + $0x118] sm:$0xff]  }
 0x2ac   :  { %v9212_v0 = vpop.f32.mrb[91].mxu1  ;;  %3760 = vmatmul.mubr.bf16.gmra.mrb[36].mxu0 %v11929_v48  ;;  %v10784_v48 = vld [vmem:[%s14291_s7 + $0xb0] sm:$0xff]  }
 0x2ad   :  { %v12939_v1 = vadd.f32 %v9210_v25, %v12836_v46  ;;  %v9213_v22 = vadd.f32 %v9212_v0, %v9211_v5  ;;  %3769 = vmatprep.mubr.bf16.mxu0 %v12016_v52  ;;  %9800 = vmatpush3.bf16.msra.mxu0 %v10782_v40  ;;  %v10806_v5 = vld [vmem:[%s14291_s7 + $0xd8] sm:$0xff]  }
 0x2ae   :  { %9801 = vmatprep.subr.bf16.mxu0 %v11071_v59 }
 0x2af   :  { %v12947_v26 = vadd.f32 %v9213_v22, %v12846_v53 }
 0x2b1   :  { %v9214_v34 = vpop.f32.mrb[92].mxu1  ;;  %9802 = vmatpush3.bf16.msra.mxu0 %v10783_v44 }
 0x2b2   :  { %v9215_v46 = vpop.f32.mrb[93].mxu1  ;;  %9803 = vmatprep.subr.bf16.mxu0 %v11071_v59 }
 0x2b3   :  { %v9216_v52 = vadd.f32 %v9215_v46, %v9214_v34  ;;  %v9217_v47 = vpop.f32.mrb[94].mxu1 }
 0x2b4   :  { %v9218_v54 = vpop.f32.mrb[95].mxu1  ;;  %3770 = vmatmul.mubr.bf16.gmra.mrb[40].mxu0 %v11994_v15 }
 0x2b5   :  { %v12958_v53 = vadd.f32 %v9216_v52, %v12856_v12  ;;  %v9219_v58 = vadd.f32 %v9218_v54, %v9217_v47  ;;  %3779 = vmatprep.mubr.bf16.mxu0 %v12079_v10  ;;  %9804 = vmatpush3.bf16.msra.mxu0 %v10784_v48  ;;  %v10808_v48 = vld [vmem:[%s14291_s7 + $0x120] sm:$0xff]  }
 0x2b6   :  { %9805 = vmatprep.subr.bf16.mxu0 %v11071_v59 }
 0x2b7   :  { %v12963_v3 = vadd.f32 %v9219_v58, %v12866_v37 }
 0x2b9   :  { %v9220_v27 = vpop.f32.mrb[96].mxu1  ;;  %9806 = vmatpush3.bf16.msra.mxu0 %v10785_v51  ;;  %v10811_v51 = vld [vmem:[%s14291_s7 + $0x128] sm:$0xff]  }
 0x2ba   :  { %v9221_v18 = vpop.f32.mrb[97].mxu1  ;;  %9811 = vmatprep.subr.bf16.mxu0 %v11071_v59 }
 0x2bb   :  { %v9222_v15 = vadd.f32 %v9221_v18, %v9220_v27  ;;  %v9223_v39 = vpop.f32.mrb[98].mxu1 }
 0x2bc   :  { %v9224_v33 = vpop.f32.mrb[99].mxu1  ;;  %3780 = vmatmul.mubr.bf16.gmra.mrb[44].mxu0 %v12065_v36 }
 0x2bd   :  { %v12968_v12 = vadd.f32 %v9222_v15, %v12878_v9  ;;  %v9225_v10 = vadd.f32 %v9224_v33, %v9223_v39  ;;  %3789 = vmatprep.mubr.bf16.mxu0 %v12141_v6 }
 0x2bf   :  { %v12972_v17 = vadd.f32 %v9225_v10, %v12884_v41 }
 0x2c1   :  { %v9242_v37 = vpop.f32.mrb[100].mxu1 }
 0x2c2   :  { %v9243_v43 = vpop.f32.mrb[101].mxu1 }
 0x2c3   :  { %v9244_v35 = vadd.f32 %v9243_v43, %v9242_v37  ;;  %v9245_v45 = vpop.f32.mrb[102].mxu1 }
 0x2c4   :  { %v9246_v4 = vpop.f32.mrb[103].mxu1  ;;  %3790 = vmatmul.mubr.bf16.gmra.mrb[48].mxu0 %v12136_v20 }
 0x2c5   :  { %v12976_v13 = vadd.f32 %v9244_v35, %v12896_v32  ;;  %v9247_v36 = vadd.f32 %v9246_v4, %v9245_v45  ;;  %9807 = vmatprep.mubr.msk.bf16.mxu0 %vm11072_vm0, %v11071_v59  ;;  %v10815_v45 = vld [vmem:[%s14291_s7 + $0x130] sm:$0xff]  }
 0x2c7   :  { %v12981_v6 = vadd.f32 %v9247_v36, %v12899_v19  ;;  %v10816_v36 = vld [vmem:[%s14291_s7 + $0xf0] sm:$0xff]  }
 0x2c9   :  { %v9248_v9 = vpop.f32.mrb[104].mxu1 }
 0x2ca   :  { %v9249_v41 = vpop.f32.mrb[105].mxu1 }
 0x2cb   :  { %v9250_v8 = vadd.f32 %v9249_v41, %v9248_v9  ;;  %v9251_v24 = vpop.f32.mrb[106].mxu1  ;;  %v10818_v41 = vld [vmem:[%s14291_s7 + $0x138] sm:$0xff]  }
 0x2cc   :  { %v9252_v63 = vpop.f32.mrb[107].mxu1 }
 0x2cd   :  { %v12984_v29 = vadd.f32 %v9250_v8, %v12907_v14  ;;  %v9253_v20 = vadd.f32 %v9252_v63, %v9251_v24  ;;  %v10795_v14 = vld [vmem:[%s14291_s7 + $0xc0] sm:$0xff]   ;;  %v10820_v8 = vld [vmem:[%s14291_s7 + $0xf8] sm:$0xff]  }
 0x2ce   :  { %9383 = vmatpush3.bf16.msra.mxu1 %v10795_v14 }
 0x2cf   :  { %v12987_v32 = vadd.f32 %v9253_v20, %v12915_v7  ;;  %v10797_v7 = vld [vmem:[%s14291_s7 + $0x108] sm:$0xff]  }
 0x2d0   :  { %9384 = vmatprep.subr.bf16.mxu1 %v10797_v7 }
 0x2d1   :  { %v9254_v50 = vpop.f32.mrb[108].mxu1 }
 0x2d2   :  { %v9255_v42 = vpop.f32.mrb[109].mxu1  ;;  %9385 = vmatpush3.bf16.msra.mxu1 %v10799_v28 }
 0x2d3   :  { %v9256_v16 = vadd.f32 %v9255_v42, %v9254_v50  ;;  %v9257_v31 = vpop.f32.mrb[110].mxu1  ;;  %9386 = vmatprep.subr.bf16.mxu1 %v10801_v56 }
 0x2d4   :  { %v9258_v57 = vpop.f32.mrb[111].mxu1 }
 0x2d5   :  { %v12990_v19 = vadd.f32 %v9256_v16, %v12923_v55  ;;  %v9259_v38 = vadd.f32 %v9258_v57, %v9257_v31 }
 0x2d7   :  { %v13002_v30 = vadd.f32 %v9259_v38, %v12931_v21  ;;  %v10802_v21 = vld [vmem:[%s14291_s7 + $0xd0] sm:$0xff]  }
 0x2d8   :  { %9387 = vmatpush3.bf16.msra.mxu1 %v10802_v21 }
 0x2d9   :  { %v9260_v2 = vpop.f32.mrb[112].mxu1  ;;  %9388 = vmatprep.subr.bf16.mxu1 %v10804_v23 }
 0x2da   :  { %v9261_v60 = vpop.f32.mrb[113].mxu1 }
 0x2db   :  { %v9262_v55 = vadd.f32 %v9261_v60, %v9260_v2  ;;  %v9263_v61 = vpop.f32.mrb[114].mxu1 }
 0x2dc   :  { %v9264_v11 = vpop.f32.mrb[115].mxu1  ;;  %9389 = vmatpush3.bf16.msra.mxu1 %v10806_v5 }
 0x2dd   :  { %v13014_v49 = vadd.f32 %v9262_v55, %v12939_v1  ;;  %v9265_v40 = vadd.f32 %v9264_v11, %v9263_v61  ;;  %9390 = vmatprep.subr.bf16.mxu1 %v10808_v48 }
 0x2df   :  { %v13020_v25 = vadd.f32 %v9265_v40, %v12947_v26  ;;  %v10809_v26 = vld [vmem:[%s14291_s7 + $0xe0] sm:$0xff]  }
 0x2e0   :  { %9391 = vmatpush3.bf16.msra.mxu1 %v10809_v26 }
 0x2e1   :  { %v9266_v0 = vpop.f32.mrb[116].mxu1  ;;  %9392 = vmatprep.subr.bf16.mxu1 %v10811_v51  ;;  %v13084_v51 = vld [vmem:[%s14292_s5] sm:$0x7] }
 0x2e2   :  { %v9267_v22 = vpop.f32.mrb[117].mxu1 }
 0x2e3   :  { %v9268_v44 = vadd.f32 %v9267_v22, %v9266_v0  ;;  %v9269_v1 = vpop.f32.mrb[118].mxu1 }
 0x2e4   :  { %v9270_v34 = vpop.f32.mrb[119].mxu1 }
 0x2e5   :  { %v13032_v46 = vadd.f32 %v9268_v44, %v12958_v53  ;;  %v9271_v52 = vadd.f32 %v9270_v34, %v9269_v1  ;;  %v10813_v53 = vld [vmem:[%s14291_s7 + $0xe8] sm:$0xff]  }
 0x2e6   :  { %9393 = vmatpush3.bf16.msra.mxu1 %v10813_v53 }
 0x2e7   :  { %v4113_v47 = vadd.f32 %v9271_v52, %v12963_v3  ;;  %9394 = vmatprep.subr.bf16.mxu1 %v10815_v45 }
 0x2e9   :  { %v9272_v54 = vpop.f32.mrb[120].mxu1 }
 0x2ea   :  { %v9273_v58 = vpop.f32.mrb[121].mxu1  ;;  %9395 = vmatpush3.bf16.msra.mxu1 %v10816_v36 }
 0x2eb   :  { %v9274_v27 = vadd.f32 %v9273_v58, %v9272_v54  ;;  %v9275_v18 = vpop.f32.mrb[122].mxu1  ;;  %9396 = vmatprep.subr.bf16.mxu1 %v10818_v41 }
 0x2ec   :  { %v9276_v15 = vpop.f32.mrb[123].mxu1 }
 0x2ed   :  { %v4118_v39 = vadd.f32 %v9274_v27, %v12968_v12  ;;  %v9277_v33 = vadd.f32 %v9276_v15, %v9275_v18  ;;  %v14343_v18 = vld [vmem:[#allocation3_spill] sm:$0xff] }
 0x2ee   :  { %9397 = vmatpush3.bf16.msra.mxu1 %v10820_v8  ;;  %v13093_v15 = vrot.slane %v13084_v51, %v14343_v18 }
 0x2ef   :  { %v4121_v3 = vadd.f32 %v9277_v33, %v12972_v17  ;;  %9771 = vmatprep.subr.bf16.mxu1 %v11071_v59 }
 0x2f1   :  { %v9294_v10 = vpop.f32.mrb[124].mxu1 }
 0x2f2   :  { %v9295_v37 = vpop.f32.mrb[125].mxu1 }
 0x2f3   :  { %v9296_v43 = vadd.f32 %v9295_v37, %v9294_v10  ;;  %v9297_v35 = vpop.f32.mrb[126].mxu1 }
 0x2f4   :  { %v9298_v4 = vpop.f32.mrb[127].mxu1 }
 0x2f5   :  { %v4159_v9 = vadd.f32 %v9296_v43, %v12976_v13  ;;  %v9299_v12 = vadd.f32 %v9298_v4, %v9297_v35 }
 0x2f7   :  { %v4162_v17 = vadd.f32 %v9299_v12, %v12981_v6 }
 0x2f9   :  { %v9300_v24 = vpop.f32.mrb[128].mxu1 }
 0x2fa   :  { %v9301_v63 = vpop.f32.mrb[129].mxu1 }
 0x2fb   :  { %v9302_v20 = vadd.f32 %v9301_v63, %v9300_v24  ;;  %v9303_v50 = vpop.f32.mrb[130].mxu1  ;;  %v10786_v63 = vld [vmem:[%s14291_s7 + $0x200] sm:$0xff]  }
 0x2fc   :  { %v9304_v13 = vpop.f32.mrb[131].mxu1 }
 0x2fd   :  { %v4167_v42 = vadd.f32 %v9302_v20, %v12984_v29  ;;  %v9305_v6 = vadd.f32 %v9304_v13, %v9303_v50 }
 0x2ff   :  { %v4170_v16 = vadd.f32 %v9305_v6, %v12987_v32  ;;  %v10787_v6 = vld [vmem:[%s14291_s7 + $0x208] sm:$0xff]  }
 0x301   :  { %v9306_v31 = vpop.f32.mrb[132].mxu1 }
 0x302   :  { %v9307_v57 = vpop.f32.mrb[133].mxu1 }
 0x303   :  { %v9308_v38 = vadd.f32 %v9307_v57, %v9306_v31  ;;  %v9309_v62 = vpop.f32.mrb[134].mxu1 }
 0x304   :  { %v9310_v14 = vpop.f32.mrb[135].mxu1 }
 0x305   :  { %v13061_v7 = vadd.f32 %v9308_v38, %v12990_v19  ;;  %v9311_v28 = vadd.f32 %v9310_v14, %v9309_v62 }
 0x307   :  { %v13064_v2 = vadd.f32 %v9311_v28, %v13002_v30  ;;  %v10788_v28 = vld [vmem:[%s14291_s7 + $0x210] sm:$0xff]  }
 0x309   :  { %v9312_v56 = vpop.f32.mrb[136].mxu1 }
 0x30a   :  { %v9313_v60 = vpop.f32.mrb[137].mxu1 }
 0x30b   :  { %v9314_v55 = vadd.f32 %v9313_v60, %v9312_v56  ;;  %v9315_v61 = vpop.f32.mrb[138].mxu1 }
 0x30c   :  { %v9316_v29 = vpop.f32.mrb[139].mxu1 }
 0x30d   :  { %v13067_v11 = vadd.f32 %v9314_v55, %v13014_v49  ;;  %v9317_v32 = vadd.f32 %v9316_v29, %v9315_v61  ;;  %v10789_v29 = vld [vmem:[%s14291_s7 + $0x218] sm:$0xff]  }
 0x30f   :  { %v13070_v21 = vadd.f32 %v9317_v32, %v13020_v25 }
 0x311   :  { %v9318_v40 = vpop.f32.mrb[140].mxu1 }
 0x312   :  { %v9319_v23 = vpop.f32.mrb[141].mxu1 }
 0x313   :  { %v9320_v19 = vadd.f32 %v9319_v23, %v9318_v40  ;;  %v9321_v5 = vpop.f32.mrb[142].mxu1 }
 0x314   :  { %v9322_v0 = vpop.f32.mrb[143].mxu1 }
 0x315   :  { %v13073_v30 = vadd.f32 %v9320_v19, %v13032_v46  ;;  %v9323_v22 = vadd.f32 %v9322_v0, %v9321_v5  ;;  %v13089_v46 = vld [vmem:[%s14293_s6] sm:$0x7] }
 0x317   :  { %v13075_v44 = vadd.f32 %v9323_v22, %v4113_v47  ;;  %v10790_v22 = vld [vmem:[%s14291_s7 + $0x220] sm:$0xff]  }
 0x319   :  { %v9324_v1 = vpop.f32.mrb[144].mxu1 }
 0x31a   :  { %v9325_v34 = vpop.f32.mrb[145].mxu1 }
 0x31b   :  { %v9326_v48 = vadd.f32 %v9325_v34, %v9324_v1  ;;  %v9327_v49 = vpop.f32.mrb[146].mxu1 }
 0x31c   :  { %v9328_v26 = vpop.f32.mrb[147].mxu1 }
 0x31d   :  { %v13077_v52 = vadd.f32 %v9326_v48, %v4118_v39  ;;  %v9329_v25 = vadd.f32 %v9328_v26, %v9327_v49  ;;  %v10791_v26 = vld [vmem:[%s14291_s7 + $0x228] sm:$0xff]  }
 0x31f   :  { %v13079_v54 = vadd.f32 %v9329_v25, %v4121_v3  ;;  %v13097_v3 = vrot.slane %v13089_v46, %v14343_v18 }
 0x321   :  { %v9346_v47 = vpop.f32.mrb[148].mxu1 }
 0x322   :  { %v9347_v58 = vpop.f32.mrb[149].mxu1 }
 0x323   :  { %v9348_v27 = vadd.f32 %v9347_v58, %v9346_v47  ;;  %v9349_v53 = vpop.f32.mrb[150].mxu1 }
 0x324   :  { %v9350_v39 = vpop.f32.mrb[151].mxu1 }
 0x325   :  { %v4240_v33 = vadd.f32 %v9348_v27, %v4159_v9  ;;  %v9351_v10 = vadd.f32 %v9350_v39, %v9349_v53 }
 0x327   :  { %v4305_v37 = vmul.f32 %v13093_v15, %v4240_v33  ;;  %v4243_v43 = vadd.f32 %v9351_v10, %v4162_v17  ;;  %v10792_v33 = vld [vmem:[%s14291_s7 + $0x230] sm:$0xff]  }
 0x329   :  { %v4358_v35 = vadd.f32 %v13097_v3, %v4305_v37  ;;  %v4308_v45 = vmul.f32 %v13093_v15, %v4243_v43  ;;  %v9352_v4 = vpop.f32.mrb[152].mxu1 }
 0x32a   :  { %v9353_v36 = vpop.f32.mrb[153].mxu1 }
 0x32b   :  { %v4394_v12 = vmax.f32 %v4358_v35, 0.0  ;;  %v13103_v41 = vadd.f32 %v13097_v3, %v4308_v45  ;;  %v9354_v8 = vadd.f32 %v9353_v36, %v9352_v4  ;;  %v9355_v9 = vpop.f32.mrb[154].mxu1  ;;  %v10793_v4 = vld [vmem:[%s14291_s7 + $0x238] sm:$0xff]  }
 0x32c   :  { %v9356_v24 = vpop.f32.mrb[155].mxu1 }
 0x32d   :  { %v4430_v20 = vpack.c.bf16 %v4394_v12, %v4394_v12  ;;  %v4248_v50 = vadd.f32 %v9354_v8, %v4167_v42  ;;  %v9357_v17 = vadd.f32 %v9356_v24, %v9355_v9 }
 0x32f   :  { %v4251_v13 = vadd.f32 %v9357_v17, %v4170_v16  ;;  %9808 = vmatmul.mubr.bf16.vlgmr.msra.gmra.mrb[52].mxu0 %v4430_v20  ;;  %v4311_v25 = vmul.f32 %v13093_v15, %v4248_v50  ;;  %v10796_v50 = vld [vmem:[%s14291_s7 + $0x2c0] sm:$0xff]  }
 0x330   :  { %9812 = vmatpush3.bf16.msra.mxu0 %v10786_v63  ;;  %9827 = vmatprep.mubr.msk.bf16.mxu0 %vm11072_vm0, %v11071_v59 }
 0x331   :  { %v4314_v31 = vmul.f32 %v13093_v15, %v4251_v13  ;;  %v9358_v57 = vpop.f32.mrb[156].mxu1  ;;  %9813 = vmatprep.subr.bf16.mxu0 %v11071_v59  ;;  %v4364_v10 = vadd.f32 %v13097_v3, %v4311_v25 }
 0x332   :  { %v9359_v38 = vpop.f32.mrb[157].mxu1 }
 0x333   :  { %v13116_v62 = vadd.f32 %v13097_v3, %v4314_v31  ;;  %v9360_v42 = vadd.f32 %v9359_v38, %v9358_v57  ;;  %v9361_v16 = vpop.f32.mrb[158].mxu1  ;;  %v4400_v36 = vmax.f32 %v4364_v10, 0.0  ;;  %v10798_v38 = vld [vmem:[%s14291_s7 + $0x2c8] sm:$0xff]  }
 0x334   :  { %9814 = vmatpush3.bf16.msra.mxu0 %v10787_v6  ;;  %v9362_v14 = vpop.f32.mrb[159].mxu1 }
 0x335   :  { %v4256_v56 = vadd.f32 %v9360_v42, %v13061_v7  ;;  %v9363_v60 = vadd.f32 %v9362_v14, %v9361_v16  ;;  %9815 = vmatprep.subr.bf16.mxu0 %v11071_v59  ;;  %v4981_v6 = vpack.c.bf16 %v4400_v36, %v4400_v36  ;;  %v10803_v14 = vld [vmem:[%s14291_s7 + $0x2d8] sm:$0xff]  }
 0x337   :  { %v4317_v55 = vmul.f32 %v13093_v15, %v4256_v56  ;;  %v4259_v61 = vadd.f32 %v9363_v60, %v13064_v2  ;;  %v10812_v56 = vld [vmem:[%s14291_s7 + $0x2f8] sm:$0xff]   ;;  %v4403_v60 = vmax.f32 %v13116_v62, 0.0 }
 0x338   :  { %9816 = vmatpush3.bf16.msra.mxu0 %v10788_v28  ;;  %v10810_v28 = vld [vmem:[%s14291_s7 + $0x2f0] sm:$0xff]  }
 0x339   :  { %v13129_v32 = vadd.f32 %v13097_v3, %v4317_v55  ;;  %v4320_v40 = vmul.f32 %v13093_v15, %v4259_v61  ;;  %v9364_v23 = vpop.f32.mrb[160].mxu1  ;;  %9817 = vmatprep.subr.bf16.mxu0 %v11071_v59  ;;  %v10814_v55 = vld [vmem:[%s14291_s7 + $0x380] sm:$0xff]  }
 0x33a   :  { %v9365_v7 = vpop.f32.mrb[161].mxu1  ;;  %v14344_v61 = vld [vmem:[#allocation2_spill] sm:$0xff] }
 0x33b   :  { %v13134_v19 = vadd.f32 %v13097_v3, %v4320_v40  ;;  %v9366_v5 = vadd.f32 %v9365_v7, %v9364_v23  ;;  %v9367_v0 = vpop.f32.mrb[162].mxu1  ;;  %v5258_v40 = vpack.c.bf16 %v4403_v60, %v4403_v60  ;;  %v13229_v23 = vrot.slane %v13089_v46, %v14344_v61  ;;  %v10827_v60 = vld [vmem:[%s14291_s7 + $0x3b0] sm:$0xff]  }
 0x33c   :  { %9818 = vmatpush3.bf16.msra.mxu0 %v10789_v29  ;;  %v9368_v2 = vpop.f32.mrb[163].mxu1  ;;  %v13224_v29 = vrot.slane %v13084_v51, %v14344_v61  ;;  %v10828_v61 = vld [vmem:[%s14291_s7 + $0x158] sm:$0xff]  }
 0x33d   :  { %v4264_v1 = vadd.f32 %v9366_v5, %v13067_v11  ;;  %v9369_v34 = vadd.f32 %v9368_v2, %v9367_v0  ;;  %9819 = vmatprep.subr.bf16.mxu0 %v11071_v59  ;;  %v10817_v0 = vld [vmem:[%s14291_s7 + $0x388] sm:$0xff]   ;;  %v14345_v2 = vld [vmem:[#allocation4_spill] sm:$0xff] }
 0x33f   :  { %v4323_v48 = vmul.f32 %v13093_v15, %v4264_v1  ;;  %v4267_v49 = vadd.f32 %v9369_v34, %v13070_v21 }
 0x340   :  { %9820 = vmatpush3.bf16.msra.mxu0 %v10790_v22  ;;  %v13241_v22 = vrot.slane %v13084_v51, %v14345_v2  ;;  %v10819_v51 = vld [vmem:[%s14291_s7 + $0x390] sm:$0xff]  }
 0x341   :  { %v13148_v47 = vadd.f32 %v13097_v3, %v4323_v48  ;;  %v4326_v58 = vmul.f32 %v13093_v15, %v4267_v49  ;;  %v9370_v11 = vpop.f32.mrb[164].mxu1  ;;  %9821 = vmatprep.subr.bf16.mxu0 %v11071_v59 }
 0x342   :  { %v9371_v27 = vpop.f32.mrb[165].mxu1 }
 0x343   :  { %v13153_v18 = vadd.f32 %v13097_v3, %v4326_v58  ;;  %v9372_v21 = vadd.f32 %v9371_v27, %v9370_v11  ;;  %v9373_v53 = vpop.f32.mrb[166].mxu1 }
 0x344   :  { %9822 = vmatpush3.bf16.msra.mxu0 %v10791_v26  ;;  %v9374_v39 = vpop.f32.mrb[167].mxu1  ;;  %v13250_v26 = vrot.slane %v13089_v46, %v14345_v2  ;;  %v10830_v2 = vld [vmem:[%s14291_s7 + $0x160] sm:$0xff]  }
 0x345   :  { %v4272_v37 = vadd.f32 %v9372_v21, %v13073_v30  ;;  %v9375_v43 = vadd.f32 %v9374_v39, %v9373_v53  ;;  %9823 = vmatprep.subr.bf16.mxu0 %v11071_v59 }
 0x347   :  { %v4329_v35 = vmul.f32 %v13093_v15, %v4272_v37  ;;  %v4275_v45 = vadd.f32 %v9375_v43, %v13075_v44 }
 0x348   :  { %9824 = vmatpush3.bf16.msra.mxu0 %v10792_v33  ;;  %v10821_v33 = vld [vmem:[%s14291_s7 + $0x398] sm:$0xff]  }
 0x349   :  { %v13167_v12 = vadd.f32 %v13097_v3, %v4329_v35  ;;  %v4332_v8 = vmul.f32 %v13093_v15, %v4275_v45  ;;  %v9376_v9 = vpop.f32.mrb[168].mxu1  ;;  %9825 = vmatprep.subr.bf16.mxu0 %v11071_v59  ;;  %v10822_v35 = vld [vmem:[%s14291_s7 + $0x140] sm:$0xff]  }
 0x34a   :  { %v9377_v30 = vpop.f32.mrb[169].mxu1 }
 0x34b   :  { %v13172_v24 = vadd.f32 %v13097_v3, %v4332_v8  ;;  %v9378_v63 = vadd.f32 %v9377_v30, %v9376_v9  ;;  %v9379_v44 = vpop.f32.mrb[170].mxu1 }
 0x34c   :  { %9826 = vmatpush3.bf16.msra.mxu0 %v10793_v4  ;;  %v9380_v20 = vpop.f32.mrb[171].mxu1 }
 0x34d   :  { %v4280_v17 = vadd.f32 %v9378_v63, %v13077_v52  ;;  %v9381_v13 = vadd.f32 %v9380_v20, %v9379_v44  ;;  %9831 = vmatprep.subr.bf16.mxu0 %v11071_v59  ;;  %v10823_v44 = vld [vmem:[%s14291_s7 + $0x3a0] sm:$0xff]  }
 0x34f   :  { %v4335_v31 = vmul.f32 %v13093_v15, %v4280_v17  ;;  %v4283_v57 = vadd.f32 %v9381_v13, %v13079_v54  ;;  %9828 = vmatmul.mubr.bf16.vlgmr.msra.gmra.mrb[56].mxu0 %v4981_v6  ;;  %v10800_v54 = vld [vmem:[%s14291_s7 + $0x2d0] sm:$0xff]  }
 0x350   :  { %9832 = vmatpush3.bf16.msra.mxu0 %v10796_v50  ;;  %9847 = vmatprep.mubr.msk.bf16.mxu0 %vm11072_vm0, %v11071_v59  ;;  %v10824_v50 = vld [vmem:[%s14291_s7 + $0x148] sm:$0xff]  }
 0x351   :  { %v13187_v42 = vadd.f32 %v13097_v3, %v4335_v31  ;;  %v4338_v52 = vmul.f32 %v13093_v15, %v4283_v57  ;;  %9833 = vmatprep.subr.bf16.mxu0 %v11071_v59  ;;  %v10805_v15 = vld [vmem:[%s14291_s7 + $0x2e0] sm:$0xff]   ;;  %v10825_v31 = vld [vmem:[%s14291_s7 + $0x3a8] sm:$0xff]  }
 0x353   :  { %v13192_v16 = vadd.f32 %v13097_v3, %v4338_v52  ;;  %v10807_v3 = vld [vmem:[%s14291_s7 + $0x2e8] sm:$0xff]   ;;  %v10826_v52 = vld [vmem:[%s14291_s7 + $0x150] sm:$0xff]  }
 0x354   :  { %9834 = vmatpush3.bf16.msra.mxu0 %v10798_v38 }
 0x355   :  { %9835 = vmatprep.subr.bf16.mxu0 %v11071_v59 }
 0x358   :  { %9836 = vmatpush3.bf16.msra.mxu0 %v10800_v54 }
 0x359   :  { %9837 = vmatprep.subr.bf16.mxu0 %v11071_v59 }
 0x35c   :  { %9838 = vmatpush3.bf16.msra.mxu0 %v10803_v14 }
 0x35d   :  { %9839 = vmatprep.subr.bf16.mxu0 %v11071_v59 }
 0x360   :  { %9840 = vmatpush3.bf16.msra.mxu0 %v10805_v15 }
 0x361   :  { %9841 = vmatprep.subr.bf16.mxu0 %v11071_v59 }
 0x364   :  { %9842 = vmatpush3.bf16.msra.mxu0 %v10807_v3 }
 0x365   :  { %9843 = vmatprep.subr.bf16.mxu0 %v11071_v59 }
 0x368   :  { %9844 = vmatpush3.bf16.msra.mxu0 %v10810_v28 }
 0x369   :  { %9845 = vmatprep.subr.bf16.mxu0 %v11071_v59 }
 0x36c   :  { %9846 = vmatpush3.bf16.msra.mxu0 %v10812_v56 }
 0x36d   :  { %9851 = vmatprep.subr.bf16.mxu0 %v11071_v59 }
 0x36f   :  { %9848 = vmatmul.mubr.bf16.vlgmr.msra.gmra.mrb[60].mxu0 %v5258_v40  ;;  %v3741_v62 = vpop.f32.mrb[28].mxu0 }
 0x370   :  { %9852 = vmatpush3.bf16.msra.mxu0 %v10814_v55  ;;  %v4303_v7 = vmul.f32 %v13224_v29, %v3741_v62  ;;  %v13232_v5 = vpop.f32.mrb[29].mxu0  ;;  %9867 = vmatprep.mubr.msk.bf16.mxu0 %vm11072_vm0, %v11071_v59  ;;  %v10829_v62 = vld [vmem:[%s14291_s7 + $0x3b8] sm:$0xff]  }
 0x371   :  { %v3745_v1 = vpop.f32.mrb[30].mxu0  ;;  %9853 = vmatprep.subr.bf16.mxu0 %v11071_v59 }
 0x372   :  { %v13245_v34 = vadd.f32 %v13229_v23, %v4303_v7  ;;  %v4306_v48 = vmul.f32 %v13224_v29, %v3745_v1  ;;  %v3747_v49 = vpop.f32.mrb[31].mxu0  ;;  %v4406_v1 = vmax.f32 %v13129_v32, 0.0 }
 0x373   :  { %v4307_v25 = vmul.f32 %v13241_v22, %v3747_v49 }
 0x374   :  { %v4359_v58 = vadd.f32 %v13229_v23, %v4306_v48  ;;  %9854 = vmatpush3.bf16.msra.mxu0 %v10817_v0 }
 0x375   :  { %v4360_v11 = vadd.f32 %v13250_v26, %v4307_v25  ;;  %9855 = vmatprep.subr.bf16.mxu0 %v11071_v59 }
 0x376   :  { %v4395_v27 = vmax.f32 %v4359_v58, 0.0 }
 0x377   :  { %v4396_v21 = vmax.f32 %v4360_v11, 0.0  ;;  %v3751_v53 = vpop.f32.mrb[32].mxu0 }
 0x378   :  { %9856 = vmatpush3.bf16.msra.mxu0 %v10819_v51  ;;  %v4309_v46 = vmul.f32 %v13224_v29, %v3751_v53  ;;  %v3753_v39 = vpop.f32.mrb[33].mxu0  ;;  %v4479_v45 = vpack.c.bf16 %v4395_v27, %v4395_v27 }
 0x379   :  { %v4480_v10 = vpack.c.bf16 %v4396_v21, %v4396_v21  ;;  %v4310_v37 = vmul.f32 %v13241_v22, %v3753_v39  ;;  %v3755_v43 = vpop.f32.mrb[34].mxu0  ;;  %9857 = vmatprep.subr.bf16.mxu0 %v11071_v59  ;;  %v10831_v21 = vld [vmem:[%s14291_s7 + $0x440] sm:$0xff]   ;;  %v10832_v39 = vld [vmem:[%s14291_s7 + $0x168] sm:$0xff]  }
 0x37a   :  { %v13269_v4 = vadd.f32 %v13229_v23, %v4309_v46  ;;  %v4312_v36 = vmul.f32 %v13224_v29, %v3755_v43  ;;  %v3757_v8 = vpop.f32.mrb[35].mxu0  ;;  %v5535_v46 = vpack.c.bf16 %v4406_v1, %v4406_v1 }
 0x37b   :  { %v13273_v9 = vadd.f32 %v13250_v26, %v4310_v37  ;;  %v4313_v30 = vmul.f32 %v13241_v22, %v3757_v8  ;;  %4707 = vmatprep.mubr.bf16.mxu1 %v4480_v10 }
 0x37c   :  { %v13277_v63 = vadd.f32 %v13229_v23, %v4312_v36  ;;  %9858 = vmatpush3.bf16.msra.mxu0 %v10821_v33  ;;  %4708 = vmatmul.mubr.bf16.vlgmr.msra.gmra.mrb[172].mxu1 %v4479_v45  ;;  %v4304_v33 = vmul.f32 %v13241_v22, %v13232_v5  ;;  %v10834_v5 = vld [vmem:[%s14291_s7 + $0x170] sm:$0xff]  }
 0x37d   :  { %v13283_v20 = vadd.f32 %v13250_v26, %v4313_v30  ;;  %9772 = vmatpush3.bf16.msra.mxu1 %v10822_v35  ;;  %9859 = vmatprep.subr.bf16.mxu0 %v11071_v59  ;;  %v10833_v35 = vld [vmem:[%s14291_s7 + $0x448] sm:$0xff]  }
 0x37e   :  { %9773 = vmatprep.subr.bf16.mxu1 %v11071_v59  ;;  %9787 = vmatprep.mubr.msk.bf16.mxu1 %vm11072_vm0, %v11071_v59 }
 0x37f   :  { %v3761_v17 = vpop.f32.mrb[36].mxu0 }
 0x380   :  { %9860 = vmatpush3.bf16.msra.mxu0 %v10823_v44  ;;  %v4315_v13 = vmul.f32 %v13224_v29, %v3761_v17  ;;  %v3763_v6 = vpop.f32.mrb[37].mxu0 }
 0x381   :  { %v4316_v57 = vmul.f32 %v13241_v22, %v3763_v6  ;;  %9774 = vmatpush3.bf16.msra.mxu1 %v10824_v50  ;;  %v3765_v38 = vpop.f32.mrb[38].mxu0  ;;  %9861 = vmatprep.subr.bf16.mxu0 %v11071_v59  ;;  %v4357_v50 = vadd.f32 %v13250_v26, %v4304_v33  ;;  %v10847_v33 = vld [vmem:[%s14291_s7 + $0x58] sm:$0xff]  }
 0x382   :  { %v13302_v54 = vadd.f32 %v13229_v23, %v4315_v13  ;;  %v4318_v14 = vmul.f32 %v13224_v29, %v3765_v38  ;;  %v3767_v15 = vpop.f32.mrb[39].mxu0  ;;  %9775 = vmatprep.subr.bf16.mxu1 %v11071_v59  ;;  %v10836_v38 = vld [vmem:[%s14291_s7 + $0x178] sm:$0xff]  }
 0x383   :  { %v13307_v3 = vadd.f32 %v13250_v26, %v4316_v57  ;;  %v4319_v28 = vmul.f32 %v13241_v22, %v3767_v15  ;;  %v4393_v15 = vmax.f32 %v4357_v50, 0.0  ;;  %v10856_v50 = vld [vmem:[%s14291_s7 + $0x70] sm:$0xff]  }
 0x384   :  { %v13311_v56 = vadd.f32 %v13229_v23, %v4318_v14  ;;  %9862 = vmatpush3.bf16.msra.mxu0 %v10825_v31  ;;  %v10835_v31 = vld [vmem:[%s14291_s7 + $0x450] sm:$0xff]   ;;  %v10838_v14 = vld [vmem:[%s14291_s7 + $0x40] sm:$0xff]  }
 0x385   :  { %v13317_v55 = vadd.f32 %v13250_v26, %v4319_v28  ;;  %9776 = vmatpush3.bf16.msra.mxu1 %v10826_v52  ;;  %9863 = vmatprep.subr.bf16.mxu0 %v11071_v59  ;;  %v4397_v52 = vmax.f32 %v13103_v41, 0.0 }
 0x386   :  { %9777 = vmatprep.subr.bf16.mxu1 %v11071_v59 }
 0x387   :  { %v3771_v40 = vpop.f32.mrb[40].mxu0 }
 0x388   :  { %9864 = vmatpush3.bf16.msra.mxu0 %v10827_v60  ;;  %v4321_v7 = vmul.f32 %v13224_v29, %v3771_v40  ;;  %v3773_v0 = vpop.f32.mrb[41].mxu0  ;;  %v10837_v40 = vld [vmem:[%s14291_s7 + $0x458] sm:$0xff]  }
 0x389   :  { %v4322_v48 = vmul.f32 %v13241_v22, %v3773_v0  ;;  %9778 = vmatpush3.bf16.msra.mxu1 %v10828_v61  ;;  %v3775_v49 = vpop.f32.mrb[42].mxu0  ;;  %9865 = vmatprep.subr.bf16.mxu0 %v11071_v59 }
 0x38a   :  { %v13335_v25 = vadd.f32 %v13229_v23, %v4321_v7  ;;  %v4324_v58 = vmul.f32 %v13224_v29, %v3775_v49  ;;  %v3777_v51 = vpop.f32.mrb[43].mxu0  ;;  %9779 = vmatprep.subr.bf16.mxu1 %v11071_v59  ;;  %v10839_v7 = vld [vmem:[%s14291_s7] sm:$0xff]   ;;  %v10841_v49 = vld [vmem:[%s14291_s7 + $0x48] sm:$0xff]  }
 0x38b   :  { %v13340_v11 = vadd.f32 %v13250_v26, %v4322_v48  ;;  %v4325_v27 = vmul.f32 %v13241_v22, %v3777_v51  ;;  %v4481_v48 = vpack.c.bf16 %v4397_v52, %v4397_v52  ;;  %v10858_v52 = vld [vmem:[%s14291_s7 + $0x510] sm:$0xff]  }
 0x38c   :  { %v13344_v32 = vadd.f32 %v13229_v23, %v4324_v58  ;;  %9866 = vmatpush3.bf16.msra.mxu0 %v10829_v62  ;;  %v4429_v58 = vpack.c.bf16 %v4393_v15, %v4393_v15  ;;  %v4392_v15 = vmax.f32 %v13245_v34, 0.0 }
 0x38d   :  { %v13350_v53 = vadd.f32 %v13250_v26, %v4325_v27  ;;  %9780 = vmatpush3.bf16.msra.mxu1 %v10830_v2  ;;  %9871 = vmatprep.subr.bf16.mxu0 %v11071_v59 }
 0x38e   :  { %9781 = vmatprep.subr.bf16.mxu1 %v11071_v59  ;;  %v4428_v34 = vpack.c.bf16 %v4392_v15, %v4392_v15  ;;  %v10891_v15 = vld [vmem:[%s14291_s7 + $0x5e8] sm:$0xff]  }
 0x38f   :  { %9868 = vmatmul.mubr.bf16.vlgmr.msra.gmra.mrb[64].mxu0 %v5535_v46  ;;  %v3781_v10 = vpop.f32.mrb[44].mxu0 }
 0x390   :  { %9872 = vmatpush3.bf16.msra.mxu0 %v10831_v21  ;;  %v4327_v37 = vmul.f32 %v13224_v29, %v3781_v10  ;;  %v3783_v43 = vpop.f32.mrb[45].mxu0  ;;  %9887 = vmatprep.mubr.msk.bf16.mxu0 %vm11072_vm0, %v11071_v59  ;;  %v10846_v10 = vld [vmem:[%s14291_s7 + $0x470] sm:$0xff]  }
 0x391   :  { %v4328_v45 = vmul.f32 %v13241_v22, %v3783_v43  ;;  %9782 = vmatpush3.bf16.msra.mxu1 %v10832_v39  ;;  %v3785_v36 = vpop.f32.mrb[46].mxu0  ;;  %9873 = vmatprep.subr.bf16.mxu0 %v11071_v59  ;;  %v10842_v39 = vld [vmem:[%s14291_s7 + $0x8] sm:$0xff]   ;;  %v10850_v43 = vld [vmem:[%s14291_s7 + $0x60] sm:$0xff]  }
 0x392   :  { %v13371_v8 = vadd.f32 %v13229_v23, %v4327_v37  ;;  %v4330_v30 = vmul.f32 %v13224_v29, %v3785_v36  ;;  %v3787_v44 = vpop.f32.mrb[47].mxu0  ;;  %9783 = vmatprep.subr.bf16.mxu1 %v11071_v59  ;;  %v10848_v37 = vld [vmem:[%s14291_s7 + $0x18] sm:$0xff]   ;;  %v10851_v36 = vld [vmem:[%s14291_s7 + $0x20] sm:$0xff]  }
 0x393   :  { %v13377_v17 = vadd.f32 %v13250_v26, %v4328_v45  ;;  %v4331_v13 = vmul.f32 %v13241_v22, %v3787_v44  ;;  %v4409_v45 = vmax.f32 %v13134_v19, 0.0  ;;  %v10854_v19 = vld [vmem:[%s14291_s7 + $0x28] sm:$0xff]  }
 0x394   :  { %v13381_v6 = vadd.f32 %v13229_v23, %v4330_v30  ;;  %9874 = vmatpush3.bf16.msra.mxu0 %v10833_v35  ;;  %v10849_v35 = vld [vmem:[%s14291_s7 + $0x478] sm:$0xff]   ;;  %v10852_v30 = vld [vmem:[%s14291_s7 + $0x500] sm:$0xff]  }
 0x395   :  { %v13387_v57 = vadd.f32 %v13250_v26, %v4331_v13  ;;  %9784 = vmatpush3.bf16.msra.mxu1 %v10834_v5  ;;  %9875 = vmatprep.subr.bf16.mxu0 %v11071_v59  ;;  %v10853_v5 = vld [vmem:[%s14291_s7 + $0x68] sm:$0xff]   ;;  %v5812_v44 = vpack.c.bf16 %v4409_v45, %v4409_v45  ;;  %v10883_v45 = vld [vmem:[%s14291_s7 + $0x1f8] sm:$0xff]  }
 0x396   :  { %9785 = vmatprep.subr.bf16.mxu1 %v11071_v59  ;;  %v10855_v13 = vld [vmem:[%s14291_s7 + $0x508] sm:$0xff]  }
 0x397   :  { %v3791_v28 = vpop.f32.mrb[48].mxu0 }
 0x398   :  { %9876 = vmatpush3.bf16.msra.mxu0 %v10835_v31  ;;  %v4333_v60 = vmul.f32 %v13224_v29, %v3791_v28  ;;  %v3793_v61 = vpop.f32.mrb[49].mxu0  ;;  %v10857_v31 = vld [vmem:[%s14291_s7 + $0x30] sm:$0xff]   ;;  %v10862_v28 = vld [vmem:[%s14291_s7 + $0x1c0] sm:$0xff]  }
 0x399   :  { %v4334_v62 = vmul.f32 %v13241_v22, %v3793_v61  ;;  %9786 = vmatpush3.bf16.msra.mxu1 %v10836_v38  ;;  %v3795_v41 = vpop.f32.mrb[50].mxu0  ;;  %9877 = vmatprep.subr.bf16.mxu0 %v11071_v59  ;;  %v10859_v38 = vld [vmem:[%s14291_s7 + $0x78] sm:$0xff]  }
 0x39a   :  { %v13408_v0 = vadd.f32 %v13229_v23, %v4333_v60  ;;  %v4336_v2 = vmul.f32 %v13224_v29, %v3795_v41  ;;  %v3797_v1 = vpop.f32.mrb[51].mxu0  ;;  %9413 = vmatprep.subr.bf16.mxu1 %v10838_v14  ;;  %v10840_v29 = vld [vmem:[%s14291_s7 + $0x460] sm:$0xff]   ;;  %v10860_v14 = vld [vmem:[%s14291_s7 + $0x38] sm:$0xff]   ;;  %v4399_v60 = vmax.f32 %v13273_v9, 0.0 }
 0x39b   :  { %v13415_v51 = vadd.f32 %v13250_v26, %v4334_v62  ;;  %v4337_v27 = vmul.f32 %v13241_v22, %v3797_v1  ;;  %v10843_v22 = vld [vmem:[%s14291_s7 + $0x468] sm:$0xff]   ;;  %v10861_v61 = vld [vmem:[%s14291_s7 + $0x518] sm:$0xff]   ;;  %v10864_v9 = vld [vmem:[%s14291_s7 + $0x520] sm:$0xff]  }
 0x39c   :  { %v13419_v21 = vadd.f32 %v13229_v23, %v4336_v2  ;;  %9878 = vmatpush3.bf16.msra.mxu0 %v10837_v40  ;;  %9788 = vmatmul.mubr.bf16.vlgmr.msra.gmra.mrb[176].mxu1 %v4481_v48  ;;  %v10844_v23 = vld [vmem:[%s14291_s7 + $0x50] sm:$0xff]   ;;  %v10863_v40 = vld [vmem:[%s14291_s7 + $0x180] sm:$0xff]   ;;  %v10865_v62 = vld [vmem:[%s14291_s7 + $0x1c8] sm:$0xff]   ;;  %v4980_v41 = vpack.c.bf16 %v4399_v60, %v4399_v60 }
 0x39d   :  { %v13425_v46 = vadd.f32 %v13250_v26, %v4337_v27  ;;  %9414 = vmatpush3.bf16.msra.mxu1 %v10839_v7  ;;  %4931 = vmatprep.mubr.bf16.mxu1 %v4429_v58  ;;  %v10845_v26 = vld [vmem:[%s14291_s7 + $0x10] sm:$0xff]   ;;  %v10866_v7 = vld [vmem:[%s14291_s7 + $0x188] sm:$0xff]   ;;  %v10872_v27 = vld [vmem:[%s14291_s7 + $0x198] sm:$0xff]  }
 0x39e   :  { %9879 = vmatprep.subr.bf16.mxu0 %v11071_v59  ;;  %9415 = vmatprep.subr.bf16.mxu1 %v10841_v49  ;;  %v10868_v2 = vld [vmem:[%s14291_s7 + $0x1d0] sm:$0xff]   ;;  %v10867_v1 = vld [vmem:[%s14291_s7 + $0x528] sm:$0xff]   ;;  %v10871_v49 = vld [vmem:[%s14291_s7 + $0x1d8] sm:$0xff]  }
 0x39f   :  { %v10869_v48 = vld [vmem:[%s14291_s7 + $0x190] sm:$0xff]   ;;  %v10895_v60 = vld [vmem:[%s14291_s7 + $0x298] sm:$0xff]  }
 0x3a0   :  { %9880 = vmatpush3.bf16.msra.mxu0 %v10840_v29  ;;  %v10870_v58 = vld [vmem:[%s14291_s7 + $0x530] sm:$0xff]   ;;  %v10874_v29 = vld [vmem:[%s14291_s7 + $0x1e0] sm:$0xff]  }
 0x3a1   :  { %9416 = vmatpush3.bf16.msra.mxu1 %v10842_v39  ;;  %9881 = vmatprep.subr.bf16.mxu0 %v11071_v59  ;;  %v10873_v39 = vld [vmem:[%s14291_s7 + $0x538] sm:$0xff]  }
 0x3a2   :  { %9417 = vmatprep.subr.bf16.mxu1 %v10844_v23  ;;  %v4412_v23 = vmax.f32 %v13148_v47, 0.0  ;;  %v10878_v47 = vld [vmem:[%s14291_s7 + $0x1a8] sm:$0xff]  }
 0x3a4   :  { %9882 = vmatpush3.bf16.msra.mxu0 %v10843_v22  ;;  %v10875_v22 = vld [vmem:[%s14291_s7 + $0x1a0] sm:$0xff]  }
 0x3a5   :  { %9418 = vmatpush3.bf16.msra.mxu1 %v10845_v26  ;;  %9883 = vmatprep.subr.bf16.mxu0 %v11071_v59  ;;  %v10877_v26 = vld [vmem:[%s14291_s7 + $0x1e8] sm:$0xff]  }
 0x3a6   :  { %9419 = vmatprep.subr.bf16.mxu1 %v10847_v33  ;;  %v10876_v33 = vld [vmem:[%s14291_s7 + $0x5c0] sm:$0xff]  }
 0x3a8   :  { %9884 = vmatpush3.bf16.msra.mxu0 %v10846_v10  ;;  %v6089_v10 = vpack.c.bf16 %v4412_v23, %v4412_v23  ;;  %v4401_v23 = vmax.f32 %v13277_v63, 0.0 }
 0x3a9   :  { %9420 = vmatpush3.bf16.msra.mxu1 %v10848_v37  ;;  %9885 = vmatprep.subr.bf16.mxu0 %v11071_v59  ;;  %v10880_v37 = vld [vmem:[%s14291_s7 + $0x1f0] sm:$0xff]  }
 0x3aa   :  { %9421 = vmatprep.subr.bf16.mxu1 %v10850_v43  ;;  %v10879_v43 = vld [vmem:[%s14291_s7 + $0x5c8] sm:$0xff]   ;;  %v5256_v63 = vpack.c.bf16 %v4401_v23, %v4401_v23 }
 0x3ac   :  { %9886 = vmatpush3.bf16.msra.mxu0 %v10849_v35  ;;  %v10881_v35 = vld [vmem:[%s14291_s7 + $0x1b0] sm:$0xff]  }
 0x3ad   :  { %9422 = vmatpush3.bf16.msra.mxu1 %v10851_v36  ;;  %9891 = vmatprep.subr.bf16.mxu0 %v11071_v59  ;;  %v10882_v36 = vld [vmem:[%s14291_s7 + $0x5d0] sm:$0xff]  }
 0x3ae   :  { %9423 = vmatprep.subr.bf16.mxu1 %v10853_v5  ;;  %v10884_v5 = vld [vmem:[%s14291_s7 + $0x1b8] sm:$0xff]  }
 0x3af   :  { %9888 = vmatmul.mubr.bf16.vlgmr.msra.gmra.mrb[68].mxu0 %v5812_v44  ;;  %v10886_v44 = vld [vmem:[%s14291_s7 + $0x280] sm:$0xff]  }
 0x3b0   :  { %9892 = vmatpush3.bf16.msra.mxu0 %v10852_v30  ;;  %9907 = vmatprep.mubr.msk.bf16.mxu0 %vm11072_vm0, %v11071_v59  ;;  %v4398_v30 = vmax.f32 %v13269_v4, 0.0 }
 0x3b1   :  { %9424 = vmatpush3.bf16.msra.mxu1 %v10854_v19  ;;  %9893 = vmatprep.subr.bf16.mxu0 %v11071_v59  ;;  %v4402_v19 = vmax.f32 %v13283_v20, 0.0  ;;  %v10888_v20 = vld [vmem:[%s14291_s7 + $0x5e0] sm:$0xff]  }
 0x3b2   :  { %9425 = vmatprep.subr.bf16.mxu1 %v10856_v50  ;;  %v10885_v50 = vld [vmem:[%s14291_s7 + $0x5d8] sm:$0xff]   ;;  %v4979_v4 = vpack.c.bf16 %v4398_v30, %v4398_v30 }
 0x3b3   :  { %v10919_v30 = vld [vmem:[%s14291_s7 + $0x358] sm:$0xff]  }
 0x3b4   :  { %9894 = vmatpush3.bf16.msra.mxu0 %v10855_v13  ;;  %v10887_v13 = vld [vmem:[%s14291_s7 + $0x240] sm:$0xff]  }
 0x3b5   :  { %9426 = vmatpush3.bf16.msra.mxu1 %v10857_v31  ;;  %9895 = vmatprep.subr.bf16.mxu0 %v11071_v59  ;;  %v10889_v31 = vld [vmem:[%s14291_s7 + $0x288] sm:$0xff]  }
 0x3b6   :  { %9427 = vmatprep.subr.bf16.mxu1 %v10859_v38  ;;  %v5257_v38 = vpack.c.bf16 %v4402_v19, %v4402_v19 }
 0x3b8   :  { %9896 = vmatpush3.bf16.msra.mxu0 %v10858_v52  ;;  %v10890_v52 = vld [vmem:[%s14291_s7 + $0x248] sm:$0xff]  }
 0x3b9   :  { %9428 = vmatpush3.bf16.msra.mxu1 %v10860_v14  ;;  %9897 = vmatprep.subr.bf16.mxu0 %v11071_v59  ;;  %v10892_v14 = vld [vmem:[%s14291_s7 + $0x290] sm:$0xff]  }
 0x3ba   :  { %9444 = vmatprep.subr.bf16.mxu1 %v10862_v28  ;;  %v10893_v28 = vld [vmem:[%s14291_s7 + $0x250] sm:$0xff]  }
 0x3bc   :  { %9898 = vmatpush3.bf16.msra.mxu0 %v10861_v61  ;;  %4932 = vmatmul.mubr.bf16.vlgmr.msra.gmra.mrb[180].mxu1 %v4428_v34  ;;  %v10894_v61 = vld [vmem:[%s14291_s7 + $0x5f0] sm:$0xff]   ;;  %v10898_v34 = vld [vmem:[%s14291_s7 + $0x2a0] sm:$0xff]  }
 0x3bd   :  { %9445 = vmatpush3.bf16.msra.mxu1 %v10863_v40  ;;  %5207 = vmatprep.mubr.bf16.mxu1 %v4980_v41  ;;  %v10896_v40 = vld [vmem:[%s14291_s7 + $0x258] sm:$0xff]   ;;  %v4415_v41 = vmax.f32 %v13153_v18, 0.0  ;;  %v10902_v18 = vld [vmem:[%s14291_s7 + $0x268] sm:$0xff]  }
 0x3be   :  { %9899 = vmatprep.subr.bf16.mxu0 %v11071_v59  ;;  %9446 = vmatprep.subr.bf16.mxu1 %v10865_v62  ;;  %v10897_v62 = vld [vmem:[%s14291_s7 + $0x5f8] sm:$0xff]  }
 0x3c0   :  { %9900 = vmatpush3.bf16.msra.mxu0 %v10864_v9  ;;  %v10899_v9 = vld [vmem:[%s14291_s7 + $0x260] sm:$0xff]  }
 0x3c1   :  { %9447 = vmatpush3.bf16.msra.mxu1 %v10866_v7  ;;  %9901 = vmatprep.subr.bf16.mxu0 %v11071_v59  ;;  %v10901_v7 = vld [vmem:[%s14291_s7 + $0x2a8] sm:$0xff]  }
 0x3c2   :  { %9448 = vmatprep.subr.bf16.mxu1 %v10868_v2  ;;  %v10900_v2 = vld [vmem:[%s14291_s7 + $0x680] sm:$0xff]  }
 0x3c4   :  { %9902 = vmatpush3.bf16.msra.mxu0 %v10867_v1  ;;  %v6366_v1 = vpack.c.bf16 %v4415_v41, %v4415_v41  ;;  %v10932_v41 = vld [vmem:[%s14291_s7 + $0x338] sm:$0xff]  }
 0x3c5   :  { %9449 = vmatpush3.bf16.msra.mxu1 %v10869_v48  ;;  %9903 = vmatprep.subr.bf16.mxu0 %v11071_v59  ;;  %v10904_v48 = vld [vmem:[%s14291_s7 + $0x2b0] sm:$0xff]  }
 0x3c6   :  { %9450 = vmatprep.subr.bf16.mxu1 %v10871_v49  ;;  %v10903_v49 = vld [vmem:[%s14291_s7 + $0x688] sm:$0xff]  }
 0x3c8   :  { %9904 = vmatpush3.bf16.msra.mxu0 %v10870_v58  ;;  %v10905_v58 = vld [vmem:[%s14291_s7 + $0x270] sm:$0xff]  }
 0x3c9   :  { %9451 = vmatpush3.bf16.msra.mxu1 %v10872_v27  ;;  %9905 = vmatprep.subr.bf16.mxu0 %v11071_v59  ;;  %v10907_v27 = vld [vmem:[%s14291_s7 + $0x2b8] sm:$0xff]  }
 0x3ca   :  { %9452 = vmatprep.subr.bf16.mxu1 %v10874_v29  ;;  %v10906_v29 = vld [vmem:[%s14291_s7 + $0x690] sm:$0xff]  }
 0x3cc   :  { %9906 = vmatpush3.bf16.msra.mxu0 %v10873_v39  ;;  %v10908_v39 = vld [vmem:[%s14291_s7 + $0x278] sm:$0xff]  }
 0x3cd   :  { %9453 = vmatpush3.bf16.msra.mxu1 %v10875_v22  ;;  %9911 = vmatprep.subr.bf16.mxu0 %v11071_v59  ;;  %v10910_v22 = vld [vmem:[%s14291_s7 + $0x340] sm:$0xff]  }
 0x3ce   :  { %9454 = vmatprep.subr.bf16.mxu1 %v10877_v26  ;;  %v4405_v26 = vmax.f32 %v13307_v3, 0.0  ;;  %v10912_v3 = vld [vmem:[%s14291_s7 + $0x6a0] sm:$0xff]  }
 0x3cf   :  { %9908 = vmatmul.mubr.bf16.vlgmr.msra.gmra.mrb[72].mxu0 %v6089_v10  ;;  %v10911_v10 = vld [vmem:[%s14291_s7 + $0x300] sm:$0xff]  }
 0x3d0   :  { %9912 = vmatpush3.bf16.msra.mxu0 %v10876_v33  ;;  %9927 = vmatprep.mubr.msk.bf16.mxu0 %vm11072_vm0, %v11071_v59  ;;  %v10909_v33 = vld [vmem:[%s14291_s7 + $0x698] sm:$0xff]  }
 0x3d1   :  { %9455 = vmatpush3.bf16.msra.mxu1 %v10878_v47  ;;  %9913 = vmatprep.subr.bf16.mxu0 %v11071_v59  ;;  %v10913_v47 = vld [vmem:[%s14291_s7 + $0x348] sm:$0xff]  }
 0x3d2   :  { %9456 = vmatprep.subr.bf16.mxu1 %v10880_v37  ;;  %v5534_v37 = vpack.c.bf16 %v4405_v26, %v4405_v26 }
 0x3d4   :  { %9914 = vmatpush3.bf16.msra.mxu0 %v10879_v43  ;;  %v10914_v43 = vld [vmem:[%s14291_s7 + $0x308] sm:$0xff]  }
 0x3d5   :  { %9457 = vmatpush3.bf16.msra.mxu1 %v10881_v35  ;;  %9915 = vmatprep.subr.bf16.mxu0 %v11071_v59  ;;  %v10916_v35 = vld [vmem:[%s14291_s7 + $0x350] sm:$0xff]  }
 0x3d6   :  { %9458 = vmatprep.subr.bf16.mxu1 %v10883_v45  ;;  %v10915_v45 = vld [vmem:[%s14291_s7 + $0x6a8] sm:$0xff]  }
 0x3d8   :  { %9916 = vmatpush3.bf16.msra.mxu0 %v10882_v36  ;;  %v10917_v36 = vld [vmem:[%s14291_s7 + $0x310] sm:$0xff]  }
 0x3d9   :  { %9459 = vmatpush3.bf16.msra.mxu1 %v10884_v5  ;;  %9917 = vmatprep.subr.bf16.mxu0 %v11071_v59 }
 0x3da   :  { %9475 = vmatprep.subr.bf16.mxu1 %v10886_v44 }
 0x3dc   :  { %9918 = vmatpush3.bf16.msra.mxu0 %v10885_v50  ;;  %5208 = vmatmul.mubr.bf16.vlgmr.msra.gmra.mrb[184].mxu1 %v4979_v4  ;;  %v10918_v50 = vld [vmem:[%s14291_s7 + $0x6b0] sm:$0xff]   ;;  %v10920_v4 = vld [vmem:[%s14291_s7 + $0x318] sm:$0xff]  }
 0x3dd   :  { %9476 = vmatpush3.bf16.msra.mxu1 %v10887_v13  ;;  %5484 = vmatprep.mubr.bf16.mxu1 %v5257_v38  ;;  %v10921_v38 = vld [vmem:[%s14291_s7 + $0x6b8] sm:$0xff]  }
 0x3de   :  { %9919 = vmatprep.subr.bf16.mxu0 %v11071_v59  ;;  %9477 = vmatprep.subr.bf16.mxu1 %v10889_v31  ;;  %v10922_v31 = vld [vmem:[%s14291_s7 + $0x360] sm:$0xff]  }
 0x3e0   :  { %9920 = vmatpush3.bf16.msra.mxu0 %v10888_v20  ;;  %v4418_v20 = vmax.f32 %v13167_v12, 0.0  ;;  %v10926_v12 = vld [vmem:[%s14291_s7 + $0x328] sm:$0xff]  }
 0x3e1   :  { %9478 = vmatpush3.bf16.msra.mxu1 %v10890_v52  ;;  %9921 = vmatprep.subr.bf16.mxu0 %v11071_v59  ;;  %v10923_v52 = vld [vmem:[%s14291_s7 + $0x320] sm:$0xff]  }
 0x3e2   :  { %9479 = vmatprep.subr.bf16.mxu1 %v10892_v14  ;;  %v10925_v14 = vld [vmem:[%s14291_s7 + $0x368] sm:$0xff]  }
 0x3e4   :  { %9922 = vmatpush3.bf16.msra.mxu0 %v10891_v15  ;;  %v10924_v15 = vld [vmem:[%s14291_s7 + $0x740] sm:$0xff]  }
 0x3e5   :  { %9480 = vmatpush3.bf16.msra.mxu1 %v10893_v28  ;;  %9923 = vmatprep.subr.bf16.mxu0 %v11071_v59  ;;  %v6643_v28 = vpack.c.bf16 %v4418_v20, %v4418_v20  ;;  %v10958_v20 = vld [vmem:[%s14291_s7 + $0x4c0] sm:$0xff]  }
 0x3e6   :  { %9481 = vmatprep.subr.bf16.mxu1 %v10895_v60  ;;  %v10928_v60 = vld [vmem:[%s14291_s7 + $0x370] sm:$0xff]  }
 0x3e8   :  { %9924 = vmatpush3.bf16.msra.mxu0 %v10894_v61  ;;  %v10927_v61 = vld [vmem:[%s14291_s7 + $0x748] sm:$0xff]  }
 0x3e9   :  { %9482 = vmatpush3.bf16.msra.mxu1 %v10896_v40  ;;  %9925 = vmatprep.subr.bf16.mxu0 %v11071_v59  ;;  %v10929_v40 = vld [vmem:[%s14291_s7 + $0x330] sm:$0xff]  }
 0x3ea   :  { %9483 = vmatprep.subr.bf16.mxu1 %v10898_v34  ;;  %v10931_v34 = vld [vmem:[%s14291_s7 + $0x378] sm:$0xff]  }
 0x3ec   :  { %9926 = vmatpush3.bf16.msra.mxu0 %v10897_v62  ;;  %v10930_v62 = vld [vmem:[%s14291_s7 + $0x750] sm:$0xff]  }
 0x3ed   :  { %9484 = vmatpush3.bf16.msra.mxu1 %v10899_v9  ;;  %9931 = vmatprep.subr.bf16.mxu0 %v11071_v59  ;;  %v4404_v9 = vmax.f32 %v13302_v54, 0.0 }
 0x3ee   :  { %9485 = vmatprep.subr.bf16.mxu1 %v10901_v7  ;;  %v10934_v7 = vld [vmem:[%s14291_s7 + $0x400] sm:$0xff]  }
 0x3ef   :  { %9928 = vmatmul.mubr.bf16.vlgmr.msra.gmra.mrb[76].mxu0 %v6366_v1  ;;  %v10933_v1 = vld [vmem:[%s14291_s7 + $0x758] sm:$0xff]   ;;  %v5533_v54 = vpack.c.bf16 %v4404_v9, %v4404_v9 }
 0x3f0   :  { %9932 = vmatpush3.bf16.msra.mxu0 %v10900_v2  ;;  %9947 = vmatprep.mubr.msk.bf16.mxu0 %vm11072_vm0, %v11071_v59  ;;  %v4408_v2 = vmax.f32 %v13317_v55, 0.0  ;;  %v10936_v55 = vld [vmem:[%s14291_s7 + $0x760] sm:$0xff]  }
 0x3f1   :  { %9486 = vmatpush3.bf16.msra.mxu1 %v10902_v18  ;;  %9933 = vmatprep.subr.bf16.mxu0 %v11071_v59  ;;  %v10935_v18 = vld [vmem:[%s14291_s7 + $0x3c0] sm:$0xff]  }
 0x3f2   :  { %9487 = vmatprep.subr.bf16.mxu1 %v10904_v48  ;;  %v10937_v48 = vld [vmem:[%s14291_s7 + $0x408] sm:$0xff]  }
 0x3f4   :  { %9934 = vmatpush3.bf16.msra.mxu0 %v10903_v49  ;;  %v5811_v49 = vpack.c.bf16 %v4408_v2, %v4408_v2  ;;  %v10966_v2 = vld [vmem:[%s14291_s7 + $0x830] sm:$0xff]  }
 0x3f5   :  { %9488 = vmatpush3.bf16.msra.mxu1 %v10905_v58  ;;  %9935 = vmatprep.subr.bf16.mxu0 %v11071_v59  ;;  %v10938_v58 = vld [vmem:[%s14291_s7 + $0x3c8] sm:$0xff]  }
 0x3f6   :  { %9489 = vmatprep.subr.bf16.mxu1 %v10907_v27  ;;  %v10940_v27 = vld [vmem:[%s14291_s7 + $0x410] sm:$0xff]  }
 0x3f8   :  { %9936 = vmatpush3.bf16.msra.mxu0 %v10906_v29  ;;  %v10939_v29 = vld [vmem:[%s14291_s7 + $0x768] sm:$0xff]  }
 0x3f9   :  { %9490 = vmatpush3.bf16.msra.mxu1 %v10908_v39  ;;  %9937 = vmatprep.subr.bf16.mxu0 %v11071_v59  ;;  %v10941_v39 = vld [vmem:[%s14291_s7 + $0x3d0] sm:$0xff]  }
 0x3fa   :  { %9506 = vmatprep.subr.bf16.mxu1 %v10910_v22  ;;  %v10943_v22 = vld [vmem:[%s14291_s7 + $0x418] sm:$0xff]  }
 0x3fc   :  { %9938 = vmatpush3.bf16.msra.mxu0 %v10909_v33  ;;  %5485 = vmatmul.mubr.bf16.vlgmr.msra.gmra.mrb[188].mxu1 %v5256_v63 }
 0x3fd   :  { %9507 = vmatpush3.bf16.msra.mxu1 %v10911_v10  ;;  %5761 = vmatprep.mubr.bf16.mxu1 %v5534_v37  ;;  %v10942_v10 = vld [vmem:[%s14291_s7 + $0x770] sm:$0xff]   ;;  %v10946_v37 = vld [vmem:[%s14291_s7 + $0x420] sm:$0xff]  }
 0x3fe   :  { %9939 = vmatprep.subr.bf16.mxu0 %v11071_v59  ;;  %9508 = vmatprep.subr.bf16.mxu1 %v10913_v47  ;;  %v10944_v47 = vld [vmem:[%s14291_s7 + $0x3d8] sm:$0xff]  }
 0x400   :  { %9940 = vmatpush3.bf16.msra.mxu0 %v10912_v3  ;;  %v10945_v3 = vld [vmem:[%s14291_s7 + $0x778] sm:$0xff]  }
 0x401   :  { %9509 = vmatpush3.bf16.msra.mxu1 %v10914_v43  ;;  %9941 = vmatprep.subr.bf16.mxu0 %v11071_v59  ;;  %v4421_v43 = vmax.f32 %v13172_v24, 0.0  ;;  %v10950_v24 = vld [vmem:[%s14291_s7 + $0x3e8] sm:$0xff]  }
 0x402   :  { %v13696_v5 = vpop.f32.mrb[52].mxu0  ;;  %9510 = vmatprep.subr.bf16.mxu1 %v10916_v35  ;;  %v10947_v35 = vld [vmem:[%s14291_s7 + $0x3e0] sm:$0xff]  }
 0x403   :  { %v9809_v44 = vpop.f32.mrb[53].mxu0 }
 0x404   :  { %9942 = vmatpush3.bf16.msra.mxu0 %v10915_v45  ;;  %v4976_v19 = vpop.f32.mrb[54].mxu0  ;;  %v10949_v45 = vld [vmem:[%s14291_s7 + $0x428] sm:$0xff]   ;;  %v10952_v44 = vld [vmem:[%s14291_s7 + $0x430] sm:$0xff]  }
 0x405   :  { %v9810_v13 = vpop.f32.mrb[55].mxu0  ;;  %9511 = vmatpush3.bf16.msra.mxu1 %v10917_v36  ;;  %9943 = vmatprep.subr.bf16.mxu0 %v11071_v59  ;;  %v10948_v36 = vld [vmem:[%s14291_s7 + $0x800] sm:$0xff]   ;;  %v10951_v19 = vld [vmem:[%s14291_s7 + $0x808] sm:$0xff]  }
 0x406   :  { %9512 = vmatprep.subr.bf16.mxu1 %v10919_v30  ;;  %v6920_v30 = vpack.c.bf16 %v4421_v43, %v4421_v43  ;;  %v10955_v13 = vld [vmem:[%s14291_s7 + $0x438] sm:$0xff]   ;;  %v10978_v43 = vld [vmem:[%s14291_s7 + $0x8d0] sm:$0xff]  }
 0x408   :  { %9944 = vmatpush3.bf16.msra.mxu0 %v10918_v50  ;;  %v10953_v50 = vld [vmem:[%s14291_s7 + $0x3f0] sm:$0xff]  }
 0x409   :  { %9513 = vmatpush3.bf16.msra.mxu1 %v10920_v4  ;;  %9945 = vmatprep.subr.bf16.mxu0 %v11071_v59  ;;  %v10954_v4 = vld [vmem:[%s14291_s7 + $0x810] sm:$0xff]  }
 0x40a   :  { %9514 = vmatprep.subr.bf16.mxu1 %v10922_v31  ;;  %v10956_v31 = vld [vmem:[%s14291_s7 + $0x3f8] sm:$0xff]  }
 0x40c   :  { %9946 = vmatpush3.bf16.msra.mxu0 %v10921_v38  ;;  %v4407_v38 = vmax.f32 %v13311_v56, 0.0 }
 0x40d   :  { %9515 = vmatpush3.bf16.msra.mxu1 %v10923_v52  ;;  %9951 = vmatprep.subr.bf16.mxu0 %v11071_v59  ;;  %v4411_v52 = vmax.f32 %v13340_v11, 0.0  ;;  %v10960_v11 = vld [vmem:[%s14291_s7 + $0x820] sm:$0xff]  }
 0x40e   :  { %9516 = vmatprep.subr.bf16.mxu1 %v10925_v14  ;;  %v10957_v14 = vld [vmem:[%s14291_s7 + $0x818] sm:$0xff]   ;;  %v5810_v56 = vpack.c.bf16 %v4407_v38, %v4407_v38  ;;  %v10989_v38 = vld [vmem:[%s14291_s7 + $0x550] sm:$0xff]  }
 0x40f   :  { %9948 = vmatmul.mubr.bf16.vlgmr.msra.gmra.mrb[80].mxu0 %v6643_v28  ;;  %v10961_v28 = vld [vmem:[%s14291_s7 + $0x4c8] sm:$0xff]  }
 0x410   :  { %9952 = vmatpush3.bf16.msra.mxu0 %v10924_v15  ;;  %9967 = vmatprep.mubr.msk.bf16.mxu0 %vm11072_vm0, %v11071_v59  ;;  %v10959_v15 = vld [vmem:[%s14291_s7 + $0x480] sm:$0xff]  }
 0x411   :  { %9517 = vmatpush3.bf16.msra.mxu1 %v10926_v12  ;;  %9953 = vmatprep.subr.bf16.mxu0 %v11071_v59  ;;  %v6088_v12 = vpack.c.bf16 %v4411_v52, %v4411_v52  ;;  %v10991_v52 = vld [vmem:[%s14291_s7 + $0x598] sm:$0xff]  }
 0x412   :  { %9518 = vmatprep.subr.bf16.mxu1 %v10928_v60  ;;  %v10962_v60 = vld [vmem:[%s14291_s7 + $0x488] sm:$0xff]  }
 0x414   :  { %9954 = vmatpush3.bf16.msra.mxu0 %v10927_v61  ;;  %v10964_v61 = vld [vmem:[%s14291_s7 + $0x4d0] sm:$0xff]  }
 0x415   :  { %9519 = vmatpush3.bf16.msra.mxu1 %v10929_v40  ;;  %9955 = vmatprep.subr.bf16.mxu0 %v11071_v59  ;;  %v10963_v40 = vld [vmem:[%s14291_s7 + $0x828] sm:$0xff]  }
 0x416   :  { %9520 = vmatprep.subr.bf16.mxu1 %v10931_v34  ;;  %v10965_v34 = vld [vmem:[%s14291_s7 + $0x490] sm:$0xff]  }
 0x418   :  { %9956 = vmatpush3.bf16.msra.mxu0 %v10930_v62 }
 0x419   :  { %9521 = vmatpush3.bf16.msra.mxu1 %v10932_v41  ;;  %9957 = vmatprep.subr.bf16.mxu0 %v11071_v59  ;;  %v10967_v41 = vld [vmem:[%s14291_s7 + $0x4d8] sm:$0xff]  }
 0x41a   :  { %9537 = vmatprep.subr.bf16.mxu1 %v10934_v7 }
 0x41c   :  { %9958 = vmatpush3.bf16.msra.mxu0 %v10933_v1  ;;  %5762 = vmatmul.mubr.bf16.vlgmr.msra.gmra.mrb[192].mxu1 %v5533_v54  ;;  %v10970_v54 = vld [vmem:[%s14291_s7 + $0x4e0] sm:$0xff]  }
 0x41d   :  { %9538 = vmatpush3.bf16.msra.mxu1 %v10935_v18  ;;  %6038 = vmatprep.mubr.bf16.mxu1 %v5811_v49  ;;  %v10968_v18 = vld [vmem:[%s14291_s7 + $0x498] sm:$0xff]   ;;  %v4424_v49 = vmax.f32 %v13187_v42, 0.0  ;;  %v10974_v42 = vld [vmem:[%s14291_s7 + $0x4a8] sm:$0xff]  }
 0x41e   :  { %9959 = vmatprep.subr.bf16.mxu0 %v11071_v59  ;;  %9539 = vmatprep.subr.bf16.mxu1 %v10937_v48  ;;  %v10969_v48 = vld [vmem:[%s14291_s7 + $0x838] sm:$0xff]  }
 0x420   :  { %9960 = vmatpush3.bf16.msra.mxu0 %v10936_v55  ;;  %v10971_v55 = vld [vmem:[%s14291_s7 + $0x4a0] sm:$0xff]  }
 0x421   :  { %9540 = vmatpush3.bf16.msra.mxu1 %v10938_v58  ;;  %9961 = vmatprep.subr.bf16.mxu0 %v11071_v59  ;;  %v10973_v58 = vld [vmem:[%s14291_s7 + $0x4e8] sm:$0xff]  }
 0x422   :  { %v13783_v23 = vpop.f32.mrb[56].mxu0  ;;  %9541 = vmatprep.subr.bf16.mxu1 %v10940_v27  ;;  %v10972_v27 = vld [vmem:[%s14291_s7 + $0x8c0] sm:$0xff]  }
 0x423   :  { %v9829_v26 = vpop.f32.mrb[57].mxu0 }
 0x424   :  { %v5252_v33 = vpop.f32.mrb[58].mxu0  ;;  %9962 = vmatpush3.bf16.msra.mxu0 %v10939_v29  ;;  %v7197_v29 = vpack.c.bf16 %v4424_v49, %v4424_v49  ;;  %v11000_v49 = vld [vmem:[%s14291_s7 + $0x5b8] sm:$0xff]  }
 0x425   :  { %v9830_v63 = vpop.f32.mrb[59].mxu0  ;;  %9542 = vmatpush3.bf16.msra.mxu1 %v10941_v39  ;;  %9963 = vmatprep.subr.bf16.mxu0 %v11071_v59  ;;  %v10976_v39 = vld [vmem:[%s14291_s7 + $0x4f0] sm:$0xff]   ;;  %v10975_v33 = vld [vmem:[%s14291_s7 + $0x8c8] sm:$0xff]  }
 0x426   :  { %9543 = vmatprep.subr.bf16.mxu1 %v10943_v22 }
 0x428   :  { %9964 = vmatpush3.bf16.msra.mxu0 %v10942_v10 }
 0x429   :  { %9544 = vmatpush3.bf16.msra.mxu1 %v10944_v47  ;;  %9965 = vmatprep.subr.bf16.mxu0 %v11071_v59  ;;  %v10977_v47 = vld [vmem:[%s14291_s7 + $0x4b0] sm:$0xff]  }
 0x42a   :  { %9545 = vmatprep.subr.bf16.mxu1 %v10946_v37 }
 0x42c   :  { %9966 = vmatpush3.bf16.msra.mxu0 %v10945_v3  ;;  %v10979_v3 = vld [vmem:[%s14291_s7 + $0x4f8] sm:$0xff]  }
 0x42d   :  { %9546 = vmatpush3.bf16.msra.mxu1 %v10947_v35  ;;  %9971 = vmatprep.subr.bf16.mxu0 %v11071_v59  ;;  %v10980_v35 = vld [vmem:[%s14291_s7 + $0x4b8] sm:$0xff]  }
 0x42e   :  { %9547 = vmatprep.subr.bf16.mxu1 %v10949_v45  ;;  %v4410_v45 = vmax.f32 %v13335_v25, 0.0 }
 0x42f   :  { %9968 = vmatmul.mubr.bf16.vlgmr.msra.gmra.mrb[84].mxu0 %v6920_v30  ;;  %v4414_v30 = vmax.f32 %v13350_v53, 0.0  ;;  %v10984_v53 = vld [vmem:[%s14291_s7 + $0x8e0] sm:$0xff]  }
 0x430   :  { %9972 = vmatpush3.bf16.msra.mxu0 %v10948_v36  ;;  %9987 = vmatprep.mubr.msk.bf16.mxu0 %vm11072_vm0, %v11071_v59  ;;  %v10982_v36 = vld [vmem:[%s14291_s7 + $0x580] sm:$0xff]   ;;  %v6087_v25 = vpack.c.bf16 %v4410_v45, %v4410_v45 }
 0x431   :  { %9548 = vmatpush3.bf16.msra.mxu1 %v10950_v24  ;;  %9973 = vmatprep.subr.bf16.mxu0 %v11071_v59  ;;  %v10981_v24 = vld [vmem:[%s14291_s7 + $0x8d8] sm:$0xff]   ;;  %v11011_v45 = vld [vmem:[%s14291_s7 + $0x620] sm:$0xff]  }
 0x432   :  { %9549 = vmatprep.subr.bf16.mxu1 %v10952_v44  ;;  %v10983_v44 = vld [vmem:[%s14291_s7 + $0x540] sm:$0xff]  }
 0x434   :  { %9974 = vmatpush3.bf16.msra.mxu0 %v10951_v19  ;;  %v10985_v19 = vld [vmem:[%s14291_s7 + $0x588] sm:$0xff]  }
 0x435   :  { %9550 = vmatpush3.bf16.msra.mxu1 %v10953_v50  ;;  %9975 = vmatprep.subr.bf16.mxu0 %v11071_v59  ;;  %v6365_v50 = vpack.c.bf16 %v4414_v30, %v4414_v30  ;;  %v11013_v30 = vld [vmem:[%s14291_s7 + $0x628] sm:$0xff]  }
 0x436   :  { %9551 = vmatprep.subr.bf16.mxu1 %v10955_v13  ;;  %v10986_v13 = vld [vmem:[%s14291_s7 + $0x548] sm:$0xff]  }
 0x438   :  { %9976 = vmatpush3.bf16.msra.mxu0 %v10954_v4  ;;  %v10988_v4 = vld [vmem:[%s14291_s7 + $0x590] sm:$0xff]  }
 0x439   :  { %9552 = vmatpush3.bf16.msra.mxu1 %v10956_v31  ;;  %9977 = vmatprep.subr.bf16.mxu0 %v11071_v59  ;;  %v10987_v31 = vld [vmem:[%s14291_s7 + $0x8e8] sm:$0xff]  }
 0x43a   :  { %9568 = vmatprep.subr.bf16.mxu1 %v10958_v20 }
 0x43c   :  { %9978 = vmatpush3.bf16.msra.mxu0 %v10957_v14  ;;  %6039 = vmatmul.mubr.bf16.vlgmr.msra.gmra.mrb[196].mxu1 %v5810_v56  ;;  %v10990_v56 = vld [vmem:[%s14291_s7 + $0x8f0] sm:$0xff]  }
 0x43d   :  { %9569 = vmatpush3.bf16.msra.mxu1 %v10959_v15  ;;  %6315 = vmatprep.mubr.bf16.mxu1 %v6088_v12  ;;  %v10992_v12 = vld [vmem:[%s14291_s7 + $0x558] sm:$0xff]  }
 0x43e   :  { %9979 = vmatprep.subr.bf16.mxu0 %v11071_v59  ;;  %9570 = vmatprep.subr.bf16.mxu1 %v10961_v28 }
 0x440   :  { %9980 = vmatpush3.bf16.msra.mxu0 %v10960_v11  ;;  %v10994_v11 = vld [vmem:[%s14291_s7 + $0x5a0] sm:$0xff]  }
 0x441   :  { %9571 = vmatpush3.bf16.msra.mxu1 %v10962_v60  ;;  %9981 = vmatprep.subr.bf16.mxu0 %v11071_v59  ;;  %v10993_v60 = vld [vmem:[%s14291_s7 + $0x8f8] sm:$0xff]  }
 0x442   :  { %v13870_v62 = vpop.f32.mrb[60].mxu0  ;;  %9572 = vmatprep.subr.bf16.mxu1 %v10964_v61  ;;  %v4427_v61 = vmax.f32 %v13192_v16, 0.0  ;;  %v10998_v16 = vld [vmem:[%s14291_s7 + $0x5b0] sm:$0xff]  }
 0x443   :  { %v9849_v9 = vpop.f32.mrb[61].mxu0 }
 0x444   :  { %v5529_v7 = vpop.f32.mrb[62].mxu0  ;;  %9982 = vmatpush3.bf16.msra.mxu0 %v10963_v40  ;;  %v10995_v40 = vld [vmem:[%s14291_s7 + $0x560] sm:$0xff]   ;;  %v10997_v9 = vld [vmem:[%s14291_s7 + $0x568] sm:$0xff]  }
 0x445   :  { %v9850_v1 = vpop.f32.mrb[63].mxu0  ;;  %9573 = vmatpush3.bf16.msra.mxu1 %v10965_v34  ;;  %9983 = vmatprep.subr.bf16.mxu0 %v11071_v59  ;;  %v10996_v34 = vld [vmem:[%s14291_s7 + $0x5a8] sm:$0xff]  }
 0x446   :  { %9574 = vmatprep.subr.bf16.mxu1 %v10967_v41  ;;  %v7474_v41 = vpack.c.bf16 %v4427_v61, %v4427_v61 }
 0x448   :  { %9984 = vmatpush3.bf16.msra.mxu0 %v10966_v2 }
 0x449   :  { %9575 = vmatpush3.bf16.msra.mxu1 %v10968_v18  ;;  %9985 = vmatprep.subr.bf16.mxu0 %v11071_v59 }
 0x44a   :  { %9576 = vmatprep.subr.bf16.mxu1 %v10970_v54  ;;  %v10999_v54 = vld [vmem:[%s14291_s7 + $0x570] sm:$0xff]  }
 0x44c   :  { %9986 = vmatpush3.bf16.msra.mxu0 %v10969_v48 }
 0x44d   :  { %9577 = vmatpush3.bf16.msra.mxu1 %v10971_v55  ;;  %9991 = vmatprep.subr.bf16.mxu0 %v11071_v59  ;;  %v11001_v55 = vld [vmem:[%s14291_s7 + $0x578] sm:$0xff]  }
 0x44e   :  { %9578 = vmatprep.subr.bf16.mxu1 %v10973_v58  ;;  %v4413_v58 = vmax.f32 %v13344_v32, 0.0  ;;  %v11005_v32 = vld [vmem:[%s14291_s7 + $0x608] sm:$0xff]  }
 0x44f   :  { %9988 = vmatmul.mubr.bf16.vlgmr.msra.gmra.mrb[88].mxu0 %v7197_v29  ;;  %v9398_v22 = vpop.f32.mrb[172].mxu1  ;;  %v4417_v29 = vmax.f32 %v13377_v17, 0.0  ;;  %v11006_v17 = vld [vmem:[%s14291_s7 + $0x650] sm:$0xff]  }
 0x450   :  { %9992 = vmatpush3.bf16.msra.mxu0 %v10972_v27  ;;  %v9399_v26 = vpop.f32.mrb[173].mxu1  ;;  %10007 = vmatprep.mubr.msk.bf16.mxu0 %vm11072_vm0, %v11071_v59  ;;  %v11002_v27 = vld [vmem:[%s14291_s7 + $0x640] sm:$0xff]  }
 0x451   :  { %v13911_v10 = vadd.f32 %v9399_v26, %v9398_v22  ;;  %9579 = vmatpush3.bf16.msra.mxu1 %v10974_v42  ;;  %v9401_v63 = vpop.f32.mrb[174].mxu1  ;;  %9993 = vmatprep.subr.bf16.mxu0 %v11071_v59  ;;  %v11003_v42 = vld [vmem:[%s14291_s7 + $0x600] sm:$0xff]   ;;  %v11004_v22 = vld [vmem:[%s14291_s7 + $0x648] sm:$0xff]   ;;  %v6642_v26 = vpack.c.bf16 %v4417_v29, %v4417_v29 }
 0x452   :  { %v9402_v37 = vpop.f32.mrb[175].mxu1  ;;  %9580 = vmatprep.subr.bf16.mxu1 %v10976_v39  ;;  %v6364_v39 = vpack.c.bf16 %v4413_v58, %v4413_v58  ;;  %v11008_v63 = vld [vmem:[%s14291_s7 + $0x658] sm:$0xff]  }
 0x454   :  { %9994 = vmatpush3.bf16.msra.mxu0 %v10975_v33  ;;  %v11007_v33 = vld [vmem:[%s14291_s7 + $0x610] sm:$0xff]  }
 0x455   :  { %9581 = vmatpush3.bf16.msra.mxu1 %v10977_v47  ;;  %9995 = vmatprep.subr.bf16.mxu0 %v11071_v59 }
 0x456   :  { %9582 = vmatprep.subr.bf16.mxu1 %v10979_v3 }
 0x458   :  { %9996 = vmatpush3.bf16.msra.mxu0 %v10978_v43  ;;  %v11009_v43 = vld [vmem:[%s14291_s7 + $0x618] sm:$0xff]  }
 0x459   :  { %9583 = vmatpush3.bf16.msra.mxu1 %v10980_v35  ;;  %9997 = vmatprep.subr.bf16.mxu0 %v11071_v59  ;;  %v11010_v35 = vld [vmem:[%s14291_s7 + $0x660] sm:$0xff]  }
 0x45a   :  { %9599 = vmatprep.subr.bf16.mxu1 %v10982_v36  ;;  %v11012_v36 = vld [vmem:[%s14291_s7 + $0x668] sm:$0xff]  }
 0x45c   :  { %9998 = vmatpush3.bf16.msra.mxu0 %v10981_v24  ;;  %6316 = vmatmul.mubr.bf16.vlgmr.msra.gmra.mrb[200].mxu1 %v6087_v25  ;;  %v11014_v24 = vld [vmem:[%s14291_s7 + $0x670] sm:$0xff]  }
 0x45d   :  { %9600 = vmatpush3.bf16.msra.mxu1 %v10983_v44  ;;  %6592 = vmatprep.mubr.bf16.mxu1 %v6365_v50 }
 0x45e   :  { %9999 = vmatprep.subr.bf16.mxu0 %v11071_v59  ;;  %9601 = vmatprep.subr.bf16.mxu1 %v10985_v19 }
 0x460   :  { %10000 = vmatpush3.bf16.msra.mxu0 %v10984_v53  ;;  %v11015_v53 = vld [vmem:[%s14291_s7 + $0x630] sm:$0xff]  }
 0x461   :  { %9602 = vmatpush3.bf16.msra.mxu1 %v10986_v13  ;;  %10001 = vmatprep.subr.bf16.mxu0 %v11071_v59 }
 0x462   :  { %v13959_v20 = vpop.f32.mrb[64].mxu0  ;;  %9603 = vmatprep.subr.bf16.mxu1 %v10988_v4  ;;  %v11016_v4 = vld [vmem:[%s14291_s7 + $0x678] sm:$0xff]  }
 0x463   :  { %v9869_v14 = vpop.f32.mrb[65].mxu0 }
 0x464   :  { %v5806_v15 = vpop.f32.mrb[66].mxu0  ;;  %10002 = vmatpush3.bf16.msra.mxu0 %v10987_v31  ;;  %v4416_v14 = vmax.f32 %v13371_v8, 0.0  ;;  %v11021_v8 = vld [vmem:[%s14291_s7 + $0x6c8] sm:$0xff]  }
 0x465   :  { %v9870_v28 = vpop.f32.mrb[67].mxu0  ;;  %9604 = vmatpush3.bf16.msra.mxu1 %v10989_v38  ;;  %10003 = vmatprep.subr.bf16.mxu0 %v11071_v59  ;;  %v11018_v15 = vld [vmem:[%s14291_s7 + $0x700] sm:$0xff]  }
 0x466   :  { %9605 = vmatprep.subr.bf16.mxu1 %v10991_v52  ;;  %v11017_v52 = vld [vmem:[%s14291_s7 + $0x638] sm:$0xff]   ;;  %v11019_v28 = vld [vmem:[%s14291_s7 + $0x6c0] sm:$0xff]  }
 0x468   :  { %10004 = vmatpush3.bf16.msra.mxu0 %v10990_v56  ;;  %v4420_v56 = vmax.f32 %v13387_v57, 0.0  ;;  %v11022_v57 = vld [vmem:[%s14291_s7 + $0x710] sm:$0xff]  }
 0x469   :  { %9606 = vmatpush3.bf16.msra.mxu1 %v10992_v12  ;;  %10005 = vmatprep.subr.bf16.mxu0 %v11071_v59  ;;  %v11020_v12 = vld [vmem:[%s14291_s7 + $0x708] sm:$0xff]  }
 0x46a   :  { %9607 = vmatprep.subr.bf16.mxu1 %v10994_v11  ;;  %v6919_v11 = vpack.c.bf16 %v4420_v56, %v4420_v56 }
 0x46c   :  { %10006 = vmatpush3.bf16.msra.mxu0 %v10993_v60  ;;  %v11023_v60 = vld [vmem:[%s14291_s7 + $0x6d0] sm:$0xff]  }
 0x46d   :  { %9608 = vmatpush3.bf16.msra.mxu1 %v10995_v40  ;;  %v11024_v40 = vld [vmem:[%s14291_s7 + $0x718] sm:$0xff]  }
 0x46e   :  { %9609 = vmatprep.subr.bf16.mxu1 %v10996_v34 }
 0x46f   :  { %10008 = vmatmul.mubr.bf16.vlgmr.msra.gmra.mrb[92].mxu0 %v7474_v41  ;;  %v4749_v7 = vpop.f32.mrb[176].mxu1 }
 0x470   :  { %v4750_v2 = vadd.f32 %v13911_v10, %v4749_v7  ;;  %v9789_v1 = vpop.f32.mrb[177].mxu1  ;;  %v11026_v7 = vld [vmem:[%s14291_s7 + $0x720] sm:$0xff]  }
 0x471   :  { %v4752_v18 = vpop.f32.mrb[178].mxu1  ;;  %9610 = vmatpush3.bf16.msra.mxu1 %v10997_v9  ;;  %v11028_v1 = vld [vmem:[%s14291_s7 + $0x728] sm:$0xff]  }
 0x472   :  { %v9790_v48 = vpop.f32.mrb[179].mxu1  ;;  %9611 = vmatprep.subr.bf16.mxu1 %v10998_v16  ;;  %v11025_v16 = vld [vmem:[%s14291_s7 + $0x6d8] sm:$0xff]   ;;  %v11029_v18 = vld [vmem:[%s14291_s7 + $0x6e8] sm:$0xff]  }
 0x475   :  { %9612 = vmatpush3.bf16.msra.mxu1 %v10999_v54  ;;  %v11030_v54 = vld [vmem:[%s14291_s7 + $0x730] sm:$0xff]  }
 0x476   :  { %9613 = vmatprep.subr.bf16.mxu1 %v11000_v49 }
 0x479   :  { %9614 = vmatpush3.bf16.msra.mxu1 %v11001_v55 }
 0x47a   :  { %9630 = vmatprep.subr.bf16.mxu1 %v11002_v27  ;;  %v11031_v27 = vld [vmem:[%s14291_s7 + $0x6f0] sm:$0xff]  }
 0x47c   :  { %6593 = vmatmul.mubr.bf16.vlgmr.msra.gmra.mrb[204].mxu1 %v6364_v39 }
 0x47d   :  { %9631 = vmatpush3.bf16.msra.mxu1 %v11003_v42  ;;  %6869 = vmatprep.mubr.bf16.mxu1 %v6642_v26  ;;  %v11032_v42 = vld [vmem:[%s14291_s7 + $0x738] sm:$0xff]  }
 0x47e   :  { %9632 = vmatprep.subr.bf16.mxu1 %v11004_v22  ;;  %v11033_v26 = vld [vmem:[%s14291_s7 + $0x6f8] sm:$0xff]  }
 0x481   :  { %9633 = vmatpush3.bf16.msra.mxu1 %v11005_v32  ;;  %v4419_v32 = vmax.f32 %v13381_v6, 0.0  ;;  %v11037_v6 = vld [vmem:[%s14291_s7 + $0x788] sm:$0xff]  }
 0x482   :  { %v14021_v10 = vpop.f32.mrb[68].mxu0  ;;  %9634 = vmatprep.subr.bf16.mxu1 %v11006_v17  ;;  %v11034_v17 = vld [vmem:[%s14291_s7 + $0x7c0] sm:$0xff]  }
 0x483   :  { %v9889_v47 = vpop.f32.mrb[69].mxu0 }
 0x484   :  { %v6083_v37 = vpop.f32.mrb[70].mxu0  ;;  %v11036_v47 = vld [vmem:[%s14291_s7 + $0x7c8] sm:$0xff]  }
 0x485   :  { %v9890_v3 = vpop.f32.mrb[71].mxu0  ;;  %9635 = vmatpush3.bf16.msra.mxu1 %v11007_v33  ;;  %v4423_v33 = vmax.f32 %v13415_v51, 0.0  ;;  %v11038_v51 = vld [vmem:[%s14291_s7 + $0x7d0] sm:$0xff]  }
 0x486   :  { %9636 = vmatprep.subr.bf16.mxu1 %v11008_v63  ;;  %v6918_v63 = vpack.c.bf16 %v4419_v32, %v4419_v32  ;;  %v11039_v3 = vld [vmem:[%s14291_s7 + $0x790] sm:$0xff]  }
 0x487   :  { %v7196_v37 = vpack.c.bf16 %v4423_v33, %v4423_v33  ;;  %v11065_v33 = vld [vmem:[%s14291_s7 + $0x878] sm:$0xff]  }
 0x489   :  { %9637 = vmatpush3.bf16.msra.mxu1 %v11009_v43 }
 0x48a   :  { %9638 = vmatprep.subr.bf16.mxu1 %v11010_v35  ;;  %v11040_v35 = vld [vmem:[%s14291_s7 + $0x7d8] sm:$0xff]  }
 0x48d   :  { %9639 = vmatpush3.bf16.msra.mxu1 %v11011_v45 }
 0x48e   :  { %9640 = vmatprep.subr.bf16.mxu1 %v11012_v36 }
 0x48f   :  { %v9429_v44 = vpop.f32.mrb[180].mxu1 }
 0x490   :  { %v9430_v25 = vpop.f32.mrb[181].mxu1 }
 0x491   :  { %v9431_v19 = vadd.f32 %v9430_v25, %v9429_v44  ;;  %v9432_v50 = vpop.f32.mrb[182].mxu1  ;;  %9641 = vmatpush3.bf16.msra.mxu1 %v11013_v30  ;;  %v11042_v44 = vld [vmem:[%s14291_s7 + $0x7e0] sm:$0xff]  }
 0x492   :  { %v9433_v13 = vpop.f32.mrb[183].mxu1  ;;  %9642 = vmatprep.subr.bf16.mxu1 %v11014_v24  ;;  %v11041_v24 = vld [vmem:[%s14291_s7 + $0x798] sm:$0xff]   ;;  %v11043_v25 = vld [vmem:[%s14291_s7 + $0x7a0] sm:$0xff]   ;;  %v11045_v50 = vld [vmem:[%s14291_s7 + $0x7a8] sm:$0xff]  }
 0x493   :  { %v4934_v31 = vadd.f32 %v9431_v19, %v4750_v2  ;;  %v11027_v2 = vld [vmem:[%s14291_s7 + $0x6e0] sm:$0xff]   ;;  %v11044_v19 = vld [vmem:[%s14291_s7 + $0x7e8] sm:$0xff]  }
 0x495   :  { %v4974_v38 = vadd.f32 %v13696_v5, %v4934_v31  ;;  %9643 = vmatpush3.bf16.msra.mxu1 %v11015_v53  ;;  %v6641_v5 = vpack.c.bf16 %v4416_v14, %v4416_v14  ;;  %v11046_v53 = vld [vmem:[%s14291_s7 + $0x7f0] sm:$0xff]  }
 0x496   :  { %9644 = vmatprep.subr.bf16.mxu1 %v11016_v4 }
 0x499   :  { %9645 = vmatpush3.bf16.msra.mxu1 %v11017_v52  ;;  %v11047_v52 = vld [vmem:[%s14291_s7 + $0x7b0] sm:$0xff]  }
 0x49a   :  { %9661 = vmatprep.subr.bf16.mxu1 %v11018_v15  ;;  %v11048_v15 = vld [vmem:[%s14291_s7 + $0x7f8] sm:$0xff]  }
 0x49c   :  { %6870 = vmatmul.mubr.bf16.vlgmr.msra.gmra.mrb[208].mxu1 %v6641_v5  ;;  %v11049_v5 = vld [vmem:[%s14291_s7 + $0x7b8] sm:$0xff]  }
 0x49d   :  { %9662 = vmatpush3.bf16.msra.mxu1 %v11019_v28  ;;  %7146 = vmatprep.mubr.bf16.mxu1 %v6919_v11  ;;  %v11050_v11 = vld [vmem:[%s14291_s7 + $0x880] sm:$0xff]  }
 0x49e   :  { %9663 = vmatprep.subr.bf16.mxu1 %v11020_v12  ;;  %v4422_v12 = vmax.f32 %v13408_v0, 0.0  ;;  %v11053_v0 = vld [vmem:[%s14291_s7 + $0x848] sm:$0xff]  }
 0x4a1   :  { %9664 = vmatpush3.bf16.msra.mxu1 %v11021_v8  ;;  %v4426_v8 = vmax.f32 %v13425_v46, 0.0  ;;  %v11054_v46 = vld [vmem:[%s14291_s7 + $0x890] sm:$0xff]  }
 0x4a2   :  { %v14074_v61 = vpop.f32.mrb[72].mxu0  ;;  %9665 = vmatprep.subr.bf16.mxu1 %v11022_v57  ;;  %v7195_v57 = vpack.c.bf16 %v4422_v12, %v4422_v12  ;;  %v7763_v12 = vld [vmem:[%s14294_s9 + $0x28] sm:$0xff] }
 0x4a3   :  { %v9909_v34 = vpop.f32.mrb[73].mxu0 }
 0x4a4   :  { %v6360_v41 = vpop.f32.mrb[74].mxu0  ;;  %v11055_v34 = vld [vmem:[%s14291_s7 + $0x850] sm:$0xff]  }
 0x4a5   :  { %v9910_v9 = vpop.f32.mrb[75].mxu0  ;;  %9666 = vmatpush3.bf16.msra.mxu1 %v11023_v60  ;;  %v11052_v60 = vld [vmem:[%s14291_s7 + $0x888] sm:$0xff]  }
 0x4a6   :  { %9667 = vmatprep.subr.bf16.mxu1 %v11024_v40  ;;  %v7473_v40 = vpack.c.bf16 %v4426_v8, %v4426_v8  ;;  %v11056_v9 = vld [vmem:[%s14291_s7 + $0x898] sm:$0xff]   ;;  %v7764_v8 = vld [vmem:[%s14294_s9 + $0x30] sm:$0xff] }
 0x4a9   :  { %9668 = vmatpush3.bf16.msra.mxu1 %v11025_v16 }
 0x4aa   :  { %9669 = vmatprep.subr.bf16.mxu1 %v11026_v7 }
 0x4ad   :  { %9670 = vmatpush3.bf16.msra.mxu1 %v11027_v2 }
 0x4ae   :  { %9671 = vmatprep.subr.bf16.mxu1 %v11028_v1  ;;  %v11057_v1 = vld [vmem:[%s14291_s7 + $0x858] sm:$0xff]  }
 0x4af   :  { %v9460_v48 = vpop.f32.mrb[184].mxu1 }
 0x4b0   :  { %v9461_v49 = vpop.f32.mrb[185].mxu1 }
 0x4b1   :  { %v9462_v55 = vadd.f32 %v9461_v49, %v9460_v48  ;;  %v9463_v58 = vpop.f32.mrb[186].mxu1  ;;  %9672 = vmatpush3.bf16.msra.mxu1 %v11029_v18  ;;  %v11058_v18 = vld [vmem:[%s14291_s7 + $0x8a0] sm:$0xff]   ;;  %v11060_v48 = vld [vmem:[%s14291_s7 + $0x8a8] sm:$0xff]  }
 0x4b2   :  { %v9464_v29 = vpop.f32.mrb[187].mxu1  ;;  %9673 = vmatprep.subr.bf16.mxu1 %v11030_v54  ;;  %v11059_v54 = vld [vmem:[%s14291_s7 + $0x860] sm:$0xff]   ;;  %v11061_v49 = vld [vmem:[%s14291_s7 + $0x868] sm:$0xff]  }
 0x4b3   :  { %v5250_v39 = vadd.f32 %v9462_v55, %v13783_v23  ;;  %v11035_v23 = vld [vmem:[%s14291_s7 + $0x780] sm:$0xff]   ;;  %v11062_v55 = vld [vmem:[%s14291_s7 + $0x8b0] sm:$0xff]  }
 0x4b5   :  { %v5255_v22 = vadd.f32 %v5250_v39, %v4974_v38  ;;  %9674 = vmatpush3.bf16.msra.mxu1 %v11031_v27  ;;  %v11063_v39 = vld [vmem:[%s14291_s7 + $0x870] sm:$0xff]  }
 0x4b6   :  { %9675 = vmatprep.subr.bf16.mxu1 %v11032_v42 }
 0x4b9   :  { %9676 = vmatpush3.bf16.msra.mxu1 %v11033_v26  ;;  %v11064_v26 = vld [vmem:[%s14291_s7 + $0x8b8] sm:$0xff]  }
 0x4ba   :  { %9692 = vmatprep.subr.bf16.mxu1 %v11034_v17 }
 0x4bc   :  { %7147 = vmatmul.mubr.bf16.vlgmr.msra.gmra.mrb[212].mxu1 %v6918_v63 }
 0x4bd   :  { %9693 = vmatpush3.bf16.msra.mxu1 %v11035_v23  ;;  %7423 = vmatprep.mubr.bf16.mxu1 %v7196_v37  ;;  %v4425_v23 = vmax.f32 %v13419_v21, 0.0 }
 0x4be   :  { %9694 = vmatprep.subr.bf16.mxu1 %v11036_v47 }
 0x4bf   :  { %v7472_v63 = vpack.c.bf16 %v4425_v23, %v4425_v23 }
 0x4c1   :  { %9695 = vmatpush3.bf16.msra.mxu1 %v11037_v6 }
 0x4c2   :  { %v14127_v43 = vpop.f32.mrb[76].mxu0  ;;  %9696 = vmatprep.subr.bf16.mxu1 %v11038_v51 }
 0x4c3   :  { %v9929_v45 = vpop.f32.mrb[77].mxu0 }
 0x4c4   :  { %v6637_v36 = vpop.f32.mrb[78].mxu0 }
 0x4c5   :  { %v9930_v30 = vpop.f32.mrb[79].mxu0  ;;  %9697 = vmatpush3.bf16.msra.mxu1 %v11039_v3 }
 0x4c6   :  { %9698 = vmatprep.subr.bf16.mxu1 %v11040_v35 }
 0x4c9   :  { %9699 = vmatpush3.bf16.msra.mxu1 %v11041_v24 }
 0x4ca   :  { %9700 = vmatprep.subr.bf16.mxu1 %v11042_v44 }
 0x4cd   :  { %9701 = vmatpush3.bf16.msra.mxu1 %v11043_v25 }
 0x4ce   :  { %9702 = vmatprep.subr.bf16.mxu1 %v11044_v19 }
 0x4cf   :  { %v9491_v13 = vpop.f32.mrb[188].mxu1 }
 0x4d0   :  { %v9492_v4 = vpop.f32.mrb[189].mxu1 }
 0x4d1   :  { %v9493_v31 = vadd.f32 %v9492_v4, %v9491_v13  ;;  %v9494_v38 = vpop.f32.mrb[190].mxu1  ;;  %9703 = vmatpush3.bf16.msra.mxu1 %v11045_v50 }
 0x4d2   :  { %v9495_v14 = vpop.f32.mrb[191].mxu1  ;;  %9704 = vmatprep.subr.bf16.mxu1 %v11046_v53 }
 0x4d3   :  { %v5527_v56 = vadd.f32 %v9493_v31, %v13870_v62  ;;  %v11051_v62 = vld [vmem:[%s14291_s7 + $0x840] sm:$0xff]   ;;  %v7759_v14 = vld [vmem:[%s14294_s9 + $0x8] sm:$0xff] }
 0x4d5   :  { %v5532_v28 = vadd.f32 %v5527_v56, %v5255_v22  ;;  %9705 = vmatpush3.bf16.msra.mxu1 %v11047_v52  ;;  %v11073_v52 = vmov 0.0|0.0  }
 0x4d6   :  { %9706 = vmatprep.subr.bf16.mxu1 %v11048_v15  ;;  %v7760_v15 = vld [vmem:[%s14294_s9 + $0x10] sm:$0xff] }
 0x4d9   :  { %9707 = vmatpush3.bf16.msra.mxu1 %v11049_v5  ;;  %v7762_v5 = vld [vmem:[%s14294_s9 + $0x20] sm:$0xff] }
 0x4da   :  { %9723 = vmatprep.subr.bf16.mxu1 %v11050_v11  ;;  %v10053_v11 = vpack.c.bf16 %v7763_v12, %v7762_v5 }
 0x4dc   :  { %7424 = vmatmul.mubr.bf16.vlgmr.msra.gmra.mrb[216].mxu1 %v7195_v57 }
 0x4dd   :  { %9724 = vmatpush3.bf16.msra.mxu1 %v11051_v62  ;;  %7700 = vmatprep.mubr.bf16.mxu1 %v7473_v40  ;;  %v7765_v62 = vld [vmem:[%s14294_s9 + $0x38] sm:$0xff]  ;;  %v7766_v40 = vld [vmem:[%s14294_s9 + $0x40] sm:$0xff] }
 0x4de   :  { %9725 = vmatprep.subr.bf16.mxu1 %v11052_v60  ;;  %v10056_v57 = vpack.c.bf16 %v7765_v62, %v7764_v8 }
 0x4e1   :  { %9726 = vmatpush3.bf16.msra.mxu1 %v11053_v0  ;;  %v7767_v0 = vld [vmem:[%s14294_s9 + $0x48] sm:$0xff] }
 0x4e2   :  { %v14180_v41 = vpop.f32.mrb[80].mxu0  ;;  %9727 = vmatprep.subr.bf16.mxu1 %v11054_v46 }
 0x4e3   :  { %v9949_v16 = vpop.f32.mrb[81].mxu0 }
 0x4e4   :  { %v6914_v7 = vpop.f32.mrb[82].mxu0  ;;  %v10059_v16 = vpack.c.bf16 %v7767_v0, %v7766_v40 }
 0x4e5   :  { %v9950_v2 = vpop.f32.mrb[83].mxu0  ;;  %9728 = vmatpush3.bf16.msra.mxu1 %v11055_v34  ;;  %v7768_v7 = vld [vmem:[%s14294_s9 + $0x50] sm:$0xff] }
 0x4e6   :  { %9729 = vmatprep.subr.bf16.mxu1 %v11056_v9  ;;  %v7769_v2 = vld [vmem:[%s14294_s9 + $0x58] sm:$0xff] }
 0x4e9   :  { %9730 = vmatpush3.bf16.msra.mxu1 %v11057_v1 }
 0x4ea   :  { %9731 = vmatprep.subr.bf16.mxu1 %v11058_v18  ;;  %v10062_v18 = vpack.c.bf16 %v7769_v2, %v7768_v7 }
 0x4ed   :  { %9732 = vmatpush3.bf16.msra.mxu1 %v11059_v54 }
 0x4ee   :  { %9733 = vmatprep.subr.bf16.mxu1 %v11060_v48 }
 0x4ef   :  { %v9522_v58 = vpop.f32.mrb[192].mxu1 }
 0x4f0   :  { %v9523_v27 = vpop.f32.mrb[193].mxu1 }
 0x4f1   :  { %v9524_v29 = vadd.f32 %v9523_v27, %v9522_v58  ;;  %v9525_v42 = vpop.f32.mrb[194].mxu1  ;;  %9734 = vmatpush3.bf16.msra.mxu1 %v11061_v49  ;;  %v7770_v58 = vld [vmem:[%s14294_s9 + $0x60] sm:$0xff]  ;;  %v7771_v27 = vld [vmem:[%s14294_s9 + $0x68] sm:$0xff] }
 0x4f2   :  { %v9526_v22 = vpop.f32.mrb[195].mxu1  ;;  %9735 = vmatprep.subr.bf16.mxu1 %v11062_v55  ;;  %v10065_v42 = vpack.c.bf16 %v7771_v27, %v7770_v58 }
 0x4f3   :  { %v5804_v32 = vadd.f32 %v9524_v29, %v13959_v20  ;;  %v7772_v22 = vld [vmem:[%s14294_s9 + $0x70] sm:$0xff] }
 0x4f5   :  { %v5809_v17 = vadd.f32 %v5804_v32, %v5532_v28  ;;  %9736 = vmatpush3.bf16.msra.mxu1 %v11063_v39 }
 0x4f6   :  { %9737 = vmatprep.subr.bf16.mxu1 %v11064_v26  ;;  %v7773_v26 = vld [vmem:[%s14294_s9 + $0x78] sm:$0xff] }
 0x4f7   :  { %v10068_v32 = vpack.c.bf16 %v7773_v26, %v7772_v22 }
 0x4f9   :  { %9738 = vmatpush3.bf16.msra.mxu1 %v11065_v33 }
 0x4fa   :  { %10046 = vmatprep.subr.bf16.mxu1 %v11073_v52 }
 0x4fc   :  { %7701 = vmatmul.mubr.bf16.vlgmr.msra.gmra.mrb[220].mxu1 %v7472_v63 }
 0x4fd   :  { %10043 = vmatprep.mubr.msk.f32.mxu1 %vm11072_vm0, %v11071_v59 }
 0x502   :  { %v14216_v47 = vpop.f32.mrb[84].mxu0 }
 0x503   :  { %v9969_v37 = vpop.f32.mrb[85].mxu0 }
 0x504   :  { %v7191_v6 = vpop.f32.mrb[86].mxu0 }
 0x505   :  { %v9970_v20 = vpop.f32.mrb[87].mxu0 }
 0x50f   :  { %v9553_v51 = vpop.f32.mrb[196].mxu1 }
 0x510   :  { %v9554_v3 = vpop.f32.mrb[197].mxu1 }
 0x511   :  { %v9555_v35 = vadd.f32 %v9554_v3, %v9553_v51  ;;  %v9556_v45 = vpop.f32.mrb[198].mxu1 }
 0x512   :  { %v9557_v36 = vpop.f32.mrb[199].mxu1 }
 0x513   :  { %v6081_v30 = vadd.f32 %v9555_v35, %v14021_v10  ;;  %v7758_v10 = vld [vmem:[%s14294_s9] sm:$0xff] }
 0x514   :  { %v10047_v56 = vpack.c.bf16 %v7759_v14, %v7758_v10  ;;  %v9068_v10 = vld [vmem:[%s14295_s8] ss:$0 sm:$0xff] }
 0x515   :  { %v6086_v21 = vadd.f32 %v6081_v30, %v5809_v17 }
 0x516   :  { %10048 = vmatpush3.bf16.msra.mxu1 %v10047_v56  ;;  %v9069_v56 = vld [vmem:[%s14296_s10] ss:$0 sm:$0xff] }
 0x517   :  { %10049 = vmatprep.subr.bf16.mxu1 %v11073_v52 }
 0x522   :  { %v14219_v24 = vpop.f32.mrb[88].mxu0 }
 0x523   :  { %v9989_v44 = vpop.f32.mrb[89].mxu0 }
 0x524   :  { %v7468_v25 = vpop.f32.mrb[90].mxu0 }
 0x525   :  { %v9990_v19 = vpop.f32.mrb[91].mxu0 }
 0x52f   :  { %v9584_v50 = vpop.f32.mrb[200].mxu1 }
 0x530   :  { %v9585_v59 = vpop.f32.mrb[201].mxu1 }
 0x531   :  { %v9586_v53 = vadd.f32 %v9585_v59, %v9584_v50  ;;  %v9587_v13 = vpop.f32.mrb[202].mxu1 }
 0x532   :  { %v9588_v4 = vpop.f32.mrb[203].mxu1 }
 0x533   :  { %v6358_v31 = vadd.f32 %v9586_v53, %v14074_v61  ;;  %v7761_v61 = vld [vmem:[%s14294_s9 + $0x18] sm:$0xff] }
 0x534   :  { %v10050_v28 = vpack.c.bf16 %v7761_v61, %v7760_v15 }
 0x535   :  { %v6363_v38 = vadd.f32 %v6358_v31, %v6086_v21 }
 0x536   :  { %10051 = vmatpush3.bf16.msra.mxu1 %v10050_v28 }
 0x537   :  { %10052 = vmatprep.subr.bf16.mxu1 %v11073_v52 }
 0x53a   :  { %10054 = vmatpush3.bf16.msra.mxu1 %v10053_v11 }
 0x53b   :  { %10055 = vmatprep.subr.bf16.mxu1 %v11073_v52 }
 0x53e   :  { %10057 = vmatpush3.bf16.msra.mxu1 %v10056_v57 }
 0x53f   :  { %10058 = vmatprep.subr.bf16.mxu1 %v11073_v52 }
 0x542   :  { %v7742_v60 = vpop.f32.mrb[92].mxu0  ;;  %10060 = vmatpush3.bf16.msra.mxu1 %v10059_v16 }
 0x543   :  { %v10009_v46 = vpop.f32.mrb[93].mxu0  ;;  %10061 = vmatprep.subr.bf16.mxu1 %v11073_v52 }
 0x544   :  { %v7745_v34 = vpop.f32.mrb[94].mxu0 }
 0x545   :  { %v10010_v9 = vpop.f32.mrb[95].mxu0 }
 0x546   :  { %10063 = vmatpush3.bf16.msra.mxu1 %v10062_v18 }
 0x547   :  { %10064 = vmatprep.subr.bf16.mxu1 %v11073_v52 }
 0x54a   :  { %10066 = vmatpush3.bf16.msra.mxu1 %v10065_v42 }
 0x54b   :  { %10067 = vmatprep.subr.bf16.mxu1 %v11073_v52 }
 0x54e   :  { %10069 = vmatpush3.bf16.msra.mxu1 %v10068_v32 }
 0x54f   :  { %v9615_v1 = vpop.f32.mrb[204].mxu1 }
 0x550   :  { %v9616_v54 = vpop.f32.mrb[205].mxu1 }
 0x551   :  { %v9617_v48 = vadd.f32 %v9616_v54, %v9615_v1  ;;  %v9618_v49 = vpop.f32.mrb[206].mxu1 }
 0x552   :  { %v9619_v55 = vpop.f32.mrb[207].mxu1 }
 0x553   :  { %v6635_v29 = vadd.f32 %v9617_v48, %v14127_v43 }
 0x555   :  { %v6640_v39 = vadd.f32 %v6635_v29, %v6363_v38 }
 0x56f   :  { %v9646_v17 = vpop.f32.mrb[208].mxu1 }
 0x570   :  { %v9647_v33 = vpop.f32.mrb[209].mxu1 }
 0x571   :  { %v9648_v23 = vadd.f32 %v9647_v33, %v9646_v17  ;;  %v9649_v63 = vpop.f32.mrb[210].mxu1 }
 0x572   :  { %v9650_v37 = vpop.f32.mrb[211].mxu1 }
 0x573   :  { %v6912_v43 = vadd.f32 %v9648_v23, %v14180_v41 }
 0x575   :  { %v6917_v6 = vadd.f32 %v6912_v43, %v6640_v39 }
 0x58f   :  { %v9677_v20 = vpop.f32.mrb[212].mxu1 }
 0x590   :  { %v9678_v51 = vpop.f32.mrb[213].mxu1 }
 0x591   :  { %v9679_v3 = vadd.f32 %v9678_v51, %v9677_v20  ;;  %v9680_v35 = vpop.f32.mrb[214].mxu1 }
 0x592   :  { %v9681_v45 = vpop.f32.mrb[215].mxu1 }
 0x593   :  { %v7189_v36 = vadd.f32 %v9679_v3, %v14216_v47 }
 0x595   :  { %v7194_v30 = vadd.f32 %v7189_v36, %v6917_v6 }
 0x5af   :  { %v9708_v21 = vpop.f32.mrb[216].mxu1 }
 0x5b0   :  { %v9709_v44 = vpop.f32.mrb[217].mxu1 }
 0x5b1   :  { %v9710_v25 = vadd.f32 %v9709_v44, %v9708_v21  ;;  %v9711_v19 = vpop.f32.mrb[218].mxu1 }
 0x5b2   :  { %v9712_v50 = vpop.f32.mrb[219].mxu1 }
 0x5b3   :  { %v7466_v59 = vadd.f32 %v9710_v25, %v14219_v24 }
 0x5b5   :  { %v7471_v53 = vadd.f32 %v7466_v59, %v7194_v30 }
 0x5cf   :  { %v9739_v13 = vpop.f32.mrb[220].mxu1 }
 0x5d0   :  { %v9740_v4 = vpop.f32.mrb[221].mxu1 }
 0x5d1   :  { %v9741_v41 = vadd.f32 %v9740_v4, %v9739_v13  ;;  %v9742_v31 = vpop.f32.mrb[222].mxu1 }
 0x5d2   :  { %v9743_v38 = vpop.f32.mrb[223].mxu1 }
 0x5d3   :  { %v7743_v52 = vadd.f32 %v9741_v41, %v7742_v60 }
 0x5d5   :  { %v7748_v47 = vadd.f32 %v7743_v52, %v7471_v53 }
 0x5d7   :  { %v7756_v14 = vadd.f32 %v9068_v10, %v7748_v47 }
 0x5d9   :  { %v7757_v15 = vmax.f32 %v7756_v14, 0.0 }
 0x5db   :  { %10044 = vmatmul.mubr.f32.vlgmr.msra.gmra.mrb[224].mxu1 %v7757_v15 }
 0x6ae   :  { %v7847_v24 = vpop.f32.mrb[224].mxu1 }
 0x6af   :  { %v7848_v61 = vadd.f32 %v9069_v56, %v7847_v24  ;;  %v10045_v28 = vpop.f32.mrb[225].mxu1 }
 0x6b1   :  { %v7852_v5 = vsel %vm7851_vm1, %v7848_v61, -inf }
 0x6b2   :  { %7853 = vmax.xlane.f32.xlu0 %v7852_v5 }
 0x73f   :  { %v7854_v12 = vpop.xlane.xlu0 %7853 }
 0x740   :  { %v7855_v11 = vsub.f32 %v7848_v61, %v7854_v12 }
 0x742   :  { %v7856_v8 = vmul.f32 1.442695, %v7855_v11 }
 0x744   :  { %11066 = vpow2.f32 %v7856_v8 }
 0x74e   :  { %v11067_v62 = vpop.eup %11066 }
 0x74f   :  { %v7858_v57 = vsel %vm7851_vm1, %v11067_v62, 0.0 }
 0x750   :  { %7859 = vadd.xlane.f32.xlu0 %v7858_v57 }
 0x7dd   :  { %v7860_v60 = vpop.xlane.xlu0 %7859 }
 0x7de   :  { %11068 = vrcp.f32 %v7860_v60 }
 0x7e8   :  { %v11069_v40 = vpop.eup %11068 }
 0x7e9   :  { %v7862_v0 = vmul.f32 %v11069_v40, %v11067_v62 }
 0x7eb   :  { %7863 = vst.msk [vmem:[%s14297_s11] sm:$0xff] %vm7851_vm1, %v7862_v0 }

</bundles_post_ra>
